<compile_context>
chip_gen: v6e
topology: v6e:2x2x1
jax: 0.10.0
libtpu: 0.0.40
codegen_flags: <defaults>
</compile_context>

<pallas_src>
import functools

import jax
import jax.numpy as jnp
from jax.experimental import pallas as pl
from jax.experimental.pallas import tpu as pltpu

# Generous but safe on every generation (v7x physical VMEM is 64 MiB).
DEFAULT_VMEM_LIMIT = 48 * 1024 * 1024


def _round_up(x, m):
    return ((x + m - 1) // m) * m


def _pick_tile(dim, preferred, align):
    """Largest multiple of `align` <= `preferred` that divides `dim`;
    falls back to the full dim (always a legal TPU block size)."""
    if dim <= preferred:
        return dim
    t = (preferred // align) * align
    while t >= align:
        if dim % t == 0:
            return t
        t -= align
    return dim


# ---------------------------------------------------------------------------
# Tiled matmul + bias (qkv projection and output projection).
# ---------------------------------------------------------------------------
def _matmul_bias_kernel(x_ref, w_ref, b_ref, o_ref, acc_ref):
    @pl.when(pl.program_id(2) == 0)
    def _init():
        acc_ref[...] = jnp.zeros_like(acc_ref)

    # Native-dtype operands straight to the MXU, f32 accumulation.
    acc_ref[...] += jnp.dot(x_ref[...], w_ref[...],
                            preferred_element_type=jnp.float32)

    @pl.when(pl.program_id(2) == pl.num_programs(2) - 1)
    def _store():
        o_ref[...] = (acc_ref[...] +
                      b_ref[...].astype(jnp.float32)).astype(o_ref.dtype)


def matmul_bias(x, w, b, *, tm=512, tn=512, tk=None):
    """x: (M, K), w: (K, Nout) (already transposed), b: (Nout,) -> (M, Nout)."""
    M, K = x.shape
    K2, Nout = w.shape
    assert K == K2
    tm = _pick_tile(M, tm, 8)         # sublane-aligned (M is padded by caller)
    tn = _pick_tile(Nout, tn, 128)    # lane-aligned
    if tk is None:
        # Full-K contraction for ViT-sized C: one MXU-friendly pass, no
        # reduction-axis revisits of the output block.
        tk = K if K <= 2048 else _pick_tile(K, 512, 256)
    else:
        tk = _pick_tile(K, tk, 128)
    grid = (M // tm, Nout // tn, K // tk)
    itemsize = x.dtype.itemsize
    return pl.pallas_call(
        _matmul_bias_kernel,
        out_shape=jax.ShapeDtypeStruct((M, Nout), x.dtype),
        grid_spec=pltpu.PrefetchScalarGridSpec(
            num_scalar_prefetch=0,
            grid=grid,
            in_specs=[
                pl.BlockSpec((tm, tk), lambda i, j, k: (i, k)),
                pl.BlockSpec((tk, tn), lambda i, j, k: (k, j)),
                pl.BlockSpec((1, tn), lambda i, j, k: (0, j)),
            ],
            out_specs=pl.BlockSpec((tm, tn), lambda i, j, k: (i, j)),
            scratch_shapes=[pltpu.VMEM((tm, tn), jnp.float32)],
        ),
        compiler_params=pltpu.CompilerParams(
            dimension_semantics=("parallel", "parallel", "arbitrary"),
            vmem_limit_bytes=DEFAULT_VMEM_LIMIT),
        cost_estimate=pl.CostEstimate(
            flops=2 * M * K * Nout,
            transcendentals=0,
            bytes_accessed=(M * K + K * Nout + M * Nout + Nout) * itemsize),
    )(x, w, b.reshape(1, Nout))


# ---------------------------------------------------------------------------
# Flash multi-head attention: grid (B, H, q_tiles, kv_tiles) with an
# "arbitrary" KV axis and online-softmax m/l/acc scratch. One (tq, Dh) q tile
# and one (tkv, Dh) k/v tile per step; padded keys masked in the softmax.
# ---------------------------------------------------------------------------
def _flash_attn_kernel(q_ref, k_ref, v_ref, o_ref, m_ref, l_ref, acc_ref,
                       *, n_valid, n_padded, cast_to_bf16):
    kv = pl.program_id(3)

    @pl.when(kv == 0)
    def _init():
        m_ref[...] = jnp.full_like(m_ref, -jnp.inf)
        l_ref[...] = jnp.zeros_like(l_ref)
        acc_ref[...] = jnp.zeros_like(acc_ref)

    q = q_ref[...]
    k = k_ref[...]
    v = v_ref[...]
    if cast_to_bf16:
        # bf16 operands run the MXU at full rate on all generations;
        # accumulation stays f32 via preferred_element_type.
        q = q.astype(jnp.bfloat16)
        k = k.astype(jnp.bfloat16)
        v = v.astype(jnp.bfloat16)

    # (tq, tkv) scores: contraction over Dh, no explicit k.T copy.
    # (softmax scale is already folded into the q projection weights.)
    s = jax.lax.dot_general(q, k, dimension_numbers=(((1,), (1,)), ((), ())),
                            preferred_element_type=jnp.float32)

    if n_valid < n_padded:  # static: key padding exists -> mask padded columns
        tkv = k_ref.shape[0]
        col = kv * tkv + jax.lax.broadcasted_iota(jnp.int32, s.shape, 1)
        s = jnp.where(col < n_valid, s, -jnp.inf)

    m_prev = m_ref[...]
    m_new = jnp.maximum(m_prev, jnp.max(s, axis=-1, keepdims=True))
    alpha = jnp.exp(m_prev - m_new)
    p = jnp.exp(s - m_new)

    l_ref[...] = alpha * l_ref[...] + jnp.sum(p, axis=-1, keepdims=True)
    acc_ref[...] = alpha * acc_ref[...] + jax.lax.dot_general(
        p.astype(v.dtype), v, dimension_numbers=(((1,), (0,)), ((), ())),
        preferred_element_type=jnp.float32)
    m_ref[...] = m_new

    @pl.when(kv == pl.num_programs(3) - 1)
    def _store():
        # Exact reciprocal on the small (tq, 1) denominator (approx costs
        # nothing to avoid here, per review).
        o_ref[...] = (acc_ref[...] *
                      pl.reciprocal(l_ref[...], approx=False)).astype(o_ref.dtype)


def flash_attention(qkv_t, n_valid, *, tq=256, tkv=512, cast_to_bf16=True):
    """qkv_t: (3, B, H, N_pad, Dh) -> (B, H, N_pad, Dh)."""
    _, B, H, N_pad, Dh = qkv_t.shape
    tq = _pick_tile(N_pad, tq, 128)
    tkv = _pick_tile(N_pad, tkv, 128)
    nq, nkv = N_pad // tq, N_pad // tkv
    grid = (B, H, nq, nkv)

    kernel = functools.partial(_flash_attn_kernel, n_valid=n_valid,
                               n_padded=N_pad, cast_to_bf16=bool(cast_to_bf16))

    q_spec = pl.BlockSpec((None, None, None, tq, Dh),
                          lambda b, h, qi, ki: (0, b, h, qi, 0))
    k_spec = pl.BlockSpec((None, None, None, tkv, Dh),
                          lambda b, h, qi, ki: (1, b, h, ki, 0))
    v_spec = pl.BlockSpec((None, None, None, tkv, Dh),
                          lambda b, h, qi, ki: (2, b, h, ki, 0))
    out_spec = pl.BlockSpec((None, None, tq, Dh),
                            lambda b, h, qi, ki: (b, h, qi, 0))

    itemsize = qkv_t.dtype.itemsize
    return pl.pallas_call(
        kernel,
        out_shape=jax.ShapeDtypeStruct((B, H, N_pad, Dh), qkv_t.dtype),
        grid=grid,
        in_specs=[q_spec, k_spec, v_spec],
        out_specs=out_spec,
        scratch_shapes=[pltpu.VMEM((tq, 1), jnp.float32),    # running max m
                        pltpu.VMEM((tq, 1), jnp.float32),    # running sum l
                        pltpu.VMEM((tq, Dh), jnp.float32)],  # f32 accumulator
        compiler_params=pltpu.CompilerParams(
            dimension_semantics=("parallel", "parallel", "parallel", "arbitrary"),
            vmem_limit_bytes=DEFAULT_VMEM_LIMIT),
        cost_estimate=pl.CostEstimate(
            flops=4 * B * H * N_pad * N_pad * Dh,
            transcendentals=B * H * N_pad * N_pad,
            bytes_accessed=B * H * N_pad * Dh * (2 + 2 * nq) * itemsize),
    )(qkv_t, qkv_t, qkv_t)


# ---------------------------------------------------------------------------
# Parameter prep (done once, outside the hot forward):
#   * transpose the PyTorch Linear weights to (in, out),
#   * fold the softmax scale into the q projection weights/bias.
#     (Only valid while qk_norm is Identity — the module default.)
# ---------------------------------------------------------------------------
def prepare_params(params, num_heads):
    C = params["w_proj"].shape[0]
    scale = (C // num_heads) ** (-0.5)
    w_qkv_t = jnp.transpose(params["w_qkv"])              # (C, 3C)
    w_qkv_t = w_qkv_t.at[:, :C].multiply(scale)           # scale q columns
    b_qkv = params["b_qkv"].at[:C].multiply(scale)
    return {
        "w_qkv_t": w_qkv_t,
        "b_qkv": b_qkv,
        "w_proj_t": jnp.transpose(params["w_proj"]),       # (C, C)
        "b_proj": params["b_proj"],
    }


def attention_forward(x, prepared, num_heads, *, mxu_bf16=True):
    """Forward pass of the ViT Attention module (eval: dropout is a no-op)."""
    B, N, C = x.shape
    Dh = C // num_heads

    # Pad tokens to a multiple of 128 (e.g. ViT's N=197 -> 256). Padded keys
    # are masked in the softmax; padded query rows are sliced off at the end.
    N_pad = _round_up(N, 128)
    if N_pad != N:
        x = jnp.pad(x, ((0, 0), (0, N_pad - N), (0, 0)))

    # qkv projection: (B*N_pad, C) @ (C, 3C) + b   (tiled Pallas matmul)
    qkv = matmul_bias(x.reshape(B * N_pad, C),
                      prepared["w_qkv_t"], prepared["b_qkv"])

    # One XLA relayout pass to the canonical flash layout (3, B, H, N, Dh):
    # fully contiguous per-(batch, head) q/k/v tiles for the kernel's DMAs.
    # TODO(synk): fold this relayout into the qkv-projection epilogue
    # (per-head output BlockSpec) to save the HBM round trip.
    qkv_t = jnp.transpose(qkv.reshape(B, N_pad, 3, num_heads, Dh),
                          (2, 0, 3, 1, 4))

    # q_norm / k_norm are nn.Identity (qk_norm=False default).
    o = flash_attention(qkv_t, N, cast_to_bf16=mxu_bf16)   # (B, H, N_pad, Dh)

    # Back to token-major layout for the output projection.
    # TODO(synk): pack two heads per grid step to get 128-lane output stores
    # and fuse the projection into the attention epilogue, removing this
    # transpose + HBM round trip.
    o = jnp.transpose(o, (0, 2, 1, 3)).reshape(B * N_pad, C)

    # output projection  (tiled Pallas matmul)
    out = matmul_bias(o, prepared["w_proj_t"], prepared["b_proj"])
    return out.reshape(B, N_pad, C)[:, :N, :]


# ---------------------------------------------------------------------------
# Pure-JAX reference (correctness check only), using the original PyTorch
# parameter layout.
# ---------------------------------------------------------------------------
def attention_reference(x, params, num_heads):
    B, N, C = x.shape
    head_dim = C // num_heads
    scale = head_dim ** (-0.5)
    qkv = x @ params["w_qkv"].T + params["b_qkv"]
    qkv = qkv.reshape(B, N, 3, num_heads, head_dim).transpose(2, 0, 3, 1, 4)
    q, k, v = qkv[0], qkv[1], qkv[2]
    s = (q * scale) @ jnp.swapaxes(k, -2, -1)
    p = jax.nn.softmax(s, axis=-1)
    o = p @ v
    o = jnp.swapaxes(o, 1, 2).reshape(B, N, C)
    return o @ params["w_proj"].T + params["b_proj"]


if __name__ == "__main__":
    # Small shapes consistent with the module; N=72 is deliberately not a
    # multiple of 128 to exercise the pad+mask path (ViT uses N=197).
    B, N, C = 2, 72, 256
    num_heads = 4   # head_dim = 64, the standard ViT head size

    key = jax.random.PRNGKey(0)
    k_x, k_wqkv, k_wproj, k_bproj = jax.random.split(key, 4)

    x = jax.random.normal(k_x, (B, N, C), dtype=jnp.float32)

    # Deterministic synthetic parameters (PyTorch Linear weight shapes).
    params = {
        "w_qkv": jax.random.normal(k_wqkv, (3 * C, C), dtype=jnp.float32) * 0.05,
        "b_qkv": jnp.zeros((3 * C,), dtype=jnp.float32),   # qkv_bias=False
        "w_proj": jax.random.normal(k_wproj, (C, C), dtype=jnp.float32) * 0.05,
        "b_proj": jax.random.normal(k_bproj, (C,), dtype=jnp.float32) * 0.01,
    }

    prepared = prepare_params(params, num_heads)
    ref = attention_reference(x, params, num_heads)

    fwd = jax.jit(attention_forward, static_argnames=("num_heads", "mxu_bf16"))

    # 1) Strict f32 path (no bf16 operand casts): tight numerics check.
    out_f32 = jax.block_until_ready(
        fwd(x, prepared, num_heads=num_heads, mxu_bf16=False))
    assert out_f32.shape == (B, N, C)
    assert jnp.allclose(out_f32, ref, atol=1e-3, rtol=1e-3), (
        "f32 mismatch vs reference: max abs err = "
        f"{float(jnp.max(jnp.abs(out_f32 - ref)))}")

    # 2) Default perf path: f32 inputs, bf16 MXU operands inside attention.
    out_fast = jax.block_until_ready(
        fwd(x, prepared, num_heads=num_heads, mxu_bf16=True))
    assert out_fast.shape == (B, N, C)
    assert jnp.allclose(out_fast, ref, atol=3e-2, rtol=3e-2), (
        "bf16-MXU mismatch vs reference: max abs err = "
        f"{float(jnp.max(jnp.abs(out_fast - ref)))}")

    # 3) Full bf16 path (inputs + weights in bf16).
    prepared_bf16 = {kk: vv.astype(jnp.bfloat16) for kk, vv in prepared.items()}
    out_bf16 = jax.block_until_ready(
        fwd(x.astype(jnp.bfloat16), prepared_bf16,
            num_heads=num_heads, mxu_bf16=True))
    assert out_bf16.shape == (B, N, C)
    assert jnp.allclose(out_bf16.astype(jnp.float32), ref, atol=1e-1, rtol=1e-1), (
        "bf16 mismatch vs reference: max abs err = "
        f"{float(jnp.max(jnp.abs(out_bf16.astype(jnp.float32) - ref)))}")

    print("KERNEL_OK")
</pallas_src>

<mosaic_0001>
module attributes {stable_mosaic.version = 11 : i64} {
  func.func @_matmul_bias_kernel(%arg0: i32, %arg1: i32, %arg2: i32, %arg3: memref<256x256xf32, #tpu.memory_space<vmem>>, %arg4: memref<256x384xf32, #tpu.memory_space<vmem>>, %arg5: memref<1x384xf32, #tpu.memory_space<vmem>>, %arg6: memref<256x384xf32, #tpu.memory_space<vmem>>, %arg7: memref<256x384xf32, #tpu.memory_space<vmem>>) attributes {dimension_semantics = [#tpu.dimension_semantics<parallel>, #tpu.dimension_semantics<parallel>, #tpu.dimension_semantics<arbitrary>], iteration_bounds = array<i64: 1, 2, 1>, scalar_prefetch = 0 : i64, scratch_operands = 1 : i64, tpu.core_type = #tpu.core_type<tc>, window_params = [{transform_indices = @transform_0, window_bounds = array<i64: 256, 256>}, {transform_indices = @transform_1, window_bounds = array<i64: 256, 384>}, {transform_indices = @transform_2, window_bounds = array<i64: 1, 384>}, {transform_indices = @transform_3, window_bounds = array<i64: 256, 384>}]} {
    %c0_i32 = arith.constant 0 : i32
    %0 = arith.cmpi eq, %arg2, %c0_i32 : i32
    %1 = arith.extui %0 : i1 to i32
    %c0_i32_0 = arith.constant 0 : i32
    %2 = arith.cmpi ne, %1, %c0_i32_0 : i32
    scf.if %2 {
      %cst_10 = arith.constant 0.000000e+00 : f32
      %12 = vector.broadcast %cst_10 : f32 to vector<256x384xf32>
      %c0_11 = arith.constant 0 : index
      %c0_12 = arith.constant 0 : index
      %13 = vector.load %arg7[%c0_11, %c0_12] : memref<256x384xf32, #tpu.memory_space<vmem>>, vector<256x384xf32>
      tpu.vector_store %arg7[%c0_11, %c0_12], %12 {strides = array<i32>} : memref<256x384xf32, #tpu.memory_space<vmem>>, vector<256x384xf32>,
    } else {
    }
    %c0 = arith.constant 0 : index
    %c0_1 = arith.constant 0 : index
    %3 = vector.load %arg7[%c0, %c0_1] : memref<256x384xf32, #tpu.memory_space<vmem>>, vector<256x384xf32>
    %c0_2 = arith.constant 0 : index
    %c0_3 = arith.constant 0 : index
    %4 = vector.load %arg3[%c0_2, %c0_3] : memref<256x256xf32, #tpu.memory_space<vmem>>, vector<256x256xf32>
    %c0_4 = arith.constant 0 : index
    %c0_5 = arith.constant 0 : index
    %5 = vector.load %arg4[%c0_4, %c0_5] : memref<256x384xf32, #tpu.memory_space<vmem>>, vector<256x384xf32>
    %cst = arith.constant dense<0.000000e+00> : vector<256x384xf32>
    %6 = tpu.matmul %4, %5, %cst {dimension_numbers = #tpu.dot_dimension_numbers<[1], [0], [0], [1], [0, 0, 1, 1], [], []>} : vector<256x256xf32>, vector<256x384xf32>, vector<256x384xf32> -> vector<256x384xf32>
    %7 = arith.addf %3, %6 : vector<256x384xf32>
    %c0_6 = arith.constant 0 : index
    %c0_7 = arith.constant 0 : index
    %8 = vector.load %arg7[%c0_6, %c0_7] : memref<256x384xf32, #tpu.memory_space<vmem>>, vector<256x384xf32>
    tpu.vector_store %arg7[%c0_6, %c0_7], %7 {strides = array<i32>} : memref<256x384xf32, #tpu.memory_space<vmem>>, vector<256x384xf32>,
    %c0_i32_8 = arith.constant 0 : i32
    %9 = arith.cmpi eq, %arg2, %c0_i32_8 : i32
    %10 = arith.extui %9 : i1 to i32
    %c0_i32_9 = arith.constant 0 : i32
    %11 = arith.cmpi ne, %10, %c0_i32_9 : i32
    scf.if %11 {
      %c0_10 = arith.constant 0 : index
      %c0_11 = arith.constant 0 : index
      %12 = vector.load %arg7[%c0_10, %c0_11] : memref<256x384xf32, #tpu.memory_space<vmem>>, vector<256x384xf32>
      %c0_12 = arith.constant 0 : index
      %c0_13 = arith.constant 0 : index
      %13 = vector.load %arg5[%c0_12, %c0_13] : memref<1x384xf32, #tpu.memory_space<vmem>>, vector<1x384xf32>
      %14 = vector.broadcast %13 : vector<1x384xf32> to vector<256x384xf32>
      %15 = arith.addf %12, %14 : vector<256x384xf32>
      %c0_14 = arith.constant 0 : index
      %c0_15 = arith.constant 0 : index
      %16 = vector.load %arg6[%c0_14, %c0_15] : memref<256x384xf32, #tpu.memory_space<vmem>>, vector<256x384xf32>
      tpu.vector_store %arg6[%c0_14, %c0_15], %15 {strides = array<i32>} : memref<256x384xf32, #tpu.memory_space<vmem>>, vector<256x384xf32>,
    } else {
    }
    return
  }
  func.func @transform_0(%arg0: i32, %arg1: i32, %arg2: i32) -> (i32, i32) {
    %c0_i32 = arith.constant 0 : i32
    return %arg0, %arg2 : i32, i32
  }
  func.func @transform_1(%arg0: i32, %arg1: i32, %arg2: i32) -> (i32, i32) {
    %c0_i32 = arith.constant 0 : i32
    return %arg2, %arg1 : i32, i32
  }
  func.func @transform_2(%arg0: i32, %arg1: i32, %arg2: i32) -> (i32, i32) {
    %c0_i32 = arith.constant 0 : i32
    %c0_i32_0 = arith.constant 0 : i32
    return %c0_i32, %arg1 : i32, i32
  }
  func.func @transform_3(%arg0: i32, %arg1: i32, %arg2: i32) -> (i32, i32) {
    %c0_i32 = arith.constant 0 : i32
    return %arg0, %arg1 : i32, i32
  }
}

module attributes {stable_mosaic.version = 11 : i64} {
  func.func @_flash_attn_kernel(%arg0: i32, %arg1: i32, %arg2: i32, %arg3: i32, %arg4: memref<1x1x1x128x64xf32, #tpu.memory_space<vmem>>, %arg5: memref<1x1x1x128x64xf32, #tpu.memory_space<vmem>>, %arg6: memref<1x1x1x128x64xf32, #tpu.memory_space<vmem>>, %arg7: memref<1x1x128x64xf32, #tpu.memory_space<vmem>>, %arg8: memref<128x1xf32, #tpu.memory_space<vmem>>, %arg9: memref<128x1xf32, #tpu.memory_space<vmem>>, %arg10: memref<128x64xf32, #tpu.memory_space<vmem>>) attributes {dimension_semantics = [#tpu.dimension_semantics<parallel>, #tpu.dimension_semantics<parallel>, #tpu.dimension_semantics<parallel>, #tpu.dimension_semantics<arbitrary>], iteration_bounds = array<i64: 2, 4, 1, 1>, scalar_prefetch = 0 : i64, scratch_operands = 3 : i64, tpu.core_type = #tpu.core_type<tc>, window_params = [{transform_indices = @transform_0, window_bounds = array<i64: 1, 1, 1, 128, 64>}, {transform_indices = @transform_1, window_bounds = array<i64: 1, 1, 1, 128, 64>}, {transform_indices = @transform_2, window_bounds = array<i64: 1, 1, 1, 128, 64>}, {transform_indices = @transform_3, window_bounds = array<i64: 1, 1, 128, 64>}]} {
    %c0_i32 = arith.constant 0 : i32
    %0 = arith.cmpi eq, %arg3, %c0_i32 : i32
    %1 = arith.extui %0 : i1 to i32
    %c0_i32_0 = arith.constant 0 : i32
    %2 = arith.cmpi ne, %1, %c0_i32_0 : i32
    scf.if %2 {
      %cst_33 = arith.constant 0xFF800000 : f32
      %43 = vector.broadcast %cst_33 : f32 to vector<128x1xf32>
      %c0_34 = arith.constant 0 : index
      %c0_35 = arith.constant 0 : index
      %44 = vector.load %arg8[%c0_34, %c0_35] : memref<128x1xf32, #tpu.memory_space<vmem>>, vector<128x1xf32>
      tpu.vector_store %arg8[%c0_34, %c0_35], %43 {strides = array<i32>} : memref<128x1xf32, #tpu.memory_space<vmem>>, vector<128x1xf32>,
      %cst_36 = arith.constant 0.000000e+00 : f32
      %45 = vector.broadcast %cst_36 : f32 to vector<128x1xf32>
      %c0_37 = arith.constant 0 : index
      %c0_38 = arith.constant 0 : index
      %46 = vector.load %arg9[%c0_37, %c0_38] : memref<128x1xf32, #tpu.memory_space<vmem>>, vector<128x1xf32>
      tpu.vector_store %arg9[%c0_37, %c0_38], %45 {strides = array<i32>} : memref<128x1xf32, #tpu.memory_space<vmem>>, vector<128x1xf32>,
      %cst_39 = arith.constant 0.000000e+00 : f32
      %47 = vector.broadcast %cst_39 : f32 to vector<128x64xf32>
      %c0_40 = arith.constant 0 : index
      %c0_41 = arith.constant 0 : index
      %48 = vector.load %arg10[%c0_40, %c0_41] : memref<128x64xf32, #tpu.memory_space<vmem>>, vector<128x64xf32>
      tpu.vector_store %arg10[%c0_40, %c0_41], %47 {strides = array<i32>} : memref<128x64xf32, #tpu.memory_space<vmem>>, vector<128x64xf32>,
    } else {
    }
    %c0 = arith.constant 0 : index
    %c0_1 = arith.constant 0 : index
    %c0_2 = arith.constant 0 : index
    %c0_3 = arith.constant 0 : index
    %c0_4 = arith.constant 0 : index
    %3 = vector.load %arg4[%c0, %c0_1, %c0_2, %c0_3, %c0_4] : memref<1x1x1x128x64xf32, #tpu.memory_space<vmem>>, vector<1x1x1x128x64xf32>
    %4 = vector.shape_cast %3 : vector<1x1x1x128x64xf32> to vector<128x64xf32>
    %c0_5 = arith.constant 0 : index
    %c0_6 = arith.constant 0 : index
    %c0_7 = arith.constant 0 : index
    %c0_8 = arith.constant 0 : index
    %c0_9 = arith.constant 0 : index
    %5 = vector.load %arg5[%c0_5, %c0_6, %c0_7, %c0_8, %c0_9] : memref<1x1x1x128x64xf32, #tpu.memory_space<vmem>>, vector<1x1x1x128x64xf32>
    %6 = vector.shape_cast %5 : vector<1x1x1x128x64xf32> to vector<128x64xf32>
    %c0_10 = arith.constant 0 : index
    %c0_11 = arith.constant 0 : index
    %c0_12 = arith.constant 0 : index
    %c0_13 = arith.constant 0 : index
    %c0_14 = arith.constant 0 : index
    %7 = vector.load %arg6[%c0_10, %c0_11, %c0_12, %c0_13, %c0_14] : memref<1x1x1x128x64xf32, #tpu.memory_space<vmem>>, vector<1x1x1x128x64xf32>
    %8 = vector.shape_cast %7 : vector<1x1x1x128x64xf32> to vector<128x64xf32>
    %cst = arith.constant dense<0.000000e+00> : vector<128x128xf32>
    %9 = tpu.matmul %4, %6, %cst {dimension_numbers = #tpu.dot_dimension_numbers<[1], [1], [0], [0], [0, 0, 1, 0], [], []>} : vector<128x64xf32>, vector<128x64xf32>, vector<128x128xf32> -> vector<128x128xf32>
    %c128_i32 = arith.constant 128 : i32
    %10 = arith.muli %arg3, %c128_i32 : i32
    %11 = tpu.iota {dimensions = array<i32: 1>} : vector<128x128xi32>
    %12 = vector.broadcast %10 : i32 to vector<128x128xi32>
    %13 = arith.addi %12, %11 : vector<128x128xi32>
    %c72_i32 = arith.constant 72 : i32
    %14 = vector.broadcast %c72_i32 : i32 to vector<128x128xi32>
    %15 = arith.cmpi slt, %13, %14 : vector<128x128xi32>
    %cst_15 = arith.constant 0xFF800000 : f32
    %16 = vector.broadcast %cst_15 : f32 to vector<128x128xf32>
    %17 = arith.select %15, %9, %16 : vector<128x128xi1>, vector<128x128xf32>
    %c0_16 = arith.constant 0 : index
    %c0_17 = arith.constant 0 : index
    %18 = vector.load %arg8[%c0_16, %c0_17] : memref<128x1xf32, #tpu.memory_space<vmem>>, vector<128x1xf32>
    %cst_18 = arith.constant dense<0xFF800000> : vector<128xf32>
    %19 = vector.multi_reduction <maximumf>, %17, %cst_18 [1] : vector<128x128xf32> to vector<128xf32>
    %20 = vector.shape_cast %19 : vector<128xf32> to vector<128x1xf32>
    %21 = arith.maximumf %18, %20 : vector<128x1xf32>
    %22 = arith.subf %18, %21 : vector<128x1xf32>
    %23 = math.exp %22 : vector<128x1xf32>
    %24 = vector.broadcast %21 : vector<128x1xf32> to vector<128x128xf32>
    %25 = arith.subf %17, %24 : vector<128x128xf32>
    %26 = math.exp %25 : vector<128x128xf32>
    %c0_19 = arith.constant 0 : index
    %c0_20 = arith.constant 0 : index
    %27 = vector.load %arg9[%c0_19, %c0_20] : memref<128x1xf32, #tpu.memory_space<vmem>>, vector<128x1xf32>
    %28 = arith.mulf %23, %27 : vector<128x1xf32>
    %cst_21 = arith.constant dense<0.000000e+00> : vector<128xf32>
    %29 = vector.multi_reduction <add>, %26, %cst_21 [1] : vector<128x128xf32> to vector<128xf32>
    %30 = vector.shape_cast %29 : vector<128xf32> to vector<128x1xf32>
    %31 = arith.addf %28, %30 : vector<128x1xf32>
    %c0_22 = arith.constant 0 : index
    %c0_23 = arith.constant 0 : index
    %32 = vector.load %arg9[%c0_22, %c0_23] : memref<128x1xf32, #tpu.memory_space<vmem>>, vector<128x1xf32>
    tpu.vector_store %arg9[%c0_22, %c0_23], %31 {strides = array<i32>} : memref<128x1xf32, #tpu.memory_space<vmem>>, vector<128x1xf32>,
    %c0_24 = arith.constant 0 : index
    %c0_25 = arith.constant 0 : index
    %33 = vector.load %arg10[%c0_24, %c0_25] : memref<128x64xf32, #tpu.memory_space<vmem>>, vector<128x64xf32>
    %34 = vector.broadcast %23 : vector<128x1xf32> to vector<128x64xf32>
    %35 = arith.mulf %34, %33 : vector<128x64xf32>
    %cst_26 = arith.constant dense<0.000000e+00> : vector<128x64xf32>
    %36 = tpu.matmul %26, %8, %cst_26 {dimension_numbers = #tpu.dot_dimension_numbers<[1], [0], [0], [1], [0, 0, 1, 1], [], []>} : vector<128x128xf32>, vector<128x64xf32>, vector<128x64xf32> -> vector<128x64xf32>
    %37 = arith.addf %35, %36 : vector<128x64xf32>
    %c0_27 = arith.constant 0 : index
    %c0_28 = arith.constant 0 : index
    %38 = vector.load %arg10[%c0_27, %c0_28] : memref<128x64xf32, #tpu.memory_space<vmem>>, vector<128x64xf32>
    tpu.vector_store %arg10[%c0_27, %c0_28], %37 {strides = array<i32>} : memref<128x64xf32, #tpu.memory_space<vmem>>, vector<128x64xf32>,
    %c0_29 = arith.constant 0 : index
    %c0_30 = arith.constant 0 : index
    %39 = vector.load %arg8[%c0_29, %c0_30] : memref<128x1xf32, #tpu.memory_space<vmem>>, vector<128x1xf32>
    tpu.vector_store %arg8[%c0_29, %c0_30], %21 {strides = array<i32>} : memref<128x1xf32, #tpu.memory_space<vmem>>, vector<128x1xf32>,
    %c0_i32_31 = arith.constant 0 : i32
    %40 = arith.cmpi eq, %arg3, %c0_i32_31 : i32
    %41 = arith.extui %40 : i1 to i32
    %c0_i32_32 = arith.constant 0 : i32
    %42 = arith.cmpi ne, %41, %c0_i32_32 : i32
    scf.if %42 {
      %c0_33 = arith.constant 0 : index
      %c0_34 = arith.constant 0 : index
      %43 = vector.load %arg10[%c0_33, %c0_34] : memref<128x64xf32, #tpu.memory_space<vmem>>, vector<128x64xf32>
      %c0_35 = arith.constant 0 : index
      %c0_36 = arith.constant 0 : index
      %44 = vector.load %arg9[%c0_35, %c0_36] : memref<128x1xf32, #tpu.memory_space<vmem>>, vector<128x1xf32>
      %45 = tpu.reciprocal %44 : vector<128x1xf32> -> vector<128x1xf32>
      %46 = vector.broadcast %45 : vector<128x1xf32> to vector<128x64xf32>
      %47 = arith.mulf %43, %46 : vector<128x64xf32>
      %c0_37 = arith.constant 0 : index
      %c0_38 = arith.constant 0 : index
      %c0_39 = arith.constant 0 : index
      %c0_40 = arith.constant 0 : index
      %48 = vector.load %arg7[%c0_37, %c0_38, %c0_39, %c0_40] : memref<1x1x128x64xf32, #tpu.memory_space<vmem>>, vector<1x1x128x64xf32>
      %49 = vector.shape_cast %48 : vector<1x1x128x64xf32> to vector<128x64xf32>
      %50 = vector.shape_cast %47 : vector<128x64xf32> to vector<1x1x128x64xf32>
      tpu.vector_store %arg7[%c0_37, %c0_38, %c0_39, %c0_40], %50 {strides = array<i32>} : memref<1x1x128x64xf32, #tpu.memory_space<vmem>>, vector<1x1x128x64xf32>,
    } else {
    }
    return
  }
  func.func @transform_0(%arg0: i32, %arg1: i32, %arg2: i32, %arg3: i32) -> (i32, i32, i32, i32, i32) {
    %c0_i32 = arith.constant 0 : i32
    %c0_i32_0 = arith.constant 0 : i32
    %c0_i32_1 = arith.constant 0 : i32
    return %c0_i32, %arg0, %arg1, %arg2, %c0_i32_0 : i32, i32, i32, i32, i32
  }
  func.func @transform_1(%arg0: i32, %arg1: i32, %arg2: i32, %arg3: i32) -> (i32, i32, i32, i32, i32) {
    %c1_i32 = arith.constant 1 : i32
    %c0_i32 = arith.constant 0 : i32
    %c0_i32_0 = arith.constant 0 : i32
    return %c1_i32, %arg0, %arg1, %arg3, %c0_i32 : i32, i32, i32, i32, i32
  }
  func.func @transform_2(%arg0: i32, %arg1: i32, %arg2: i32, %arg3: i32) -> (i32, i32, i32, i32, i32) {
    %c2_i32 = arith.constant 2 : i32
    %c0_i32 = arith.constant 0 : i32
    %c0_i32_0 = arith.constant 0 : i32
    return %c2_i32, %arg0, %arg1, %arg3, %c0_i32 : i32, i32, i32, i32, i32
  }
  func.func @transform_3(%arg0: i32, %arg1: i32, %arg2: i32, %arg3: i32) -> (i32, i32, i32, i32) {
    %c0_i32 = arith.constant 0 : i32
    %c0_i32_0 = arith.constant 0 : i32
    return %arg0, %arg1, %arg2, %c0_i32 : i32, i32, i32, i32
  }
}

module attributes {stable_mosaic.version = 11 : i64} {
  func.func @_matmul_bias_kernel(%arg0: i32, %arg1: i32, %arg2: i32, %arg3: memref<256x256xf32, #tpu.memory_space<vmem>>, %arg4: memref<256x256xf32, #tpu.memory_space<vmem>>, %arg5: memref<1x256xf32, #tpu.memory_space<vmem>>, %arg6: memref<256x256xf32, #tpu.memory_space<vmem>>, %arg7: memref<256x256xf32, #tpu.memory_space<vmem>>) attributes {dimension_semantics = [#tpu.dimension_semantics<parallel>, #tpu.dimension_semantics<parallel>, #tpu.dimension_semantics<arbitrary>], iteration_bounds = array<i64: 1, 1, 1>, scalar_prefetch = 0 : i64, scratch_operands = 1 : i64, tpu.core_type = #tpu.core_type<tc>, window_params = [{transform_indices = @transform_0, window_bounds = array<i64: 256, 256>}, {transform_indices = @transform_1, window_bounds = array<i64: 256, 256>}, {transform_indices = @transform_2, window_bounds = array<i64: 1, 256>}, {transform_indices = @transform_3, window_bounds = array<i64: 256, 256>}]} {
    %c0_i32 = arith.constant 0 : i32
    %0 = arith.cmpi eq, %arg2, %c0_i32 : i32
    %1 = arith.extui %0 : i1 to i32
    %c0_i32_0 = arith.constant 0 : i32
    %2 = arith.cmpi ne, %1, %c0_i32_0 : i32
    scf.if %2 {
      %cst_10 = arith.constant 0.000000e+00 : f32
      %12 = vector.broadcast %cst_10 : f32 to vector<256x256xf32>
      %c0_11 = arith.constant 0 : index
      %c0_12 = arith.constant 0 : index
      %13 = vector.load %arg7[%c0_11, %c0_12] : memref<256x256xf32, #tpu.memory_space<vmem>>, vector<256x256xf32>
      tpu.vector_store %arg7[%c0_11, %c0_12], %12 {strides = array<i32>} : memref<256x256xf32, #tpu.memory_space<vmem>>, vector<256x256xf32>,
    } else {
    }
    %c0 = arith.constant 0 : index
    %c0_1 = arith.constant 0 : index
    %3 = vector.load %arg7[%c0, %c0_1] : memref<256x256xf32, #tpu.memory_space<vmem>>, vector<256x256xf32>
    %c0_2 = arith.constant 0 : index
    %c0_3 = arith.constant 0 : index
    %4 = vector.load %arg3[%c0_2, %c0_3] : memref<256x256xf32, #tpu.memory_space<vmem>>, vector<256x256xf32>
    %c0_4 = arith.constant 0 : index
    %c0_5 = arith.constant 0 : index
    %5 = vector.load %arg4[%c0_4, %c0_5] : memref<256x256xf32, #tpu.memory_space<vmem>>, vector<256x256xf32>
    %cst = arith.constant dense<0.000000e+00> : vector<256x256xf32>
    %6 = tpu.matmul %4, %5, %cst {dimension_numbers = #tpu.dot_dimension_numbers<[1], [0], [0], [1], [0, 0, 1, 1], [], []>} : vector<256x256xf32>, vector<256x256xf32>, vector<256x256xf32> -> vector<256x256xf32>
    %7 = arith.addf %3, %6 : vector<256x256xf32>
    %c0_6 = arith.constant 0 : index
    %c0_7 = arith.constant 0 : index
    %8 = vector.load %arg7[%c0_6, %c0_7] : memref<256x256xf32, #tpu.memory_space<vmem>>, vector<256x256xf32>
    tpu.vector_store %arg7[%c0_6, %c0_7], %7 {strides = array<i32>} : memref<256x256xf32, #tpu.memory_space<vmem>>, vector<256x256xf32>,
    %c0_i32_8 = arith.constant 0 : i32
    %9 = arith.cmpi eq, %arg2, %c0_i32_8 : i32
    %10 = arith.extui %9 : i1 to i32
    %c0_i32_9 = arith.constant 0 : i32
    %11 = arith.cmpi ne, %10, %c0_i32_9 : i32
    scf.if %11 {
      %c0_10 = arith.constant 0 : index
      %c0_11 = arith.constant 0 : index
      %12 = vector.load %arg7[%c0_10, %c0_11] : memref<256x256xf32, #tpu.memory_space<vmem>>, vector<256x256xf32>
      %c0_12 = arith.constant 0 : index
      %c0_13 = arith.constant 0 : index
      %13 = vector.load %arg5[%c0_12, %c0_13] : memref<1x256xf32, #tpu.memory_space<vmem>>, vector<1x256xf32>
      %14 = vector.broadcast %13 : vector<1x256xf32> to vector<256x256xf32>
      %15 = arith.addf %12, %14 : vector<256x256xf32>
      %c0_14 = arith.constant 0 : index
      %c0_15 = arith.constant 0 : index
      %16 = vector.load %arg6[%c0_14, %c0_15] : memref<256x256xf32, #tpu.memory_space<vmem>>, vector<256x256xf32>
      tpu.vector_store %arg6[%c0_14, %c0_15], %15 {strides = array<i32>} : memref<256x256xf32, #tpu.memory_space<vmem>>, vector<256x256xf32>,
    } else {
    }
    return
  }
  func.func @transform_0(%arg0: i32, %arg1: i32, %arg2: i32) -> (i32, i32) {
    %c0_i32 = arith.constant 0 : i32
    return %arg0, %arg2 : i32, i32
  }
  func.func @transform_1(%arg0: i32, %arg1: i32, %arg2: i32) -> (i32, i32) {
    %c0_i32 = arith.constant 0 : i32
    return %arg2, %arg1 : i32, i32
  }
  func.func @transform_2(%arg0: i32, %arg1: i32, %arg2: i32) -> (i32, i32) {
    %c0_i32 = arith.constant 0 : i32
    %c0_i32_0 = arith.constant 0 : i32
    return %c0_i32, %arg1 : i32, i32
  }
  func.func @transform_3(%arg0: i32, %arg1: i32, %arg2: i32) -> (i32, i32) {
    %c0_i32 = arith.constant 0 : i32
    return %arg0, %arg1 : i32, i32
  }
}

</mosaic_0001>

<bundles_post_ra>
// kernel: attention_forward.4
= control target key start
LH: loop header
LB: loop body
LE: loop exit
PB: predicated region body
PF: predicated region fallthrough
CT: control target
= control target key end

     0   :  { %s2160_s12 = smov 0   ;;  %s2162_s13 = smov 0   ;;  %s2786_s0 = inlined_call_operand.vmem [shape: f32[3,2,4,128,64], index: 0, kind: input, shape index: {}, may-alias: {0,1,2}]   ;;  %s2787_s1 = inlined_call_operand.vmem [shape: f32[3,2,4,128,64], index: 1, kind: input, shape index: {}, may-alias: {0,1,2}]   ;;  %s2788_s2 = inlined_call_operand.vmem [shape: f32[3,2,4,128,64], index: 2, kind: input, shape index: {}, may-alias: {0,1,2}]   ;;  %s2789_s3 = inlined_call_operand.vmem [shape: f32[2,4,128,64], index: 3, kind: output, shape index: {}]  }
   0x1   :  { %s2164_s14 = smov 0   ;;  %s2166_s15 = smov 0  }
   0x2   :  { %s2168_s16 = smov 0  }
   0x3 LB: > { %s35_s17 = sadd.s32 1, %s2127_s14  ;;  %s39_s18 = sadd.s32 1, %s2131_s15  ;;  %s2135_s16 = sphi %s2168_s16, %s13_s16   ;;  %s2131_s15 = sphi %s2166_s15, %s2806_s15   ;;  %s2127_s14 = sphi %s2164_s14, %s2805_s14   ;;  %s2123_s13 = sphi %s2162_s13, %s2804_s13   ;;  %s2119_s12 = sphi %s2160_s12, %s2803_s12  }
   0x4   : > { %p37_p0 = scmp.ge.s32.totalorder %s35_s17, 4  ;;  %p1701_p1 = scmp.ge.s32.totalorder %s2135_s16, 1 }
   0x5   : > { %p228_p2 = scmp.lt.s32.totalorder %s2135_s16, 9 }
   0x6   : > { %s2808_s17 = smov (%p37_p0, %s35_s17), 0  ;;  %s2810_s18 = smov (!%p37_p0, %s39_s18), %s2131_s15 }
   0x7   : > { %p229_p3 = pnand %p1701_p1, %p228_p2  ;;  %p41_p4 = scmp.ge.s32.totalorder %s2810_s18, 2 }
   0x8   : > { %p297_p5 = scmp.lt.s32.totalorder (!%p229_p3), %s2123_s13, 1  ;;  %p299_p6 = scmp.lt.s32.totalorder (!%p229_p3), %s2119_s12, 3 }
   0x9   : > { %s2812_s18 = smov (%p41_p4, %s2810_s18), 0  ;;  %232 = sbr.rel (%p229_p3) target bundleno = 895 (0x37f), region = 32 }
   0xe   : > { %s2814_s13 = smov (!%p297_p5, %s2123_s13), 1  ;;  %s2816_s12 = smov (!%p299_p6, %s2119_s12), 3  ;;  %vm391_vm0 = vcmask 523264   ;;  %vm358_vm1 = vcmask 7168   ;;  %v2137_v32 = vmov -inf   ;;  %v699_v33 = vlaneseq }
   0xf   : > { %s1703_s19 = sshll.u32 %s2814_s13, 6  ;;  %s1702_s20 = sshll.u32 %s2816_s12, 4  ;;  %359 = vst.msk [vmem:[#allocation2] sm:$0xff] %vm358_vm1, %v2137_v32  ;;  %360 = vst.msk [vmem:[#allocation2 + $0x8] sm:$0xff] %vm358_vm1, %v2137_v32  ;;  %v2138_v51 = vmov 0  }
  0x10   : > { %s306_s21 = sadd.s32 %s1703_s19, %s1702_s20  ;;  %361 = vst.msk [vmem:[#allocation2 + $0x10] sm:$0xff] %vm358_vm1, %v2137_v32  ;;  %362 = vst.msk [vmem:[#allocation2 + $0x18] sm:$0xff] %vm358_vm1, %v2137_v32  ;;  %v2300_v34 = vand.u32 127, %v699_v33  ;;  %1999 = vset.pattern.permute.xlu0 %v2138_v51  ;;  %2000 = vset.pattern.permute.xlu1 %v2138_v51 }
  0x11   : > { %s2190_s22 = sshll.u32 %s306_s21, 3  ;;  %363 = vst.msk [vmem:[#allocation2 + $0x20] sm:$0xff] %vm358_vm1, %v2137_v32  ;;  %364 = vst.msk [vmem:[#allocation2 + $0x28] sm:$0xff] %vm358_vm1, %v2137_v32 }
  0x12   : > { %s2196_s25 = scalar_lea.vmem %s2787_s1, %s2190_s22  ;;  %s2206_s28 = scalar_lea.vmem %s2786_s0, %s2190_s22  ;;  %365 = vst.msk [vmem:[#allocation2 + $0x30] sm:$0xff] %vm358_vm1, %v2137_v32  ;;  %366 = vst.msk [vmem:[#allocation2 + $0x38] sm:$0xff] %vm358_vm1, %v2137_v32  ;;  %vm703_vm2 = vcmp.lt.s32.totalorder %v2300_v34, 72 }
  0x13   : > { %v1729_v0 = vld [vmem:[%s2196_s25 + $0x478] sm:$0xff]  ;;  %v1728_v1 = vld [vmem:[%s2196_s25 + $0x470] sm:$0xff]  ;;  %v1727_v2 = vld [vmem:[%s2196_s25 + $0x468] sm:$0xff]  ;;  %367 = vst.msk [vmem:[#allocation2 + $0x40] sm:$0xff] %vm358_vm1, %v2137_v32  ;;  %s2419_s4 = scalar_lea.vmem %s2788_s2, %s2190_s22  ;;  %s2737_s7 = scalar_lea.vmem %s2789_s3, %s2190_s22 }
  0x14   : > { %1844 = vmatprep.subr.msk.mxu0 %vm391_vm0, %v1729_v0  ;;  %v408_v3 = vld [vmem:[%s2206_s28] sm:$0xff]  ;;  %v1725_v5 = vld [vmem:[%s2196_s25 + $0x458] sm:$0xff]  ;;  %v1724_v6 = vld [vmem:[%s2196_s25 + $0x450] sm:$0xff]  ;;  %368 = vst.msk [vmem:[#allocation2 + $0x48] sm:$0xff] %vm358_vm1, %v2137_v32 }
  0x15   : > { %1845 = vmatpush3.xpose.msk.msra.mxu0 %vm391_vm0, %v1729_v0  ;;  %1876 = vmatprep.mubr.msk.f32.mxu0 %vm391_vm0, %v408_v3  ;;  %v1726_v4 = vld [vmem:[%s2196_s25 + $0x460] sm:$0xff]  ;;  %v1723_v7 = vld [vmem:[%s2196_s25 + $0x448] sm:$0xff]  ;;  %v1721_v9 = vld [vmem:[%s2196_s25 + $0x438] sm:$0xff]  ;;  %369 = vst.msk [vmem:[#allocation2 + $0x50] sm:$0xff] %vm358_vm1, %v2137_v32  ;;  %v2139_v0 = vmov 0.0  }
  0x16   : > { %1846 = vmatprep.subr.msk.mxu0 %vm391_vm0, %v1728_v1  ;;  %v1722_v8 = vld [vmem:[%s2196_s25 + $0x440] sm:$0xff]  ;;  %v1720_v10 = vld [vmem:[%s2196_s25 + $0x430] sm:$0xff]  ;;  %v1719_v11 = vld [vmem:[%s2196_s25 + $0x428] sm:$0xff]  ;;  %370 = vst.msk [vmem:[#allocation2 + $0x58] sm:$0xff] %vm358_vm1, %v2137_v32 }
  0x17   : > { %v1718_v12 = vld [vmem:[%s2196_s25 + $0x420] sm:$0xff]  ;;  %v1717_v13 = vld [vmem:[%s2196_s25 + $0x418] sm:$0xff]  ;;  %v1716_v14 = vld [vmem:[%s2196_s25 + $0x410] sm:$0xff]  ;;  %371 = vst.msk [vmem:[#allocation2 + $0x60] sm:$0xff] %vm358_vm1, %v2137_v32 }
  0x18   : > { %v1715_v15 = vld [vmem:[%s2196_s25 + $0x408] sm:$0xff]  ;;  %v1714_v16 = vld [vmem:[%s2196_s25 + $0x400] sm:$0xff]  ;;  %v410_v18 = vld [vmem:[%s2206_s28 + $0x10] sm:$0xff]  ;;  %372 = vst.msk [vmem:[#allocation2 + $0x68] sm:$0xff] %vm358_vm1, %v2137_v32 }
  0x19   : > { %1847 = vmatpush3.xpose.msk.msra.mxu0 %vm391_vm0, %v1728_v1  ;;  %v409_v17 = vld [vmem:[%s2206_s28 + $0x8] sm:$0xff]  ;;  %v411_v19 = vld [vmem:[%s2206_s28 + $0x18] sm:$0xff]  ;;  %v412_v20 = vld [vmem:[%s2206_s28 + $0x20] sm:$0xff]  ;;  %373 = vst.msk [vmem:[#allocation2 + $0x70] sm:$0xff] %vm358_vm1, %v2137_v32 }
  0x1a   : > { %1848 = vmatprep.subr.msk.mxu0 %vm391_vm0, %v1727_v2  ;;  %v413_v21 = vld [vmem:[%s2206_s28 + $0x28] sm:$0xff]  ;;  %v414_v22 = vld [vmem:[%s2206_s28 + $0x30] sm:$0xff]  ;;  %v415_v23 = vld [vmem:[%s2206_s28 + $0x38] sm:$0xff]  ;;  %374 = vst.msk [vmem:[#allocation2 + $0x78] sm:$0xff] %vm358_vm1, %v2137_v32 }
  0x1b   : > { %v416_v24 = vld [vmem:[%s2206_s28 + $0x40] sm:$0xff]  ;;  %v417_v25 = vld [vmem:[%s2206_s28 + $0x48] sm:$0xff]  ;;  %v418_v26 = vld [vmem:[%s2206_s28 + $0x50] sm:$0xff]  ;;  %375 = vst.msk [vmem:[#allocation3] sm:$0xff] %vm358_vm1, %v2139_v0 }
  0x1c   : > { %v419_v27 = vld [vmem:[%s2206_s28 + $0x58] sm:$0xff]  ;;  %v420_v28 = vld [vmem:[%s2206_s28 + $0x60] sm:$0xff]  ;;  %v421_v29 = vld [vmem:[%s2206_s28 + $0x68] sm:$0xff]  ;;  %376 = vst.msk [vmem:[#allocation3 + $0x8] sm:$0xff] %vm358_vm1, %v2139_v0 }
  0x1d   : > { %1849 = vmatpush3.xpose.msk.msra.mxu0 %vm391_vm0, %v1727_v2  ;;  %v422_v30 = vld [vmem:[%s2206_s28 + $0x70] sm:$0xff]  ;;  %v423_v31 = vld [vmem:[%s2206_s28 + $0x78] sm:$0xff]  ;;  %377 = vst.msk [vmem:[#allocation3 + $0x10] sm:$0xff] %vm358_vm1, %v2139_v0  ;;  %378 = vst.msk [vmem:[#allocation3 + $0x18] sm:$0xff] %vm358_vm1, %v2139_v0 }
  0x1e   : > { %1850 = vmatprep.subr.msk.mxu0 %vm391_vm0, %v1726_v4  ;;  %379 = vst.msk [vmem:[#allocation3 + $0x20] sm:$0xff] %vm358_vm1, %v2139_v0  ;;  %380 = vst.msk [vmem:[#allocation3 + $0x28] sm:$0xff] %vm358_vm1, %v2139_v0  ;;  %v1735_v33 = vld [vmem:[%s2419_s4 + $0x828] sm:$0xff]  ;;  %v1733_v51 = vld [vmem:[%s2419_s4 + $0x818] sm:$0xff] }
  0x1f   : > { %381 = vst.msk [vmem:[#allocation3 + $0x30] sm:$0xff] %vm358_vm1, %v2139_v0  ;;  %382 = vst.msk [vmem:[#allocation3 + $0x38] sm:$0xff] %vm358_vm1, %v2139_v0 }
  0x20   : > { %383 = vst.msk [vmem:[#allocation3 + $0x40] sm:$0xff] %vm358_vm1, %v2139_v0  ;;  %384 = vst.msk [vmem:[#allocation3 + $0x48] sm:$0xff] %vm358_vm1, %v2139_v0 }
  0x21   : > { %1851 = vmatpush3.xpose.msk.msra.mxu0 %vm391_vm0, %v1726_v4  ;;  %385 = vst.msk [vmem:[#allocation3 + $0x50] sm:$0xff] %vm358_vm1, %v2139_v0  ;;  %386 = vst.msk [vmem:[#allocation3 + $0x58] sm:$0xff] %vm358_vm1, %v2139_v0 }
  0x22   : > { %1852 = vmatprep.subr.msk.mxu0 %vm391_vm0, %v1725_v5  ;;  %387 = vst.msk [vmem:[#allocation3 + $0x60] sm:$0xff] %vm358_vm1, %v2139_v0  ;;  %388 = vst.msk [vmem:[#allocation3 + $0x68] sm:$0xff] %vm358_vm1, %v2139_v0 }
  0x23   : > { %389 = vst.msk [vmem:[#allocation3 + $0x70] sm:$0xff] %vm358_vm1, %v2139_v0  ;;  %390 = vst.msk [vmem:[#allocation3 + $0x78] sm:$0xff] %vm358_vm1, %v2139_v0 }
  0x24   : > { %392 = vst.msk [vmem:[#allocation4] sm:$0xff] %vm391_vm0, %v2139_v0  ;;  %393 = vst.msk [vmem:[#allocation4 + $0x8] sm:$0xff] %vm391_vm0, %v2139_v0 }
  0x25   : > { %1853 = vmatpush3.xpose.msk.msra.mxu0 %vm391_vm0, %v1725_v5  ;;  %394 = vst.msk [vmem:[#allocation4 + $0x10] sm:$0xff] %vm391_vm0, %v2139_v0  ;;  %395 = vst.msk [vmem:[#allocation4 + $0x18] sm:$0xff] %vm391_vm0, %v2139_v0  ;;  %v1745_v5 = vld [vmem:[%s2419_s4 + $0x878] sm:$0xff] }
  0x26   : > { %1854 = vmatprep.subr.msk.mxu0 %vm391_vm0, %v1724_v6  ;;  %396 = vst.msk [vmem:[#allocation4 + $0x20] sm:$0xff] %vm391_vm0, %v2139_v0  ;;  %397 = vst.msk [vmem:[#allocation4 + $0x28] sm:$0xff] %vm391_vm0, %v2139_v0  ;;  %1900 = vmatprep.subr.mxu1 %v1745_v5 }
  0x27   : > { %398 = vst.msk [vmem:[#allocation4 + $0x30] sm:$0xff] %vm391_vm0, %v2139_v0  ;;  %399 = vst.msk [vmem:[#allocation4 + $0x38] sm:$0xff] %vm391_vm0, %v2139_v0  ;;  %1901 = vmatpush3.msra.mxu1 %v1745_v5  ;;  %v1731_v5 = vld [vmem:[%s2419_s4 + $0x808] sm:$0xff] }
  0x28   : > { %400 = vst.msk [vmem:[#allocation4 + $0x40] sm:$0xff] %vm391_vm0, %v2139_v0  ;;  %401 = vst.msk [vmem:[#allocation4 + $0x48] sm:$0xff] %vm391_vm0, %v2139_v0 }
  0x29   : > { %1855 = vmatpush3.xpose.msk.msra.mxu0 %vm391_vm0, %v1724_v6  ;;  %402 = vst.msk [vmem:[#allocation4 + $0x50] sm:$0xff] %vm391_vm0, %v2139_v0  ;;  %403 = vst.msk [vmem:[#allocation4 + $0x58] sm:$0xff] %vm391_vm0, %v2139_v0  ;;  %v1744_v6 = vld [vmem:[%s2419_s4 + $0x870] sm:$0xff] }
  0x2a   : > { %1856 = vmatprep.subr.msk.mxu0 %vm391_vm0, %v1723_v7  ;;  %404 = vst.msk [vmem:[#allocation4 + $0x60] sm:$0xff] %vm391_vm0, %v2139_v0  ;;  %405 = vst.msk [vmem:[#allocation4 + $0x68] sm:$0xff] %vm391_vm0, %v2139_v0  ;;  %1902 = vmatprep.subr.mxu1 %v1744_v6 }
  0x2b   : > { %406 = vst.msk [vmem:[#allocation4 + $0x70] sm:$0xff] %vm391_vm0, %v2139_v0  ;;  %407 = vst.msk [vmem:[#allocation4 + $0x78] sm:$0xff] %vm391_vm0, %v2139_v0  ;;  %1903 = vmatpush3.msra.mxu1 %v1744_v6 }
  0x2d   : > { %1857 = vmatpush3.xpose.msk.msra.mxu0 %vm391_vm0, %v1723_v7  ;;  %v1743_v7 = vld [vmem:[%s2419_s4 + $0x868] sm:$0xff] }
  0x2e   : > { %1858 = vmatprep.subr.msk.mxu0 %vm391_vm0, %v1722_v8  ;;  %1904 = vmatprep.subr.mxu1 %v1743_v7 }
  0x2f   : > { %1905 = vmatpush3.msra.mxu1 %v1743_v7 }
  0x31   : > { %1859 = vmatpush3.xpose.msk.msra.mxu0 %vm391_vm0, %v1722_v8  ;;  %v1742_v8 = vld [vmem:[%s2419_s4 + $0x860] sm:$0xff] }
  0x32   : > { %1860 = vmatprep.subr.msk.mxu0 %vm391_vm0, %v1721_v9  ;;  %1906 = vmatprep.subr.mxu1 %v1742_v8 }
  0x33   : > { %1907 = vmatpush3.msra.mxu1 %v1742_v8 }
  0x35   : > { %1861 = vmatpush3.xpose.msk.msra.mxu0 %vm391_vm0, %v1721_v9  ;;  %v1741_v9 = vld [vmem:[%s2419_s4 + $0x858] sm:$0xff] }
  0x36   : > { %1862 = vmatprep.subr.msk.mxu0 %vm391_vm0, %v1720_v10  ;;  %1908 = vmatprep.subr.mxu1 %v1741_v9 }
  0x37   : > { %1909 = vmatpush3.msra.mxu1 %v1741_v9  ;;  %v2519_v9 = vld [vmem:[#allocation2 + $0x50] sm:$0xff] }
  0x39   : > { %1863 = vmatpush3.xpose.msk.msra.mxu0 %vm391_vm0, %v1720_v10  ;;  %v2426_v10 = vld [vmem:[#allocation2] sm:$0xff] }
  0x3a   : > { %1864 = vmatprep.subr.msk.mxu0 %vm391_vm0, %v1719_v11 }
  0x3d   : > { %1865 = vmatpush3.xpose.msk.msra.mxu0 %vm391_vm0, %v1719_v11  ;;  %v1740_v11 = vld [vmem:[%s2419_s4 + $0x850] sm:$0xff] }
  0x3e   : > { %1866 = vmatprep.subr.msk.mxu0 %vm391_vm0, %v1718_v12  ;;  %1910 = vmatprep.subr.mxu1 %v1740_v11 }
  0x3f   : > { %1911 = vmatpush3.msra.mxu1 %v1740_v11  ;;  %v1730_v11 = vld [vmem:[%s2419_s4 + $0x800] sm:$0xff] }
  0x41   : > { %1867 = vmatpush3.xpose.msk.msra.mxu0 %vm391_vm0, %v1718_v12 }
  0x42   : > { %1868 = vmatprep.subr.msk.mxu0 %vm391_vm0, %v1717_v13 }
  0x45   : > { %1869 = vmatpush3.xpose.msk.msra.mxu0 %vm391_vm0, %v1717_v13  ;;  %v2429_v13 = vld [vmem:[#allocation2 + $0x18] sm:$0xff] }
  0x46   : > { %1870 = vmatprep.subr.msk.mxu0 %vm391_vm0, %v1716_v14 }
  0x49   : > { %1871 = vmatpush3.xpose.msk.msra.mxu0 %vm391_vm0, %v1716_v14  ;;  %v1739_v14 = vld [vmem:[%s2419_s4 + $0x848] sm:$0xff] }
  0x4a   : > { %1872 = vmatprep.subr.msk.mxu0 %vm391_vm0, %v1715_v15  ;;  %1912 = vmatprep.subr.mxu1 %v1739_v14 }
  0x4b   : > { %1913 = vmatpush3.msra.mxu1 %v1739_v14 }
  0x4d   : > { %1873 = vmatpush3.xpose.msk.msra.mxu0 %vm391_vm0, %v1715_v15 }
  0x4e   : > { %1874 = vmatprep.subr.msk.mxu0 %vm391_vm0, %v1714_v16 }
  0x51   : > { %1875 = vmatpush3.xpose.msk.msra.mxu0 %vm391_vm0, %v1714_v16 }
  0x54   : > { %1877 = vmatmul.mubr.msk.f32.vlgmr.msra.gmra.mxu0 %vm391_vm0, %v409_v17  ;;  %v2435_v17 = vld [vmem:[#allocation2 + $0x8] sm:$0xff] }
  0x55   : > { %1879 = vmatprep.mubr.msk.f32.mxu0 %vm391_vm0, %v410_v18  ;;  %v1738_v18 = vld [vmem:[%s2419_s4 + $0x840] sm:$0xff] }
  0x56   : > { %1914 = vmatprep.subr.mxu1 %v1738_v18 }
  0x57   : > { %1915 = vmatpush3.msra.mxu1 %v1738_v18 }
  0x58   : > { %1880 = vmatmul.mubr.msk.f32.gmra.mxu0 %vm391_vm0, %v411_v19 }
  0x59   : > { %1882 = vmatprep.mubr.msk.f32.mxu0 %vm391_vm0, %v412_v20 }
  0x5c   : > { %1883 = vmatmul.mubr.msk.f32.gmra.mxu0 %vm391_vm0, %v413_v21 }
  0x5d   : > { %1885 = vmatprep.mubr.msk.f32.mxu0 %vm391_vm0, %v414_v22  ;;  %v2446_v22 = vld [vmem:[#allocation2 + $0x10] sm:$0xff] }
  0x60   : > { %1886 = vmatmul.mubr.msk.f32.gmra.mxu0 %vm391_vm0, %v415_v23  ;;  %v1737_v23 = vld [vmem:[%s2419_s4 + $0x838] sm:$0xff] }
  0x61   : > { %1888 = vmatprep.mubr.msk.f32.mxu0 %vm391_vm0, %v416_v24  ;;  %1916 = vmatprep.subr.mxu1 %v1737_v23 }
  0x62   : > { %1917 = vmatpush3.msra.mxu1 %v1737_v23 }
  0x64   : > { %1889 = vmatmul.mubr.msk.f32.gmra.mxu0 %vm391_vm0, %v417_v25 }
  0x65   : > { %1891 = vmatprep.mubr.msk.f32.mxu0 %vm391_vm0, %v418_v26 }
  0x68   : > { %1892 = vmatmul.mubr.msk.f32.gmra.mxu0 %vm391_vm0, %v419_v27  ;;  %v2456_v27 = vld [vmem:[#allocation2 + $0x20] sm:$0xff] }
  0x69   : > { %1894 = vmatprep.mubr.msk.f32.mxu0 %vm391_vm0, %v420_v28  ;;  %v1736_v28 = vld [vmem:[%s2419_s4 + $0x830] sm:$0xff] }
  0x6a   : > { %1918 = vmatprep.subr.mxu1 %v1736_v28 }
  0x6b   : > { %1919 = vmatpush3.msra.mxu1 %v1736_v28  ;;  %v2540_v28 = vld [vmem:[#allocation2 + $0x60] sm:$0xff] }
  0x6c   : > { %1895 = vmatmul.mubr.msk.f32.gmra.mxu0 %vm391_vm0, %v421_v29  ;;  %1920 = vmatprep.subr.mxu1 %v1735_v33 }
  0x6d   : > { %1897 = vmatprep.mubr.msk.f32.mxu0 %vm391_vm0, %v422_v30  ;;  %1921 = vmatpush3.msra.mxu1 %v1735_v33 }
  0x70   : > { %1898 = vmatmul.mubr.msk.f32.gmra.mxu0 %vm391_vm0, %v423_v31  ;;  %v2467_v31 = vld [vmem:[#allocation2 + $0x28] sm:$0xff] }
 0x114   : > { %v1878_v35 = vpop.f32.mrf.mxu0 }
 0x115   : > { %v2315_v41 = vsel %vm703_vm2, %v1878_v35, -inf }
 0x116   : > { %v619_v36 = vpop.f32.mrf.mxu0 }
 0x117   : > { %v2305_v37 = vsel %vm703_vm2, %v619_v36, -inf }
 0x118   : > { %736 = vmax.xlane.f32.xlu0 %v2305_v37  ;;  %v1881_v38 = vpop.f32.mrf.mxu0 }
 0x119   : > { %v2310_v39 = vsel %vm703_vm2, %v1881_v38, -inf  ;;  %v2477_v38 = vld [vmem:[#allocation2 + $0x30] sm:$0xff] }
 0x11a   : > { %742 = vmax.xlane.f32.xlu1 %v2310_v39  ;;  %v629_v40 = vpop.f32.mrf.mxu0 }
 0x11b   : > { %v2319_v42 = vsel %vm703_vm2, %v629_v40, -inf  ;;  %v1734_v40 = vld [vmem:[%s2419_s4 + $0x820] sm:$0xff] }
 0x11c   : > { %738 = vmax.xlane.f32.xlu0 %v2315_v41  ;;  %v1884_v43 = vpop.f32.mrf.mxu0  ;;  %1922 = vmatprep.subr.mxu1 %v1734_v40 }
 0x11d   : > { %v2325_v45 = vsel %vm703_vm2, %v1884_v43, -inf  ;;  %1923 = vmatpush3.msra.mxu1 %v1734_v40 }
 0x11e   : > { %740 = vmax.xlane.f32.xlu1 %v2319_v42  ;;  %v639_v44 = vpop.f32.mrf.mxu0  ;;  %1924 = vmatprep.subr.mxu1 %v1733_v51 }
 0x11f   : > { %v2329_v46 = vsel %vm703_vm2, %v639_v44, -inf  ;;  %1925 = vmatpush3.msra.mxu1 %v1733_v51 }
 0x120   : > { %v1887_v47 = vpop.f32.mrf.mxu0  ;;  %744 = vmax.xlane.f32.xlu0 %v2329_v46 }
 0x121   : > { %v2335_v49 = vsel %vm703_vm2, %v1887_v47, -inf  ;;  %v2488_v47 = vld [vmem:[#allocation2 + $0x38] sm:$0xff] }
 0x122   : > { %746 = vmax.xlane.f32.xlu1 %v2325_v45  ;;  %v649_v48 = vpop.f32.mrf.mxu0 }
 0x123   : > { %v2339_v50 = vsel %vm703_vm2, %v649_v48, -inf }
 0x124   : > { %v1890_v52 = vpop.f32.mrf.mxu0  ;;  %748 = vmax.xlane.f32.xlu0 %v2339_v50 }
 0x125   : > { %v2345_v54 = vsel %vm703_vm2, %v1890_v52, -inf }
 0x126   : > { %750 = vmax.xlane.f32.xlu1 %v2335_v49  ;;  %v659_v53 = vpop.f32.mrf.mxu0 }
 0x127   : > { %v2349_v55 = vsel %vm703_vm2, %v659_v53, -inf }
 0x128   : > { %v1893_v56 = vpop.f32.mrf.mxu0  ;;  %752 = vmax.xlane.f32.xlu0 %v2349_v55 }
 0x129   : > { %v2355_v58 = vsel %vm703_vm2, %v1893_v56, -inf }
 0x12a   : > { %754 = vmax.xlane.f32.xlu1 %v2345_v54  ;;  %v669_v57 = vpop.f32.mrf.mxu0 }
 0x12b   : > { %v2359_v59 = vsel %vm703_vm2, %v669_v57, -inf  ;;  %v2498_v57 = vld [vmem:[#allocation2 + $0x40] sm:$0xff] }
 0x12c   : > { %v1896_v60 = vpop.f32.mrf.mxu0  ;;  %756 = vmax.xlane.f32.xlu0 %v2359_v59 }
 0x12d   : > { %v2365_v62 = vsel %vm703_vm2, %v1896_v60, -inf  ;;  %v1732_v60 = vld [vmem:[%s2419_s4 + $0x810] sm:$0xff] }
 0x12e   : > { %758 = vmax.xlane.f32.xlu1 %v2355_v58  ;;  %v679_v61 = vpop.f32.mrf.mxu0  ;;  %1926 = vmatprep.subr.mxu1 %v1732_v60 }
 0x12f   : > { %v2369_v63 = vsel %vm703_vm2, %v679_v61, -inf  ;;  %1927 = vmatpush3.msra.mxu1 %v1732_v60  ;;  %v2560_v60 = vld [vmem:[#allocation2 + $0x70] sm:$0xff] }
 0x130   : > { %v1899_v1 = vpop.f32.mrf.mxu0  ;;  %760 = vmax.xlane.f32.xlu0 %v2369_v63  ;;  %1928 = vmatprep.subr.mxu1 %v1731_v5 }
 0x131   : > { %v2407_v3 = vsel %vm703_vm2, %v1899_v1, -inf  ;;  %v2509_v1 = vld [vmem:[#allocation2 + $0x48] sm:$0xff]  ;;  %1929 = vmatpush3.msra.mxu1 %v1731_v5 }
 0x132   : > { %762 = vmax.xlane.f32.xlu1 %v2365_v62  ;;  %v689_v2 = vpop.f32.mrf.mxu0  ;;  %1930 = vmatprep.subr.mxu1 %v1730_v11 }
 0x133   : > { %v2411_v4 = vsel %vm703_vm2, %v689_v2, -inf  ;;  %1931 = vmatpush3.msra.mxu1 %v1730_v11 }
 0x134   : > { %764 = vmax.xlane.f32.xlu0 %v2411_v4 }
 0x136   : > { %766 = vmax.xlane.f32.xlu1 %v2407_v3 }
 0x1a1   : > { %v737_v12 = vpop.xlane.xlu0 %736 }
 0x1a2   : > { %v2433_v15 = vmax.f32 %v2426_v10, %v737_v12 }
 0x1a3   : > { %v743_v16 = vpop.xlane.xlu1 %742 }
 0x1a4   : > { %v784_v19 = vsub.f32 %v2426_v10, %v2433_v15  ;;  %1346 = vst.msk [vmem:[#allocation2] sm:$0xff] %vm358_vm1, %v2433_v15  ;;  %v2443_v20 = vmax.f32 %v2429_v13, %v743_v16  ;;  %834 = vperm.xlu0 %1999, %v2433_v15   ;;  %v2530_v16 = vld [vmem:[#allocation2 + $0x58] sm:$0xff] }
 0x1a5   : > { %v739_v21 = vpop.xlane.xlu0 %738 }
 0x1a6   : > { %1349 = vst.msk [vmem:[#allocation2 + $0x18] sm:$0xff] %vm358_vm1, %v2443_v20  ;;  %v2454_v25 = vmax.f32 %v2435_v17, %v739_v21 }
 0x1a7   : > { %v741_v26 = vpop.xlane.xlu1 %740 }
 0x1a8   : > { %v785_v29 = vsub.f32 %v2435_v17, %v2454_v25  ;;  %1347 = vst.msk [vmem:[#allocation2 + $0x8] sm:$0xff] %vm358_vm1, %v2454_v25  ;;  %v2464_v30 = vmax.f32 %v2446_v22, %v741_v26  ;;  %839 = vperm.xlu1 %2000, %v2454_v25  }
 0x1a9   : > { %v745_v32 = vpop.xlane.xlu0 %744 }
 0x1aa   : > { %v786_v34 = vsub.f32 %v2446_v22, %v2464_v30  ;;  %1348 = vst.msk [vmem:[#allocation2 + $0x10] sm:$0xff] %vm358_vm1, %v2464_v30  ;;  %v2475_v35 = vmax.f32 %v2456_v27, %v745_v32 }
 0x1ab   : > { %v747_v36 = vpop.xlane.xlu1 %746 }
 0x1ac   : > { %v2481_v43 = vmax.f32 %v2467_v31, %v747_v36  ;;  %849 = vperm.xlu1 %2000, %v2443_v20   ;;  %1350 = vst.msk [vmem:[#allocation2 + $0x20] sm:$0xff] %vm358_vm1, %v2475_v35  ;;  %v2550_v36 = vld [vmem:[#allocation2 + $0x68] sm:$0xff]  ;;  %v2790_v17 = vsub.f32 %v2456_v27, %v2475_v35 }
 0x1ad   : > { %v749_v48 = vpop.xlane.xlu0 %748 }
 0x1ae   : > { %1351 = vst.msk [vmem:[#allocation2 + $0x28] sm:$0xff] %vm358_vm1, %v2481_v43  ;;  %v2496_v53 = vmax.f32 %v2477_v38, %v749_v48  ;;  %v808_v25 = vmul.f32 1.442695, %v2790_v17  ;;  %v2793_v10 = vsub.f32 %v2467_v31, %v2481_v43 }
 0x1af   : > { %v751_v56 = vpop.xlane.xlu1 %750 }
 0x1b0   : > { %v2502_v61 = vmax.f32 %v2488_v47, %v751_v56  ;;  %844 = vperm.xlu1 %2000, %v2464_v30   ;;  %1352 = vst.msk [vmem:[#allocation2 + $0x30] sm:$0xff] %vm358_vm1, %v2496_v53  ;;  %v2792_v22 = vsub.f32 %v2477_v38, %v2496_v53  ;;  %v810_v15 = vmul.f32 1.442695, %v2793_v10 }
 0x1b1   : > { %v753_v2 = vpop.xlane.xlu0 %752 }
 0x1b2   : > { %1353 = vst.msk [vmem:[#allocation2 + $0x38] sm:$0xff] %vm358_vm1, %v2502_v61  ;;  %v2517_v7 = vmax.f32 %v2498_v57, %v753_v2  ;;  %v812_v30 = vmul.f32 1.442695, %v2792_v22  ;;  %v967_v22 = vld [vmem:[#allocation3 + $0x38] sm:$0xff] }
 0x1b3   : > { %v755_v8 = vpop.xlane.xlu1 %754 }
 0x1b4   : > { %v2523_v12 = vmax.f32 %v2509_v1, %v755_v8  ;;  %859 = vperm.xlu1 %2000, %v2481_v43   ;;  %1354 = vst.msk [vmem:[#allocation2 + $0x40] sm:$0xff] %vm358_vm1, %v2517_v7  ;;  %v2570_v8 = vld [vmem:[#allocation2 + $0x78] sm:$0xff] }
 0x1b5   : > { %v757_v18 = vpop.xlane.xlu0 %756 }
 0x1b6   : > { %1355 = vst.msk [vmem:[#allocation2 + $0x48] sm:$0xff] %vm358_vm1, %v2523_v12  ;;  %879 = vperm.xlu0 %1999, %v2523_v12   ;;  %v2538_v23 = vmax.f32 %v2519_v9, %v757_v18  ;;  %v2797_v31 = vsub.f32 %v2509_v1, %v2523_v12 }
 0x1b7   : > { %v759_v26 = vpop.xlane.xlu1 %758 }
 0x1b8   : > { %v2543_v32 = vmax.f32 %v2530_v16, %v759_v26  ;;  %854 = vperm.xlu1 %2000, %v2475_v35   ;;  %1356 = vst.msk [vmem:[#allocation2 + $0x50] sm:$0xff] %vm358_vm1, %v2538_v23  ;;  %v2796_v35 = vsub.f32 %v2519_v9, %v2538_v23  ;;  %v818_v43 = vmul.f32 1.442695, %v2797_v31 }
 0x1b9   : > { %v761_v40 = vpop.xlane.xlu0 %760 }
 0x1ba   : > { %1357 = vst.msk [vmem:[#allocation2 + $0x58] sm:$0xff] %vm358_vm1, %v2543_v32  ;;  %889 = vperm.xlu0 %1999, %v2543_v32   ;;  %v2558_v51 = vmax.f32 %v2540_v28, %v761_v40  ;;  %v820_v38 = vmul.f32 1.442695, %v2796_v35 }
 0x1bb   : > { %v763_v56 = vpop.xlane.xlu1 %762 }
 0x1bc   : > { %v2563_v2 = vmax.f32 %v2550_v36, %v763_v56  ;;  %869 = vperm.xlu1 %2000, %v2502_v61   ;;  %1358 = vst.msk [vmem:[#allocation2 + $0x60] sm:$0xff] %vm358_vm1, %v2558_v51 }
 0x1bd   : > { %v765_v11 = vpop.xlane.xlu0 %764 }
 0x1be   : > { %1359 = vst.msk [vmem:[#allocation2 + $0x68] sm:$0xff] %vm358_vm1, %v2563_v2  ;;  %899 = vperm.xlu0 %1999, %v2563_v2   ;;  %v2578_v26 = vmax.f32 %v2560_v60, %v765_v11 }
 0x1bf   : > { %v767_v40 = vpop.xlane.xlu1 %766 }
 0x1c0   : > { %v2581_v56 = vmax.f32 %v2570_v8, %v767_v40  ;;  %864 = vperm.xlu1 %2000, %v2496_v53   ;;  %1360 = vst.msk [vmem:[#allocation2 + $0x70] sm:$0xff] %vm358_vm1, %v2578_v26  ;;  %v2800_v1 = vsub.f32 %v2560_v60, %v2578_v26 }
 0x1c2   : > { %1361 = vst.msk [vmem:[#allocation2 + $0x78] sm:$0xff] %vm358_vm1, %v2581_v56  ;;  %909 = vperm.xlu0 %1999, %v2581_v56   ;;  %v828_v12 = vmul.f32 1.442695, %v2800_v1  ;;  %v2802_v60 = vsub.f32 %v2570_v8, %v2581_v56 }
 0x1c4   : > { %874 = vperm.xlu1 %2000, %v2517_v7  }
 0x1c8   : > { %884 = vperm.xlu1 %2000, %v2538_v23  }
 0x1cc   : > { %894 = vperm.xlu1 %2000, %v2558_v51  }
 0x1d0   : > { %904 = vperm.xlu1 %2000, %v2578_v26   ;;  %v830_v26 = vmul.f32 1.442695, %v2802_v60 }
 0x21f   : > { %v835_v11 = vpop.permute.xlu0 %834 }
 0x220   : > { %v912_v40 = vsub.f32 %v2305_v37, %v835_v11 }
 0x222   : > { %v928_v48 = vmul.f32 1.442695, %v912_v40 }
 0x223   : > { %v840_v5 = vpop.permute.xlu1 %839 }
 0x224   : > { %2001 = vpow2.f32 %v928_v48  ;;  %v913_v18 = vsub.f32 %v2315_v41, %v840_v5 }
 0x226   : > { %v930_v21 = vmul.f32 1.442695, %v913_v18 }
 0x227   : > { %v850_v33 = vpop.permute.xlu1 %849 }
 0x228   : > { %2003 = vpow2.f32 %v930_v21  ;;  %v915_v6 = vsub.f32 %v2310_v39, %v850_v33 }
 0x22a   : > { %v934_v14 = vmul.f32 1.442695, %v915_v6 }
 0x22b   : > { %v845_v52 = vpop.permute.xlu1 %844 }
 0x22c   : > { %2005 = vpow2.f32 %v934_v14  ;;  %v914_v0 = vsub.f32 %v2319_v42, %v845_v52 }
 0x22e   : > { %v932_v24 = vmul.f32 1.442695, %v914_v0 }
 0x22f   : > { %v860_v44 = vpop.permute.xlu1 %859 }
 0x230   : > { %2007 = vpow2.f32 %v932_v24  ;;  %v917_v37 = vsub.f32 %v2325_v45, %v860_v44 }
 0x231   : > { %v2002_v11 = vpop.eup %2001  ;;  %v880_v40 = vpop.permute.xlu0 %879 }
 0x232   : > { %v938_v48 = vmul.f32 1.442695, %v917_v37  ;;  %992 = vadd.xlane.f32.xlu1 %v2002_v11  ;;  %1932 = vmatprep.mubr.f32.mxu1 %v2002_v11  ;;  %v921_v45 = vsub.f32 %v2345_v54, %v880_v40 }
 0x233   : > { %v855_v41 = vpop.permute.xlu1 %854 }
 0x234   : > { %2009 = vpow2.f32 %v938_v48  ;;  %v916_v21 = vsub.f32 %v2329_v46, %v855_v41  ;;  %v946_v18 = vmul.f32 1.442695, %v921_v45 }
 0x235   : > { %v2004_v39 = vpop.eup %2003  ;;  %v890_v33 = vpop.permute.xlu0 %889 }
 0x236   : > { %v936_v6 = vmul.f32 1.442695, %v916_v21  ;;  %994 = vadd.xlane.f32.xlu0 %v2004_v39  ;;  %1933 = vmatmul.mubr.f32.vlgmr.msra.gmra.mxu1 %v2004_v39  ;;  %v923_v37 = vsub.f32 %v2355_v58, %v890_v33 }
 0x237   : > { %v870_v42 = vpop.permute.xlu1 %869 }
 0x238   : > { %2011 = vpow2.f32 %v936_v6  ;;  %v919_v24 = vsub.f32 %v2335_v49, %v870_v42  ;;  %v950_v40 = vmul.f32 1.442695, %v923_v37 }
 0x239   : > { %v2006_v52 = vpop.eup %2005  ;;  %v900_v14 = vpop.permute.xlu0 %899 }
 0x23a   : > { %v942_v44 = vmul.f32 1.442695, %v919_v24  ;;  %998 = vadd.xlane.f32.xlu1 %v2006_v52  ;;  %v925_v41 = vsub.f32 %v2365_v62, %v900_v14 }
 0x23b   : > { %v865_v0 = vpop.permute.xlu1 %864 }
 0x23c   : > { %2013 = vpow2.f32 %v942_v44  ;;  %v918_v5 = vsub.f32 %v2339_v50, %v865_v0  ;;  %v954_v33 = vmul.f32 1.442695, %v925_v41 }
 0x23d   : > { %v2008_v46 = vpop.eup %2007  ;;  %v910_v21 = vpop.permute.xlu0 %909 }
 0x23e   : > { %v940_v11 = vmul.f32 1.442695, %v918_v5  ;;  %996 = vadd.xlane.f32.xlu0 %v2008_v46  ;;  %1935 = vmatprep.mubr.f32.mxu1 %v2008_v46  ;;  %v927_v42 = vsub.f32 %v2407_v3, %v910_v21 }
 0x23f   : > { %v875_v48 = vpop.permute.xlu1 %874  ;;  %1936 = vmatmul.mubr.f32.gmra.mxu1 %v2006_v52 }
 0x240   : > { %2015 = vpow2.f32 %v940_v11  ;;  %v920_v49 = vsub.f32 %v2349_v55, %v875_v48  ;;  %v958_v45 = vmul.f32 1.442695, %v927_v42  ;;  %v802_v48 = vmul.f32 1.442695, %v785_v29  ;;  %v960_v42 = vld [vmem:[#allocation3] sm:$0xff] }
 0x241   : > { %v2010_v54 = vpop.eup %2009  ;;  %2017 = vpow2.f32 %v946_v18  ;;  %v2791_v29 = vsub.f32 %v2429_v13, %v2443_v20  ;;  %v2795_v13 = vsub.f32 %v2488_v47, %v2502_v61  ;;  %v2799_v61 = vsub.f32 %v2530_v16, %v2543_v32 }
 0x242   : > { %v944_v39 = vmul.f32 1.442695, %v920_v49  ;;  %1002 = vadd.xlane.f32.xlu1 %v2010_v54 }
 0x243   : > { %v885_v50 = vpop.permute.xlu1 %884  ;;  %v806_v41 = vmul.f32 1.442695, %v2791_v29  ;;  %v814_v20 = vmul.f32 1.442695, %v2795_v13  ;;  %v822_v9 = vmul.f32 1.442695, %v2799_v61 }
 0x244   : > { %2019 = vpow2.f32 %v944_v39  ;;  %v922_v58 = vsub.f32 %v2359_v59, %v885_v50 }
 0x245   : > { %v2012_v6 = vpop.eup %2011  ;;  %2021 = vpow2.f32 %v950_v40  ;;  %v800_v40 = vmul.f32 1.442695, %v784_v19  ;;  %v2794_v19 = vsub.f32 %v2498_v57, %v2517_v7  ;;  %v2798_v7 = vsub.f32 %v2540_v28, %v2558_v51 }
 0x246   : > { %v948_v24 = vmul.f32 1.442695, %v922_v58  ;;  %1000 = vadd.xlane.f32.xlu0 %v2012_v6  ;;  %1938 = vmatprep.mubr.f32.mxu1 %v2012_v6  ;;  %v2801_v51 = vsub.f32 %v2550_v36, %v2563_v2 }
 0x247   : > { %v895_v55 = vpop.permute.xlu1 %894  ;;  %1939 = vmatmul.mubr.f32.gmra.mxu1 %v2010_v54  ;;  %v804_v54 = vmul.f32 1.442695, %v786_v34  ;;  %v816_v27 = vmul.f32 1.442695, %v2794_v19  ;;  %v824_v21 = vmul.f32 1.442695, %v2798_v7 }
 0x248   : > { %2023 = vpow2.f32 %v948_v24  ;;  %v924_v62 = vsub.f32 %v2369_v63, %v895_v55  ;;  %v826_v50 = vmul.f32 1.442695, %v2801_v51 }
 0x249   : > { %v2014_v52 = vpop.eup %2013  ;;  %2025 = vpow2.f32 %v954_v33 }
 0x24a   : > { %v952_v44 = vmul.f32 1.442695, %v924_v62  ;;  %1006 = vadd.xlane.f32.xlu1 %v2014_v52  ;;  %v961_v62 = vld [vmem:[#allocation3 + $0x8] sm:$0xff] }
 0x24b   : > { %v905_v0 = vpop.permute.xlu1 %904 }
 0x24c   : > { %2027 = vpow2.f32 %v952_v44  ;;  %v926_v59 = vsub.f32 %v2411_v4, %v905_v0  ;;  %v963_v0 = vld [vmem:[#allocation3 + $0x18] sm:$0xff] }
 0x24d   : > { %v2016_v14 = vpop.eup %2015  ;;  %2029 = vpow2.f32 %v958_v45 }
 0x24e   : > { %v2018_v3 = vpop.eup %2017  ;;  %v956_v5 = vmul.f32 1.442695, %v926_v59  ;;  %1004 = vadd.xlane.f32.xlu0 %v2016_v14  ;;  %1941 = vmatprep.mubr.f32.mxu1 %v2016_v14 }
 0x24f   : > { %1010 = vadd.xlane.f32.xlu1 %v2018_v3  ;;  %1942 = vmatmul.mubr.f32.gmra.mxu1 %v2014_v52 }
 0x250   : > { %2031 = vpow2.f32 %v956_v5  ;;  %v962_v5 = vld [vmem:[#allocation3 + $0x10] sm:$0xff] }
 0x251   : > { %v2020_v46 = vpop.eup %2019  ;;  %2033 = vpow2.f32 %v802_v48 }
 0x252   : > { %v2022_v63 = vpop.eup %2021  ;;  %1008 = vadd.xlane.f32.xlu0 %v2020_v46  ;;  %1944 = vmatprep.mubr.f32.mxu1 %v2020_v46  ;;  %2035 = vpow2.f32 %v804_v54 }
 0x253   : > { %1014 = vadd.xlane.f32.xlu1 %v2022_v63  ;;  %1945 = vmatmul.mubr.f32.gmra.mxu1 %v2018_v3  ;;  %2037 = vpow2.f32 %v800_v40  ;;  %v964_v40 = vld [vmem:[#allocation3 + $0x20] sm:$0xff] }
 0x254   : > { %2039 = vpow2.f32 %v808_v25 }
 0x255   : > { %v2024_v18 = vpop.eup %2023  ;;  %2041 = vpow2.f32 %v806_v41 }
 0x256   : > { %v2026_v37 = vpop.eup %2025  ;;  %1012 = vadd.xlane.f32.xlu0 %v2024_v18  ;;  %1947 = vmatprep.mubr.f32.mxu1 %v2024_v18  ;;  %2043 = vpow2.f32 %v812_v30 }
 0x257   : > { %1018 = vadd.xlane.f32.xlu1 %v2026_v37  ;;  %1948 = vmatmul.mubr.f32.gmra.mxu1 %v2022_v63  ;;  %2045 = vpow2.f32 %v810_v15 }
 0x258   : > { %2047 = vpow2.f32 %v816_v27 }
 0x259   : > { %v2028_v4 = vpop.eup %2027  ;;  %2049 = vpow2.f32 %v814_v20  ;;  %v969_v20 = vld [vmem:[#allocation3 + $0x48] sm:$0xff] }
 0x25a   : > { %v2030_v11 = vpop.eup %2029  ;;  %1016 = vadd.xlane.f32.xlu0 %v2028_v4  ;;  %1950 = vmatprep.mubr.f32.mxu1 %v2028_v4  ;;  %2051 = vpow2.f32 %v820_v38  ;;  %v965_v4 = vld [vmem:[#allocation3 + $0x28] sm:$0xff] }
 0x25b   : > { %1022 = vadd.xlane.f32.xlu1 %v2030_v11  ;;  %1951 = vmatmul.mubr.f32.gmra.mxu1 %v2026_v37  ;;  %2053 = vpow2.f32 %v818_v43 }
 0x25c   : > { %2055 = vpow2.f32 %v824_v21 }
 0x25d   : > { %v2032_v49 = vpop.eup %2031  ;;  %2057 = vpow2.f32 %v822_v9 }
 0x25e   : > { %1020 = vadd.xlane.f32.xlu0 %v2032_v49  ;;  %1953 = vmatprep.mubr.f32.mxu1 %v2032_v49  ;;  %v2034_v34 = vpop.eup %2033  ;;  %2059 = vpow2.f32 %v828_v12 }
 0x25f   : > { %1954 = vmatmul.mubr.f32.gmra.mxu1 %v2030_v11  ;;  %v2036_v53 = vpop.eup %2035  ;;  %2061 = vpow2.f32 %v826_v50  ;;  %v977_v45 = vmul.f32 %v2034_v34, %v961_v62 }
 0x260   : > { %v2038_v57 = vpop.eup %2037  ;;  %2063 = vpow2.f32 %v830_v26  ;;  %v978_v18 = vmul.f32 %v2036_v53, %v962_v5 }
 0x261   : > { %v2649_v47 = vpop.eup %2039  ;;  %v976_v24 = vmul.f32 %v2038_v57, %v960_v42 }
 0x262   : > { %v2042_v23 = vpop.eup %2041  ;;  %v980_v29 = vmul.f32 %v2649_v47, %v964_v40 }
 0x263   : > { %v2658_v39 = vpop.eup %2043  ;;  %v979_v14 = vmul.f32 %v2042_v23, %v963_v0 }
 0x264   : > { %v2046_v28 = vpop.eup %2045 }
 0x265   : > { %v2664_v16 = vpop.eup %2047  ;;  %v981_v49 = vmul.f32 %v2046_v28, %v965_v4 }
 0x266   : > { %v2050_v32 = vpop.eup %2049 }
 0x267   : > { %v2670_v58 = vpop.eup %2051  ;;  %v983_v15 = vmul.f32 %v2050_v32, %v967_v22  ;;  %v1058_v22 = vld [vmem:[#allocation4 + $0x8] sm:$0xff] }
 0x268   : > { %v2673_v6 = vpop.eup %2053 }
 0x269   : > { %v2675_v36 = vpop.eup %2055  ;;  %v985_v31 = vmul.f32 %v2673_v6, %v969_v20 }
 0x26a   : > { %v2679_v2 = vpop.eup %2057 }
 0x26b   : > { %v2681_v33 = vpop.eup %2059 }
 0x26c   : > { %1080 = vperm.xlu1 %2000, %v2034_v34   ;;  %v2685_v8 = vpop.eup %2061  ;;  %v966_v34 = vld [vmem:[#allocation3 + $0x30] sm:$0xff] }
 0x26d   : > { %v2688_v56 = vpop.eup %2063  ;;  %v982_v38 = vmul.f32 %v2658_v39, %v966_v34 }
 0x270   : > { %1085 = vperm.xlu1 %2000, %v2036_v53  }
 0x274   : > { %1095 = vperm.xlu1 %2000, %v2649_v47   ;;  %1075 = vperm.xlu0 %1999, %v2038_v57   ;;  %v968_v57 = vld [vmem:[#allocation3 + $0x40] sm:$0xff]  ;;  %v971_v47 = vld [vmem:[#allocation3 + $0x58] sm:$0xff] }
 0x275   : > { %v987_v12 = vmul.f32 %v2679_v2, %v971_v47 }
 0x278   : > { %1105 = vperm.xlu1 %2000, %v2658_v39   ;;  %1090 = vperm.xlu0 %1999, %v2042_v23   ;;  %v984_v23 = vmul.f32 %v2664_v16, %v968_v57 }
 0x27c   : > { %1115 = vperm.xlu1 %2000, %v2664_v16   ;;  %1100 = vperm.xlu0 %1999, %v2046_v28   ;;  %v970_v28 = vld [vmem:[#allocation3 + $0x50] sm:$0xff] }
 0x280   : > { %1125 = vperm.xlu1 %2000, %v2670_v58   ;;  %1110 = vperm.xlu0 %1999, %v2050_v32   ;;  %v973_v32 = vld [vmem:[#allocation3 + $0x68] sm:$0xff] }
 0x281   : > { %v989_v42 = vmul.f32 %v2685_v8, %v973_v32 }
 0x284   : > { %1135 = vperm.xlu1 %2000, %v2675_v36   ;;  %1120 = vperm.xlu0 %1999, %v2673_v6   ;;  %v986_v6 = vmul.f32 %v2670_v58, %v970_v28 }
 0x288   : > { %1145 = vperm.xlu1 %2000, %v2681_v33   ;;  %1130 = vperm.xlu0 %1999, %v2679_v2   ;;  %v972_v2 = vld [vmem:[#allocation3 + $0x60] sm:$0xff] }
 0x289   : > { %v988_v0 = vmul.f32 %v2675_v36, %v972_v2 }
 0x28c   : > { %1140 = vperm.xlu0 %1999, %v2685_v8  }
 0x290   : > { %1150 = vperm.xlu0 %1999, %v2688_v56  }
 0x2bb   : > { %v993_v55 = vpop.xlane.xlu1 %992 }
 0x2bc   : > { %v1024_v52 = vadd.f32 %v993_v55, %v976_v24 }
 0x2be   : > { %1041 = vst.msk [vmem:[#allocation3] sm:$0xff] %vm358_vm1, %v1024_v52  ;;  %v975_v52 = vld [vmem:[#allocation3 + $0x78] sm:$0xff] }
 0x2bf   : > { %v995_v44 = vpop.xlane.xlu0 %994 }
 0x2c0   : > { %v1025_v59 = vadd.f32 %v995_v44, %v977_v45 }
 0x2c2   : > { %1042 = vst.msk [vmem:[#allocation3 + $0x8] sm:$0xff] %vm358_vm1, %v1025_v59 }
 0x2c3   : > { %v999_v3 = vpop.xlane.xlu1 %998 }
 0x2c4   : > { %v1027_v46 = vadd.f32 %v999_v3, %v979_v14  ;;  %v991_v14 = vmul.f32 %v2688_v56, %v975_v52  ;;  %v974_v3 = vld [vmem:[#allocation3 + $0x70] sm:$0xff] }
 0x2c5   : > { %v1381_v63 = vld [vmem:[#allocation3] sm:$0xff] }
 0x2c6   : > { %1044 = vst.msk [vmem:[#allocation3 + $0x18] sm:$0xff] %vm358_vm1, %v1027_v46  ;;  %2065 = vrcp.f32 %v1381_v63 }
 0x2c7   : > { %v997_v37 = vpop.xlane.xlu0 %996 }
 0x2c8   : > { %v1026_v11 = vadd.f32 %v997_v37, %v978_v18  ;;  %v990_v37 = vmul.f32 %v2681_v33, %v974_v3 }
 0x2c9   : > { %v1382_v48 = vld [vmem:[#allocation3 + $0x8] sm:$0xff] }
 0x2ca   : > { %1043 = vst.msk [vmem:[#allocation3 + $0x10] sm:$0xff] %vm358_vm1, %v1026_v11  ;;  %2067 = vrcp.f32 %v1382_v48 }
 0x2cb   : > { %v1003_v54 = vpop.xlane.xlu1 %1002 }
 0x2cc   : > { %v1029_v17 = vadd.f32 %v1003_v54, %v981_v49 }
 0x2cd   : > { %v1384_v25 = vld [vmem:[#allocation3 + $0x18] sm:$0xff] }
 0x2ce   : > { %1046 = vst.msk [vmem:[#allocation3 + $0x28] sm:$0xff] %vm358_vm1, %v1029_v17  ;;  %2069 = vrcp.f32 %v1384_v25 }
 0x2cf   : > { %v1001_v41 = vpop.xlane.xlu0 %1000 }
 0x2d0   : > { %v1028_v30 = vadd.f32 %v1001_v41, %v980_v29 }
 0x2d1   : > { %v1383_v10 = vld [vmem:[#allocation3 + $0x10] sm:$0xff] }
 0x2d2   : > { %1045 = vst.msk [vmem:[#allocation3 + $0x20] sm:$0xff] %vm358_vm1, %v1028_v30  ;;  %2071 = vrcp.f32 %v1383_v10 }
 0x2d3   : > { %v2066_v19 = vpop.eup %2065  ;;  %v1007_v27 = vpop.xlane.xlu1 %1006 }
 0x2d4   : > { %v1031_v13 = vadd.f32 %v1007_v27, %v983_v15  ;;  %1415 = vperm.xlu1 %2000, %v2066_v19   ;;  %v1057_v19 = vld [vmem:[#allocation4] sm:$0xff] }
 0x2d5   : > { %v1386_v35 = vld [vmem:[#allocation3 + $0x28] sm:$0xff] }
 0x2d6   : > { %1048 = vst.msk [vmem:[#allocation3 + $0x38] sm:$0xff] %vm358_vm1, %v1031_v13  ;;  %2073 = vrcp.f32 %v1386_v35 }
 0x2d7   : > { %v2068_v53 = vpop.eup %2067  ;;  %v1005_v43 = vpop.xlane.xlu0 %1004 }
 0x2d8   : > { %v1011_v7 = vpop.xlane.xlu1 %1010  ;;  %v1030_v21 = vadd.f32 %v1005_v43, %v982_v38  ;;  %1420 = vperm.xlu0 %1999, %v2068_v53  }
 0x2d9   : > { %v1033_v61 = vadd.f32 %v1011_v7, %v985_v31  ;;  %v1385_v9 = vld [vmem:[#allocation3 + $0x20] sm:$0xff] }
 0x2da   : > { %1047 = vst.msk [vmem:[#allocation3 + $0x30] sm:$0xff] %vm358_vm1, %v1030_v21  ;;  %2075 = vrcp.f32 %v1385_v9  ;;  %v1060_v21 = vld [vmem:[#allocation4 + $0x18] sm:$0xff] }
 0x2db   : > { %v2070_v1 = vpop.eup %2069  ;;  %1050 = vst.msk [vmem:[#allocation3 + $0x48] sm:$0xff] %vm358_vm1, %v1033_v61  ;;  %v1009_v39 = vpop.xlane.xlu0 %1008  ;;  %v1059_v61 = vld [vmem:[#allocation4 + $0x10] sm:$0xff] }
 0x2dc   : > { %v1015_v51 = vpop.xlane.xlu1 %1014  ;;  %v1032_v50 = vadd.f32 %v1009_v39, %v984_v23  ;;  %1430 = vperm.xlu0 %1999, %v2070_v1  }
 0x2dd   : > { %v1035_v60 = vadd.f32 %v1015_v51, %v987_v12  ;;  %v1388_v26 = vld [vmem:[#allocation3 + $0x38] sm:$0xff] }
 0x2de   : > { %1049 = vst.msk [vmem:[#allocation3 + $0x40] sm:$0xff] %vm358_vm1, %v1032_v50  ;;  %2077 = vrcp.f32 %v1388_v26 }
 0x2df   : > { %v2072_v16 = vpop.eup %2071  ;;  %1052 = vst.msk [vmem:[#allocation3 + $0x58] sm:$0xff] %vm358_vm1, %v1035_v60  ;;  %v1013_v24 = vpop.xlane.xlu0 %1012  ;;  %v1062_v60 = vld [vmem:[#allocation4 + $0x28] sm:$0xff] }
 0x2e0   : > { %v1019_v55 = vpop.xlane.xlu1 %1018  ;;  %v1034_v62 = vadd.f32 %v1013_v24, %v986_v6  ;;  %1425 = vperm.xlu1 %2000, %v2072_v16   ;;  %v1061_v6 = vld [vmem:[#allocation4 + $0x20] sm:$0xff] }
 0x2e1   : > { %v1037_v45 = vadd.f32 %v1019_v55, %v989_v42  ;;  %v1387_v44 = vld [vmem:[#allocation3 + $0x30] sm:$0xff] }
 0x2e2   : > { %1051 = vst.msk [vmem:[#allocation3 + $0x50] sm:$0xff] %vm358_vm1, %v1034_v62  ;;  %v1390_v59 = vld [vmem:[#allocation3 + $0x48] sm:$0xff]  ;;  %2079 = vrcp.f32 %v1387_v44 }
 0x2e3   : > { %v2074_v58 = vpop.eup %2073  ;;  %1054 = vst.msk [vmem:[#allocation3 + $0x68] sm:$0xff] %vm358_vm1, %v1037_v45  ;;  %v1017_v8 = vpop.xlane.xlu0 %1016  ;;  %2081 = vrcp.f32 %v1390_v59  ;;  %v1063_v59 = vld [vmem:[#allocation4 + $0x30] sm:$0xff] }
 0x2e4   : > { %v1023_v5 = vpop.xlane.xlu1 %1022  ;;  %v1036_v46 = vadd.f32 %v1017_v8, %v988_v0  ;;  %1440 = vperm.xlu0 %1999, %v2074_v58   ;;  %v1064_v0 = vld [vmem:[#allocation4 + $0x38] sm:$0xff] }
 0x2e5   : > { %v1039_v63 = vadd.f32 %v1023_v5, %v991_v14  ;;  %v1389_v18 = vld [vmem:[#allocation3 + $0x40] sm:$0xff]  ;;  %v1066_v14 = vld [vmem:[#allocation4 + $0x48] sm:$0xff] }
 0x2e6   : > { %1053 = vst.msk [vmem:[#allocation3 + $0x60] sm:$0xff] %vm358_vm1, %v1036_v46  ;;  %v1392_v36 = vld [vmem:[#allocation3 + $0x58] sm:$0xff]  ;;  %2083 = vrcp.f32 %v1389_v18 }
 0x2e7   : > { %v2076_v4 = vpop.eup %2075  ;;  %1056 = vst.msk [vmem:[#allocation3 + $0x78] sm:$0xff] %vm358_vm1, %v1039_v63  ;;  %v1021_v11 = vpop.xlane.xlu0 %1020  ;;  %2085 = vrcp.f32 %v1392_v36  ;;  %v1065_v63 = vld [vmem:[#allocation4 + $0x40] sm:$0xff] }
 0x2e8   : > { %v1038_v56 = vadd.f32 %v1021_v11, %v990_v37  ;;  %1435 = vperm.xlu1 %2000, %v2076_v4   ;;  %v1081_v30 = vpop.permute.xlu1 %1080  ;;  %v1068_v11 = vld [vmem:[#allocation4 + $0x58] sm:$0xff] }
 0x2e9   : > { %v1391_v48 = vld [vmem:[#allocation3 + $0x50] sm:$0xff]  ;;  %v1154_v27 = vmul.f32 %v1081_v30, %v1058_v22 }
 0x2ea   : > { %1055 = vst.msk [vmem:[#allocation3 + $0x70] sm:$0xff] %vm358_vm1, %v1038_v56  ;;  %v1394_v49 = vld [vmem:[#allocation3 + $0x68] sm:$0xff]  ;;  %2087 = vrcp.f32 %v1391_v48 }
 0x2eb   : > { %v2078_v54 = vpop.eup %2077  ;;  %2089 = vrcp.f32 %v1394_v49 }
 0x2ec   : > { %1450 = vperm.xlu0 %1999, %v2078_v54   ;;  %v1086_v43 = vpop.permute.xlu1 %1085  ;;  %v1067_v54 = vld [vmem:[#allocation4 + $0x50] sm:$0xff] }
 0x2ed   : > { %v1393_v40 = vld [vmem:[#allocation3 + $0x60] sm:$0xff]  ;;  %v1155_v28 = vmul.f32 %v1086_v43, %v1059_v61 }
 0x2ee   : > { %v1396_v17 = vld [vmem:[#allocation3 + $0x78] sm:$0xff]  ;;  %2091 = vrcp.f32 %v1393_v40 }
 0x2ef   : > { %v2080_v33 = vpop.eup %2079  ;;  %2093 = vrcp.f32 %v1396_v17  ;;  %v1076_v29 = vpop.permute.xlu0 %1075 }
 0x2f0   : > { %v2082_v25 = vpop.eup %2081  ;;  %1445 = vperm.xlu1 %2000, %v2080_v33   ;;  %v1153_v20 = vmul.f32 %v1076_v29, %v1057_v19  ;;  %v1096_v12 = vpop.permute.xlu1 %1095 }
 0x2f1   : > { %1460 = vperm.xlu0 %1999, %v2082_v25   ;;  %v1395_v41 = vld [vmem:[#allocation3 + $0x70] sm:$0xff]  ;;  %v1157_v2 = vmul.f32 %v1096_v12, %v1061_v6 }
 0x2f2   : > { %2095 = vrcp.f32 %v1395_v41  ;;  %v1070_v41 = vld [vmem:[#allocation4 + $0x68] sm:$0xff] }
 0x2f3   : > { %v2084_v10 = vpop.eup %2083  ;;  %v1091_v35 = vpop.permute.xlu0 %1090 }
 0x2f4   : > { %v2086_v15 = vpop.eup %2085  ;;  %1455 = vperm.xlu1 %2000, %v2084_v10   ;;  %v1156_v23 = vmul.f32 %v1091_v35, %v1060_v21  ;;  %v1106_v16 = vpop.permute.xlu1 %1105 }
 0x2f5   : > { %1470 = vperm.xlu0 %1999, %v2086_v15   ;;  %v1159_v5 = vmul.f32 %v1106_v16, %v1063_v59  ;;  %v1069_v15 = vld [vmem:[#allocation4 + $0x60] sm:$0xff] }
 0x2f6   : > { %v1934_v34 = vpop.f32.mrf.mxu1 }
 0x2f7   : > { %v2088_v13 = vpop.eup %2087  ;;  %v1315_v38 = vadd.f32 %v1934_v34, %v1154_v27  ;;  %v1101_v9 = vpop.permute.xlu0 %1100 }
 0x2f8   : > { %v2090_v53 = vpop.eup %2089  ;;  %v1235_v31 = vpop.f32.mrf.mxu1  ;;  %1465 = vperm.xlu1 %2000, %v2088_v13   ;;  %v1158_v42 = vmul.f32 %v1101_v9, %v1062_v60  ;;  %v1072_v13 = vld [vmem:[#allocation4 + $0x78] sm:$0xff] }
 0x2f9   : > { %1331 = vst.msk [vmem:[#allocation4 + $0x8] sm:$0xff] %vm391_vm0, %v1315_v38  ;;  %v1314_v57 = vadd.f32 %v1235_v31, %v1153_v20  ;;  %1480 = vperm.xlu0 %1999, %v2090_v53   ;;  %v1116_v44 = vpop.permute.xlu1 %1115  ;;  %v1071_v31 = vld [vmem:[#allocation4 + $0x70] sm:$0xff] }
 0x2fa   : > { %v1161_v48 = vmul.f32 %v1116_v44, %v1065_v63 }
 0x2fb   : > { %v2092_v7 = vpop.eup %2091  ;;  %1330 = vst.msk [vmem:[#allocation4] sm:$0xff] %vm391_vm0, %v1314_v57  ;;  %v1111_v26 = vpop.permute.xlu0 %1110 }
 0x2fc   : > { %v2094_v47 = vpop.eup %2093  ;;  %1475 = vperm.xlu1 %2000, %v2092_v7   ;;  %v1160_v58 = vmul.f32 %v1111_v26, %v1064_v0 }
 0x2fd   : > { %1490 = vperm.xlu0 %1999, %v2094_v47   ;;  %v1126_v18 = vpop.permute.xlu1 %1125 }
 0x2fe   : > { %v1163_v30 = vmul.f32 %v1126_v18, %v1067_v54 }
 0x2ff   : > { %v2096_v1 = vpop.eup %2095  ;;  %v1937_v39 = vpop.f32.mrf.mxu1 }
 0x300   : > { %v1317_v51 = vadd.f32 %v1937_v39, %v1156_v23  ;;  %1485 = vperm.xlu1 %2000, %v2096_v1   ;;  %v1121_v62 = vpop.permute.xlu0 %1120 }
 0x301   : > { %v1245_v50 = vpop.f32.mrf.mxu1  ;;  %v1162_v36 = vmul.f32 %v1121_v62, %v1066_v14  ;;  %v1136_v29 = vpop.permute.xlu1 %1135 }
 0x302   : > { %1333 = vst.msk [vmem:[#allocation4 + $0x18] sm:$0xff] %vm391_vm0, %v1317_v51  ;;  %v1316_v32 = vadd.f32 %v1245_v50, %v1155_v28  ;;  %v1165_v38 = vmul.f32 %v1136_v29, %v1069_v15  ;;  %v1365_v39 = vld [vmem:[#allocation4] sm:$0xff]  ;;  %v1366_v51 = vld [vmem:[#allocation4 + $0x8] sm:$0xff] }
 0x304   : > { %1332 = vst.msk [vmem:[#allocation4 + $0x10] sm:$0xff] %vm391_vm0, %v1316_v32  ;;  %v1131_v8 = vpop.permute.xlu0 %1130 }
 0x305   : > { %v1164_v33 = vmul.f32 %v1131_v8, %v1068_v11  ;;  %v1146_v43 = vpop.permute.xlu1 %1145 }
 0x306   : > { %v1167_v61 = vmul.f32 %v1146_v43, %v1071_v31 }
 0x307   : > { %v1940_v24 = vpop.f32.mrf.mxu1 }
 0x308   : > { %v1319_v55 = vadd.f32 %v1940_v24, %v1158_v42  ;;  %v1141_v40 = vpop.permute.xlu0 %1140 }
 0x309   : > { %v1255_v52 = vpop.f32.mrf.mxu1  ;;  %v1166_v27 = vmul.f32 %v1141_v40, %v1070_v41  ;;  %v1368_v60 = vld [vmem:[#allocation4 + $0x18] sm:$0xff] }
 0x30a   : > { %1335 = vst.msk [vmem:[#allocation4 + $0x28] sm:$0xff] %vm391_vm0, %v1319_v55  ;;  %v1318_v45 = vadd.f32 %v1255_v52, %v1157_v2 }
 0x30b   : > { %v1367_v16 = vld [vmem:[#allocation4 + $0x10] sm:$0xff] }
 0x30c   : > { %1334 = vst.msk [vmem:[#allocation4 + $0x20] sm:$0xff] %vm391_vm0, %v1318_v45  ;;  %v1151_v20 = vpop.permute.xlu0 %1150 }
 0x30d   : > { %v1168_v7 = vmul.f32 %v1151_v20, %v1072_v13 }
 0x30f   : > { %v1943_v3 = vpop.f32.mrf.mxu1 }
 0x310   : > { %v1321_v46 = vadd.f32 %v1943_v3, %v1160_v58 }
 0x311   : > { %v1265_v37 = vpop.f32.mrf.mxu1  ;;  %v1370_v2 = vld [vmem:[#allocation4 + $0x28] sm:$0xff] }
 0x312   : > { %1337 = vst.msk [vmem:[#allocation4 + $0x38] sm:$0xff] %vm391_vm0, %v1321_v46  ;;  %v1320_v4 = vadd.f32 %v1265_v37, %v1159_v5 }
 0x313   : > { %v1946_v56 = vpop.f32.mrf.mxu1  ;;  %v1369_v52 = vld [vmem:[#allocation4 + $0x20] sm:$0xff] }
 0x314   : > { %1336 = vst.msk [vmem:[#allocation4 + $0x30] sm:$0xff] %vm391_vm0, %v1320_v4  ;;  %v1323_v49 = vadd.f32 %v1946_v56, %v1162_v36 }
 0x315   : > { %v1275_v17 = vpop.f32.mrf.mxu1 }
 0x316   : > { %1339 = vst.msk [vmem:[#allocation4 + $0x48] sm:$0xff] %vm391_vm0, %v1323_v49  ;;  %v1322_v25 = vadd.f32 %v1275_v17, %v1161_v48 }
 0x317   : > { %v1949_v22 = vpop.f32.mrf.mxu1 }
 0x318   : > { %1338 = vst.msk [vmem:[#allocation4 + $0x40] sm:$0xff] %vm391_vm0, %v1322_v25  ;;  %v1325_v10 = vadd.f32 %v1949_v22, %v1164_v33 }
 0x319   : > { %v1285_v19 = vpop.f32.mrf.mxu1  ;;  %v1372_v0 = vld [vmem:[#allocation4 + $0x38] sm:$0xff] }
 0x31a   : > { %1341 = vst.msk [vmem:[#allocation4 + $0x58] sm:$0xff] %vm391_vm0, %v1325_v10  ;;  %v1324_v34 = vadd.f32 %v1285_v19, %v1163_v30 }
 0x31b   : > { %v1952_v35 = vpop.f32.mrf.mxu1  ;;  %v1371_v14 = vld [vmem:[#allocation4 + $0x30] sm:$0xff] }
 0x31c   : > { %1340 = vst.msk [vmem:[#allocation4 + $0x50] sm:$0xff] %vm391_vm0, %v1324_v34  ;;  %v1327_v53 = vadd.f32 %v1952_v35, %v1166_v27 }
 0x31d   : > { %v1295_v57 = vpop.f32.mrf.mxu1  ;;  %v1374_v5 = vld [vmem:[#allocation4 + $0x48] sm:$0xff] }
 0x31e   : > { %1343 = vst.msk [vmem:[#allocation4 + $0x68] sm:$0xff] %vm391_vm0, %v1327_v53  ;;  %v1326_v21 = vadd.f32 %v1295_v57, %v1165_v38 }
 0x31f   : > { %v1955_v47 = vpop.f32.mrf.mxu1  ;;  %v1373_v18 = vld [vmem:[#allocation4 + $0x40] sm:$0xff] }
 0x320   : > { %1342 = vst.msk [vmem:[#allocation4 + $0x60] sm:$0xff] %vm391_vm0, %v1326_v21  ;;  %v1329_v9 = vadd.f32 %v1955_v47, %v1168_v7 }
 0x321   : > { %v1305_v23 = vpop.f32.mrf.mxu1  ;;  %v1376_v4 = vld [vmem:[#allocation4 + $0x58] sm:$0xff] }
 0x322   : > { %1345 = vst.msk [vmem:[#allocation4 + $0x78] sm:$0xff] %vm391_vm0, %v1329_v9  ;;  %v1328_v1 = vadd.f32 %v1305_v23, %v1167_v61 }
 0x323   : > { %v1375_v48 = vld [vmem:[#allocation4 + $0x50] sm:$0xff] }
 0x324   : > { %1344 = vst.msk [vmem:[#allocation4 + $0x70] sm:$0xff] %vm391_vm0, %v1328_v1 }
 0x325   : > { %v1378_v40 = vld [vmem:[#allocation4 + $0x68] sm:$0xff] }
 0x327   : > { %v1377_v25 = vld [vmem:[#allocation4 + $0x60] sm:$0xff] }
 0x329   : > { %v1380_v22 = vld [vmem:[#allocation4 + $0x78] sm:$0xff] }
 0x32b   : > { %v1379_v15 = vld [vmem:[#allocation4 + $0x70] sm:$0xff] }
 0x34f   : > { %v1416_v12 = vpop.permute.xlu1 %1415 }
 0x350   : > { %v1493_v28 = vmul.f32 %v1416_v12, %v1365_v39 }
 0x352   : > { %1509 = vst.msk [vmem:[%s2737_s7] sm:$0xff] %vm391_vm0, %v1493_v28 }
 0x353   : > { %v1421_v50 = vpop.permute.xlu0 %1420 }
 0x354   : > { %v1494_v32 = vmul.f32 %v1421_v50, %v1366_v51 }
 0x356   : > { %1510 = vst.msk [vmem:[%s2737_s7 + $0x8] sm:$0xff] %vm391_vm0, %v1494_v32 }
 0x357   : > { %v1431_v26 = vpop.permute.xlu0 %1430 }
 0x358   : > { %v1496_v6 = vmul.f32 %v1431_v26, %v1368_v60 }
 0x35a   : > { %1512 = vst.msk [vmem:[%s2737_s7 + $0x18] sm:$0xff] %vm391_vm0, %v1496_v6 }
 0x35b   : > { %v1426_v42 = vpop.permute.xlu1 %1425 }
 0x35c   : > { %v1495_v24 = vmul.f32 %v1426_v42, %v1367_v16 }
 0x35e   : > { %1511 = vst.msk [vmem:[%s2737_s7 + $0x10] sm:$0xff] %vm391_vm0, %v1495_v24 }
 0x35f   : > { %v1441_v55 = vpop.permute.xlu0 %1440 }
 0x360   : > { %v1498_v62 = vmul.f32 %v1441_v55, %v1370_v2 }
 0x362   : > { %1514 = vst.msk [vmem:[%s2737_s7 + $0x28] sm:$0xff] %vm391_vm0, %v1498_v62 }
 0x363   : > { %v1436_v45 = vpop.permute.xlu1 %1435 }
 0x364   : > { %v1497_v44 = vmul.f32 %v1436_v45, %v1369_v52 }
 0x366   : > { %1513 = vst.msk [vmem:[%s2737_s7 + $0x20] sm:$0xff] %vm391_vm0, %v1497_v44 }
 0x367   : > { %v1451_v59 = vpop.permute.xlu0 %1450 }
 0x368   : > { %v1500_v58 = vmul.f32 %v1451_v59, %v1372_v0 }
 0x36a   : > { %1516 = vst.msk [vmem:[%s2737_s7 + $0x38] sm:$0xff] %vm391_vm0, %v1500_v58 }
 0x36b   : > { %v1446_v8 = vpop.permute.xlu1 %1445 }
 0x36c   : > { %v1499_v3 = vmul.f32 %v1446_v8, %v1371_v14  ;;  %v1461_v46 = vpop.permute.xlu0 %1460 }
 0x36d   : > { %v1502_v63 = vmul.f32 %v1461_v46, %v1374_v5 }
 0x36e   : > { %1515 = vst.msk [vmem:[%s2737_s7 + $0x30] sm:$0xff] %vm391_vm0, %v1499_v3 }
 0x36f   : > { %1518 = vst.msk [vmem:[%s2737_s7 + $0x48] sm:$0xff] %vm391_vm0, %v1502_v63  ;;  %v1456_v37 = vpop.permute.xlu1 %1455 }
 0x370   : > { %v1501_v36 = vmul.f32 %v1456_v37, %v1373_v18  ;;  %v1471_v11 = vpop.permute.xlu0 %1470 }
 0x371   : > { %v1504_v56 = vmul.f32 %v1471_v11, %v1376_v4 }
 0x372   : > { %1517 = vst.msk [vmem:[%s2737_s7 + $0x40] sm:$0xff] %vm391_vm0, %v1501_v36 }
 0x373   : > { %1520 = vst.msk [vmem:[%s2737_s7 + $0x58] sm:$0xff] %vm391_vm0, %v1504_v56  ;;  %v1466_v49 = vpop.permute.xlu1 %1465 }
 0x374   : > { %v1503_v54 = vmul.f32 %v1466_v49, %v1375_v48  ;;  %v1481_v17 = vpop.permute.xlu0 %1480 }
 0x375   : > { %v1506_v33 = vmul.f32 %v1481_v17, %v1378_v40 }
 0x376   : > { %1519 = vst.msk [vmem:[%s2737_s7 + $0x50] sm:$0xff] %vm391_vm0, %v1503_v54 }
 0x377   : > { %1522 = vst.msk [vmem:[%s2737_s7 + $0x68] sm:$0xff] %vm391_vm0, %v1506_v33  ;;  %v1476_v29 = vpop.permute.xlu1 %1475 }
 0x378   : > { %v1505_v41 = vmul.f32 %v1476_v29, %v1377_v25  ;;  %v1491_v30 = vpop.permute.xlu0 %1490 }
 0x379   : > { %v1508_v10 = vmul.f32 %v1491_v30, %v1380_v22 }
 0x37a   : > { %1521 = vst.msk [vmem:[%s2737_s7 + $0x60] sm:$0xff] %vm391_vm0, %v1505_v41 }
 0x37b   : > { %1524 = vst.msk [vmem:[%s2737_s7 + $0x78] sm:$0xff] %vm391_vm0, %v1508_v10  ;;  %v1486_v19 = vpop.permute.xlu1 %1485 }
 0x37c   : > { %v1507_v27 = vmul.f32 %v1486_v19, %v1379_v15 }
 0x37e   : > { %1523 = vst.msk [vmem:[%s2737_s7 + $0x70] sm:$0xff] %vm391_vm0, %v1507_v27 }
 0x37f PF: > { %s13_s16 = sadd.s32 1, %s2135_s16   ;;  %s2803_s12 = smov %s2127_s14 }
 0x380   : > { %p10_p7 = scmp.ge.s32.totalorder %s13_s16, 10   ;;  %s2804_s13 = smov %s2131_s15 }
 0x381   : > { %s2805_s14 = smov %s2808_s17  ;;  %s2806_s15 = smov %s2812_s18 }
 0x382   :  { %12 = sbr.rel (!%p10_p7) target bundleno = 3 (0x3), region = 76 }

// kernel: attention_forward.3
= control target key start
LH: loop header
LB: loop body
LE: loop exit
PB: predicated region body
PF: predicated region fallthrough
CT: control target
= control target key end

     0   :  { %8 = vsyncpa [#allocation4], 0  ;;  %s2947_s0 = inlined_call_operand.vmem [shape: f32[256,256], index: 0, kind: input, shape index: {}]   ;;  %s2948_s1 = inlined_call_operand.hbm [shape: f32[256,768], index: 1, kind: input, shape index: {}]   ;;  %s2949_s2 = inlined_call_operand.vmem [shape: f32[1,768], index: 2, kind: input, shape index: {}]   ;;  %s2950_s3 = inlined_call_operand.vmem [shape: f32[256,768], index: 3, kind: output, shape index: {}]  }
   0x1   :  { %10 = vsyncpa [#allocation4 + $0x1], 0  ;;  %s2120_s12 = smov 0   ;;  %s2122_s13 = smov 0  }
   0x2   :  { %s2124_s14 = smov 0   ;;  %s2126_s15 = smov 0  }
   0x3   :  { %s2128_s16 = smov 0   ;;  %s2130_s17 = smov 0  }
   0x4 LB: > { %s1942_s18 = sadd.s32 4294967295, %s2093_s17   ;;  %s31_s19 = sadd.s32 1, %s2089_s16  ;;  %s2093_s17 = sphi %s2130_s17, %s16_s17   ;;  %s2089_s16 = sphi %s2128_s16, %s2959_s16   ;;  %s2085_s15 = sphi %s2126_s15, %s2958_s15   ;;  %s2081_s14 = sphi %s2124_s14, %s2957_s14   ;;  %s2077_s13 = sphi %s2122_s13, %s2956_s13   ;;  %s2073_s12 = sphi %s2120_s12, %s2955_s12  }
   0x5   : > { %p33_p0 = scmp.ge.s32.totalorder %s31_s19, 2  ;;  %s72_s20 = sadd.s32 1, %s2081_s14 }
   0x6   : > { %p79_p1 = scmp.ne.s32.totalorder %s2081_s14, %s2077_s13  ;;  %p80_p2 = scmp.eq.s32.totalorder %s2093_s17, 0 }
   0x7   : > { %s2961_s19 = smov (%p33_p0, %s31_s19), 0  ;;  %p85_p4 = scmp.ne.s32.totalorder %s2077_s13, %s2073_s12 }
   0x8   : > { %p2156_p3 = por %p80_p2, %p79_p1  ;;  %s68_s22 = ssub.s32 %s2089_s16, %s2961_s19 }
   0x9   : > { %p86_p5 = scmp.eq.s32.totalorder %s1942_s18, 0  ;;  %p70_p6 = scmp.eq.s32.totalorder %s68_s22, 0 }
   0xa   : > { %p137_p7 = scmp.eq.s32.totalorder %s1942_s18, 1  ;;  %p1962_p10 = scmp.lt.s32.totalorder %s2093_s17, 2 }
   0xb   : > { %p2163_p8 = por %p86_p5, %p85_p4  ;;  %s178_s26 = sand.u32 1, %s2081_s14  }
   0xc   : > { %s2168_s24 = scalar_select %p70_p6, %s2081_s14, %s72_s20  }
   0xd   : > { %p2170_p9 = por %p137_p7, %p79_p1  ;;  %s1952_s27 = smul.u32 384, %s2089_s16 }
   0xe   : > { %s1954_s28 = smul.u32 768, %s178_s26  ;;  %p2182_p11 = pnand %p1962_p10, %p2156_p3 }
   0xf   : > { %s191_s4 = scalar_lea.hbm %s2948_s1, %s1952_s27  ;;  %p1948_p12 = scmp.ge.s32.totalorder %s2093_s17, 1 }
  0x10   : > { %s182_s6 = scalar_lea.vmem [#allocation3], %s1954_s28  ;;  %s179_s8 = scalar_lea.sflag [#allocation4], %s178_s26 }
  0x11   : > { %s192_s7 = sshll.u32 %s182_s6, 4  ;;  %p2017_p13 = pneg %p2182_p11  ;;  %s193_s7 = int_to_ptr.vmem [resolvable:$true] %s192_s7 }
  0x12   : > { %s2028_s9 = scalar_lea.vmem %s193_s7, 12288  ;;  %s2095_s10 = smov [#allocation3]  }
  0x13   : > { %p2029_p0 = scmp.ne.s32.totalorder %s193_s7, %s2028_s9  ;;  %s2033_s11 = sshll.u32 %s2095_s10, 4  ;;  %s2034_s11 = int_to_ptr.vmem [resolvable:$false] %s2033_s11 }
  0x14   : > { %s2035_s12 = scalar_lea.vmem %s2034_s11, 24576  ;;  %p2036_p3 = scmp.lt.s32.totalorder %s193_s7, %s2034_s11 }
  0x15   : > { %p2031_p1 = pnand %p2029_p0, %p2017_p13  ;;  %p2037_p4 = scmp.lt.s32.totalorder %s2035_s12, %s2028_s9 }
  0x17   : > { %p2032_p2 = pneg %p2031_p1  ;;  %p2038_p5 = por %p2037_p4, %p2036_p3 }
  0x19   : > { %p2039_p6 = pnand %p2038_p5, %p2032_p2 }
  0x1b   : > { %2042 = shalt.err (!%p2039_p6)
}
  0x1c   : > { %s2096_s18 = smov 768   ;;  %s2097_s20 = smov 384  }
  0x1d   : > { %s2098_s21 = smov 24   ;;  %p208_p7 = scmp.lt.s32.totalorder %s2093_s17, 3 }
  0x1e   : > { %1961 = dma.hbm_to_vmem [thread:$0]  (!%p2182_p11), %s191_s4, 12288, %s193_s7, %s179_s8, %s2096_s18, %s2097_s20, %s2098_s21  }
  0x1f   : > { %p209_p10 = pnand %p1948_p12, %p208_p7 }
  0x20   : > { %s214_s22 = sand.u32 (!%p209_p10), 1, %s2077_s13  }
  0x21   : > { %212 = sbr.rel (%p209_p10) target bundleno = 453 (0x1c5), region = 32  ;;  %s215_s27 = scalar_lea.sflag (!%p209_p10), [#allocation4], %s214_s22 }
  0x22   : > { %s2195_s26 = smul.u32 (!%p209_p10), 768, %s214_s22 }
  0x24   : > { %s2198_s28 = scalar_lea.vmem (!%p209_p10), [#allocation3], %s2195_s26 }
  0x26   : > { %2068 = dma.done.wait (%p2163_p8), %s215_s27, 12288  }
  0x27   : > { %2070 = vsyncadd (%p2163_p8), %s215_s27, 4294955008  ;;  %v2099_v0 = vmov 0.0   ;;  %v581_v1 = vld [vmem:[%s2198_s28 + $0x170] sm:$0xff]  ;;  %v580_v2 = vld [vmem:[%s2198_s28 + $0x168] sm:$0xff]  ;;  %s268_s30 = smul.u32 3, %s2085_s15  ;;  %s2537_s7 = scalar_lea.vmem [#allocation5], %s2195_s26 }
  0x28   : > { %888 = vmatprep.subr.mxu1 %v2099_v0  ;;  %v582_v3 = vld [vmem:[%s2198_s28 + $0x178] sm:$0xff]  ;;  %631 = vmatprep.subr.mxu0 %v581_v1  ;;  %v577_v5 = vld [vmem:[%s2198_s28 + $0x150] sm:$0xff]  ;;  %v579_v6 = vld [vmem:[%s2198_s28 + $0x160] sm:$0xff]  ;;  %s1953_s26 = smul.u32 (%p2170_p9), 24, %s2085_s15 }
  0x29   : > { %889 = vmatpush1.msra.mxu1 %v582_v3  ;;  %v578_v4 = vld [vmem:[%s2198_s28 + $0x158] sm:$0xff]  ;;  %632 = vmatpush1.msra.mxu0 %v580_v2  ;;  %v575_v7 = vld [vmem:[%s2198_s28 + $0x140] sm:$0xff]  ;;  %v576_v8 = vld [vmem:[%s2198_s28 + $0x148] sm:$0xff]  ;;  %p269_p8 = scmp.lt.s32.totalorder %s268_s30, 5 }
  0x2a   : > { %890 = vmatprep.subr.mxu1 %v2099_v0  ;;  %633 = vmatprep.subr.mxu0 %v578_v4  ;;  %v574_v9 = vld [vmem:[%s2198_s28 + $0x138] sm:$0xff]  ;;  %v572_v10 = vld [vmem:[%s2198_s28 + $0x128] sm:$0xff]  ;;  %v573_v11 = vld [vmem:[%s2198_s28 + $0x130] sm:$0xff]  ;;  %s2741_s9 = scalar_lea.vmem (%p2170_p9), %s2950_s3, %s1953_s26 }
  0x2b   : > { %891 = vmatpush1.msra.mxu1 %v579_v6  ;;  %634 = vmatpush1.msra.mxu0 %v577_v5  ;;  %v571_v12 = vld [vmem:[%s2198_s28 + $0x120] sm:$0xff]  ;;  %v569_v13 = vld [vmem:[%s2198_s28 + $0x110] sm:$0xff]  ;;  %v570_v14 = vld [vmem:[%s2198_s28 + $0x118] sm:$0xff]  ;;  %s2963_s30 = smov (!%p269_p8, %s268_s30), 5 }
  0x2c   : > { %892 = vmatprep.subr.mxu1 %v2099_v0  ;;  %635 = vmatprep.subr.mxu0 %v575_v7  ;;  %v568_v15 = vld [vmem:[%s2198_s28 + $0x108] sm:$0xff]  ;;  %v566_v16 = vld [vmem:[%s2198_s28 + $0xf8] sm:$0xff]  ;;  %v567_v17 = vld [vmem:[%s2198_s28 + $0x100] sm:$0xff]  ;;  %s271_s6 = scalar_lea.vmem %s2949_s2, %s2963_s30 }
  0x2d   : > { %893 = vmatpush1.msra.mxu1 %v576_v8  ;;  %636 = vmatpush1.msra.mxu0 %v574_v9  ;;  %v565_v18 = vld [vmem:[%s2198_s28 + $0xf0] sm:$0xff]  ;;  %v563_v19 = vld [vmem:[%s2198_s28 + $0xe0] sm:$0xff]  ;;  %v564_v20 = vld [vmem:[%s2198_s28 + $0xe8] sm:$0xff] }
  0x2e   : > { %894 = vmatprep.subr.mxu1 %v2099_v0  ;;  %637 = vmatprep.subr.mxu0 %v572_v10  ;;  %v562_v21 = vld [vmem:[%s2198_s28 + $0xd8] sm:$0xff]  ;;  %v560_v22 = vld [vmem:[%s2198_s28 + $0xc8] sm:$0xff]  ;;  %v561_v23 = vld [vmem:[%s2198_s28 + $0xd0] sm:$0xff] }
  0x2f   : > { %895 = vmatpush1.msra.mxu1 %v573_v11  ;;  %638 = vmatpush1.msra.mxu0 %v571_v12  ;;  %v559_v24 = vld [vmem:[%s2198_s28 + $0xc0] sm:$0xff]  ;;  %v557_v25 = vld [vmem:[%s2198_s28 + $0xb0] sm:$0xff]  ;;  %v558_v26 = vld [vmem:[%s2198_s28 + $0xb8] sm:$0xff] }
  0x30   : > { %896 = vmatprep.subr.mxu1 %v2099_v0  ;;  %639 = vmatprep.subr.mxu0 %v569_v13  ;;  %v556_v27 = vld [vmem:[%s2198_s28 + $0xa8] sm:$0xff]  ;;  %v554_v28 = vld [vmem:[%s2198_s28 + $0x98] sm:$0xff]  ;;  %v555_v29 = vld [vmem:[%s2198_s28 + $0xa0] sm:$0xff] }
  0x31   : > { %897 = vmatpush1.msra.mxu1 %v570_v14  ;;  %640 = vmatpush1.msra.mxu0 %v568_v15  ;;  %v553_v30 = vld [vmem:[%s2198_s28 + $0x90] sm:$0xff]  ;;  %v551_v31 = vld [vmem:[%s2198_s28 + $0x80] sm:$0xff]  ;;  %v552_v32 = vld [vmem:[%s2198_s28 + $0x88] sm:$0xff] }
  0x32   : > { %898 = vmatprep.subr.mxu1 %v2099_v0  ;;  %641 = vmatprep.subr.mxu0 %v566_v16  ;;  %v550_v33 = vld [vmem:[%s2198_s28 + $0x78] sm:$0xff]  ;;  %v548_v34 = vld [vmem:[%s2198_s28 + $0x68] sm:$0xff]  ;;  %v549_v35 = vld [vmem:[%s2198_s28 + $0x70] sm:$0xff] }
  0x33   : > { %899 = vmatpush1.msra.mxu1 %v567_v17  ;;  %642 = vmatpush1.msra.mxu0 %v565_v18  ;;  %v547_v36 = vld [vmem:[%s2198_s28 + $0x60] sm:$0xff]  ;;  %v545_v37 = vld [vmem:[%s2198_s28 + $0x50] sm:$0xff]  ;;  %v546_v38 = vld [vmem:[%s2198_s28 + $0x58] sm:$0xff] }
  0x34   : > { %900 = vmatprep.subr.mxu1 %v2099_v0  ;;  %643 = vmatprep.subr.mxu0 %v563_v19  ;;  %v544_v39 = vld [vmem:[%s2198_s28 + $0x48] sm:$0xff]  ;;  %v542_v40 = vld [vmem:[%s2198_s28 + $0x38] sm:$0xff]  ;;  %v543_v41 = vld [vmem:[%s2198_s28 + $0x40] sm:$0xff] }
  0x35   : > { %901 = vmatpush1.msra.mxu1 %v564_v20  ;;  %644 = vmatpush1.msra.mxu0 %v562_v21  ;;  %v541_v42 = vld [vmem:[%s2198_s28 + $0x30] sm:$0xff]  ;;  %v539_v43 = vld [vmem:[%s2198_s28 + $0x20] sm:$0xff]  ;;  %v540_v44 = vld [vmem:[%s2198_s28 + $0x28] sm:$0xff] }
  0x36   : > { %902 = vmatprep.subr.mxu1 %v2099_v0  ;;  %645 = vmatprep.subr.mxu0 %v560_v22  ;;  %v538_v45 = vld [vmem:[%s2198_s28 + $0x18] sm:$0xff]  ;;  %v536_v46 = vld [vmem:[%s2198_s28 + $0x8] sm:$0xff]  ;;  %v537_v47 = vld [vmem:[%s2198_s28 + $0x10] sm:$0xff] }
  0x37   : > { %903 = vmatpush1.msra.mxu1 %v561_v23  ;;  %646 = vmatpush1.msra.mxu0 %v559_v24  ;;  %v535_v48 = vld [vmem:[%s2198_s28] sm:$0xff]  ;;  %v629_v49 = vld [vmem:[%s2198_s28 + $0x2f0] sm:$0xff]  ;;  %v630_v50 = vld [vmem:[%s2198_s28 + $0x2f8] sm:$0xff] }
  0x38   : > { %904 = vmatprep.subr.mxu1 %v2099_v0  ;;  %647 = vmatprep.subr.mxu0 %v557_v25  ;;  %v628_v51 = vld [vmem:[%s2198_s28 + $0x2e8] sm:$0xff]  ;;  %v626_v52 = vld [vmem:[%s2198_s28 + $0x2d8] sm:$0xff]  ;;  %v627_v53 = vld [vmem:[%s2198_s28 + $0x2e0] sm:$0xff] }
  0x39   : > { %905 = vmatpush1.msra.mxu1 %v558_v26  ;;  %648 = vmatpush1.msra.mxu0 %v556_v27  ;;  %v625_v54 = vld [vmem:[%s2198_s28 + $0x2d0] sm:$0xff]  ;;  %v623_v55 = vld [vmem:[%s2198_s28 + $0x2c0] sm:$0xff]  ;;  %v624_v56 = vld [vmem:[%s2198_s28 + $0x2c8] sm:$0xff] }
  0x3a   : > { %906 = vmatprep.subr.mxu1 %v2099_v0  ;;  %649 = vmatprep.subr.mxu0 %v554_v28  ;;  %v622_v57 = vld [vmem:[%s2198_s28 + $0x2b8] sm:$0xff]  ;;  %v620_v58 = vld [vmem:[%s2198_s28 + $0x2a8] sm:$0xff]  ;;  %v621_v59 = vld [vmem:[%s2198_s28 + $0x2b0] sm:$0xff] }
  0x3b   : > { %907 = vmatpush1.msra.mxu1 %v555_v29  ;;  %650 = vmatpush1.msra.mxu0 %v553_v30  ;;  %v619_v60 = vld [vmem:[%s2198_s28 + $0x2a0] sm:$0xff]  ;;  %v617_v61 = vld [vmem:[%s2198_s28 + $0x290] sm:$0xff]  ;;  %v618_v62 = vld [vmem:[%s2198_s28 + $0x298] sm:$0xff] }
  0x3c   : > { %908 = vmatprep.subr.mxu1 %v2099_v0  ;;  %651 = vmatprep.subr.mxu0 %v551_v31  ;;  %v616_v63 = vld [vmem:[%s2198_s28 + $0x288] sm:$0xff]  ;;  %v614_v1 = vld [vmem:[%s2198_s28 + $0x278] sm:$0xff]  ;;  %v615_v2 = vld [vmem:[%s2198_s28 + $0x280] sm:$0xff] }
  0x3d   : > { %909 = vmatpush1.msra.mxu1 %v552_v32  ;;  %652 = vmatpush1.msra.mxu0 %v550_v33  ;;  %v613_v3 = vld [vmem:[%s2198_s28 + $0x270] sm:$0xff]  ;;  %v611_v4 = vld [vmem:[%s2198_s28 + $0x260] sm:$0xff]  ;;  %v612_v5 = vld [vmem:[%s2198_s28 + $0x268] sm:$0xff] }
  0x3e   : > { %910 = vmatprep.subr.mxu1 %v2099_v0  ;;  %653 = vmatprep.subr.mxu0 %v548_v34  ;;  %v610_v6 = vld [vmem:[%s2198_s28 + $0x258] sm:$0xff]  ;;  %v608_v7 = vld [vmem:[%s2198_s28 + $0x248] sm:$0xff]  ;;  %v609_v8 = vld [vmem:[%s2198_s28 + $0x250] sm:$0xff] }
  0x3f   : > { %911 = vmatpush1.msra.mxu1 %v549_v35  ;;  %654 = vmatpush1.msra.mxu0 %v547_v36  ;;  %v607_v9 = vld [vmem:[%s2198_s28 + $0x240] sm:$0xff]  ;;  %v605_v10 = vld [vmem:[%s2198_s28 + $0x230] sm:$0xff]  ;;  %v606_v11 = vld [vmem:[%s2198_s28 + $0x238] sm:$0xff] }
  0x40   : > { %912 = vmatprep.subr.mxu1 %v2099_v0  ;;  %655 = vmatprep.subr.mxu0 %v545_v37  ;;  %v604_v12 = vld [vmem:[%s2198_s28 + $0x228] sm:$0xff]  ;;  %v602_v13 = vld [vmem:[%s2198_s28 + $0x218] sm:$0xff]  ;;  %v603_v14 = vld [vmem:[%s2198_s28 + $0x220] sm:$0xff] }
  0x41   : > { %913 = vmatpush1.msra.mxu1 %v546_v38  ;;  %656 = vmatpush1.msra.mxu0 %v544_v39  ;;  %v601_v15 = vld [vmem:[%s2198_s28 + $0x210] sm:$0xff]  ;;  %v599_v16 = vld [vmem:[%s2198_s28 + $0x200] sm:$0xff]  ;;  %v600_v17 = vld [vmem:[%s2198_s28 + $0x208] sm:$0xff] }
  0x42   : > { %914 = vmatprep.subr.mxu1 %v2099_v0  ;;  %657 = vmatprep.subr.mxu0 %v542_v40  ;;  %v598_v18 = vld [vmem:[%s2198_s28 + $0x1f8] sm:$0xff]  ;;  %v596_v19 = vld [vmem:[%s2198_s28 + $0x1e8] sm:$0xff]  ;;  %v597_v20 = vld [vmem:[%s2198_s28 + $0x1f0] sm:$0xff] }
  0x43   : > { %915 = vmatpush1.msra.mxu1 %v543_v41  ;;  %658 = vmatpush1.msra.mxu0 %v541_v42  ;;  %v595_v21 = vld [vmem:[%s2198_s28 + $0x1e0] sm:$0xff]  ;;  %v593_v22 = vld [vmem:[%s2198_s28 + $0x1d0] sm:$0xff]  ;;  %v594_v23 = vld [vmem:[%s2198_s28 + $0x1d8] sm:$0xff] }
  0x44   : > { %916 = vmatprep.subr.mxu1 %v2099_v0  ;;  %659 = vmatprep.subr.mxu0 %v539_v43  ;;  %v592_v24 = vld [vmem:[%s2198_s28 + $0x1c8] sm:$0xff]  ;;  %v590_v25 = vld [vmem:[%s2198_s28 + $0x1b8] sm:$0xff]  ;;  %v591_v26 = vld [vmem:[%s2198_s28 + $0x1c0] sm:$0xff] }
  0x45   : > { %917 = vmatpush1.msra.mxu1 %v540_v44  ;;  %660 = vmatpush1.msra.mxu0 %v538_v45  ;;  %v589_v27 = vld [vmem:[%s2198_s28 + $0x1b0] sm:$0xff]  ;;  %v587_v28 = vld [vmem:[%s2198_s28 + $0x1a0] sm:$0xff]  ;;  %v588_v29 = vld [vmem:[%s2198_s28 + $0x1a8] sm:$0xff] }
  0x46   : > { %918 = vmatprep.subr.mxu1 %v2099_v0  ;;  %661 = vmatprep.subr.mxu0 %v536_v46  ;;  %v586_v30 = vld [vmem:[%s2198_s28 + $0x198] sm:$0xff]  ;;  %v584_v31 = vld [vmem:[%s2198_s28 + $0x188] sm:$0xff]  ;;  %v583_v33 = vld [vmem:[%s2198_s28 + $0x180] sm:$0xff] }
  0x47   : > { %919 = vmatpush1.msra.mxu1 %v537_v47  ;;  %662 = vmatpush1.msra.mxu0 %v535_v48  ;;  %v472_v32 = vld [vmem:[%s2947_s0 + $0x8] sm:$0xff]  ;;  %v585_v34 = vld [vmem:[%s2198_s28 + $0x190] sm:$0xff]  ;;  %v471_v35 = vld [vmem:[%s2947_s0] sm:$0xff] }
  0x48   : > { %920 = vmatprep.subr.mxu1 %v2099_v0  ;;  %663 = vmatprep.subr.mxu0 %v629_v49  ;;  %v474_v36 = vld [vmem:[%s2947_s0 + $0x18] sm:$0xff]  ;;  %v476_v37 = vld [vmem:[%s2947_s0 + $0x28] sm:$0xff]  ;;  %v475_v38 = vld [vmem:[%s2947_s0 + $0x20] sm:$0xff] }
  0x49   : > { %921 = vmatpush2.msra.mxu1 %v630_v50  ;;  %664 = vmatpush2.msra.mxu0 %v628_v51  ;;  %v478_v39 = vld [vmem:[%s2947_s0 + $0x38] sm:$0xff]  ;;  %v477_v40 = vld [vmem:[%s2947_s0 + $0x30] sm:$0xff]  ;;  %v480_v41 = vld [vmem:[%s2947_s0 + $0x48] sm:$0xff] }
  0x4a   : > { %922 = vmatprep.subr.mxu1 %v2099_v0  ;;  %665 = vmatprep.subr.mxu0 %v626_v52  ;;  %v479_v42 = vld [vmem:[%s2947_s0 + $0x40] sm:$0xff]  ;;  %v482_v43 = vld [vmem:[%s2947_s0 + $0x58] sm:$0xff]  ;;  %v481_v44 = vld [vmem:[%s2947_s0 + $0x50] sm:$0xff] }
  0x4b   : > { %923 = vmatpush2.msra.mxu1 %v627_v53  ;;  %666 = vmatpush2.msra.mxu0 %v625_v54  ;;  %v484_v45 = vld [vmem:[%s2947_s0 + $0x68] sm:$0xff]  ;;  %v483_v46 = vld [vmem:[%s2947_s0 + $0x60] sm:$0xff]  ;;  %v486_v47 = vld [vmem:[%s2947_s0 + $0x78] sm:$0xff] }
  0x4c   : > { %924 = vmatprep.subr.mxu1 %v2099_v0  ;;  %667 = vmatprep.subr.mxu0 %v623_v55  ;;  %v485_v48 = vld [vmem:[%s2947_s0 + $0x70] sm:$0xff]  ;;  %v488_v49 = vld [vmem:[%s2947_s0 + $0x88] sm:$0xff]  ;;  %v487_v50 = vld [vmem:[%s2947_s0 + $0x80] sm:$0xff] }
  0x4d   : > { %925 = vmatpush2.msra.mxu1 %v624_v56  ;;  %668 = vmatpush2.msra.mxu0 %v622_v57  ;;  %v490_v51 = vld [vmem:[%s2947_s0 + $0x98] sm:$0xff]  ;;  %v489_v52 = vld [vmem:[%s2947_s0 + $0x90] sm:$0xff]  ;;  %v492_v53 = vld [vmem:[%s2947_s0 + $0xa8] sm:$0xff] }
  0x4e   : > { %926 = vmatprep.subr.mxu1 %v2099_v0  ;;  %669 = vmatprep.subr.mxu0 %v620_v58  ;;  %v491_v54 = vld [vmem:[%s2947_s0 + $0xa0] sm:$0xff]  ;;  %v494_v55 = vld [vmem:[%s2947_s0 + $0xb8] sm:$0xff]  ;;  %v493_v56 = vld [vmem:[%s2947_s0 + $0xb0] sm:$0xff] }
  0x4f   : > { %927 = vmatpush2.msra.mxu1 %v621_v59  ;;  %670 = vmatpush2.msra.mxu0 %v619_v60  ;;  %v496_v57 = vld [vmem:[%s2947_s0 + $0xc8] sm:$0xff]  ;;  %v495_v58 = vld [vmem:[%s2947_s0 + $0xc0] sm:$0xff]  ;;  %v498_v59 = vld [vmem:[%s2947_s0 + $0xd8] sm:$0xff] }
  0x50   : > { %928 = vmatprep.subr.mxu1 %v2099_v0  ;;  %671 = vmatprep.subr.mxu0 %v617_v61  ;;  %v497_v60 = vld [vmem:[%s2947_s0 + $0xd0] sm:$0xff]  ;;  %v500_v61 = vld [vmem:[%s2947_s0 + $0xe8] sm:$0xff] }
  0x51   : > { %929 = vmatpush2.msra.mxu1 %v618_v62  ;;  %672 = vmatpush2.msra.mxu0 %v616_v63  ;;  %v499_v62 = vld [vmem:[%s2947_s0 + $0xe0] sm:$0xff]  ;;  %v502_v63 = vld [vmem:[%s2947_s0 + $0xf8] sm:$0xff] }
  0x52   : > { %930 = vmatprep.subr.mxu1 %v2099_v0  ;;  %673 = vmatprep.subr.mxu0 %v614_v1  ;;  %v501_v1 = vld [vmem:[%s2947_s0 + $0xf0] sm:$0xff] }
  0x53   : > { %931 = vmatpush2.msra.mxu1 %v615_v2  ;;  %674 = vmatpush2.msra.mxu0 %v613_v3  ;;  %v504_v2 = vld [vmem:[%s2947_s0 + $0x108] sm:$0xff]  ;;  %v503_v3 = vld [vmem:[%s2947_s0 + $0x100] sm:$0xff] }
  0x54   : > { %932 = vmatprep.subr.mxu1 %v2099_v0  ;;  %675 = vmatprep.subr.mxu0 %v611_v4  ;;  %v506_v4 = vld [vmem:[%s2947_s0 + $0x118] sm:$0xff] }
  0x55   : > { %933 = vmatpush2.msra.mxu1 %v612_v5  ;;  %676 = vmatpush2.msra.mxu0 %v610_v6  ;;  %v505_v5 = vld [vmem:[%s2947_s0 + $0x110] sm:$0xff]  ;;  %v508_v6 = vld [vmem:[%s2947_s0 + $0x128] sm:$0xff] }
  0x56   : > { %934 = vmatprep.subr.mxu1 %v2099_v0  ;;  %677 = vmatprep.subr.mxu0 %v608_v7  ;;  %v507_v7 = vld [vmem:[%s2947_s0 + $0x120] sm:$0xff] }
  0x57   : > { %935 = vmatpush2.msra.mxu1 %v609_v8  ;;  %678 = vmatpush2.msra.mxu0 %v607_v9  ;;  %v510_v8 = vld [vmem:[%s2947_s0 + $0x138] sm:$0xff]  ;;  %v509_v9 = vld [vmem:[%s2947_s0 + $0x130] sm:$0xff] }
  0x58   : > { %936 = vmatprep.subr.mxu1 %v2099_v0  ;;  %679 = vmatprep.subr.mxu0 %v605_v10  ;;  %v512_v10 = vld [vmem:[%s2947_s0 + $0x148] sm:$0xff] }
  0x59   : > { %937 = vmatpush2.msra.mxu1 %v606_v11  ;;  %680 = vmatpush2.msra.mxu0 %v604_v12  ;;  %v511_v11 = vld [vmem:[%s2947_s0 + $0x140] sm:$0xff]  ;;  %v514_v12 = vld [vmem:[%s2947_s0 + $0x158] sm:$0xff] }
  0x5a   : > { %938 = vmatprep.subr.mxu1 %v2099_v0  ;;  %681 = vmatprep.subr.mxu0 %v602_v13  ;;  %v513_v13 = vld [vmem:[%s2947_s0 + $0x150] sm:$0xff] }
  0x5b   : > { %939 = vmatpush2.msra.mxu1 %v603_v14  ;;  %682 = vmatpush2.msra.mxu0 %v601_v15  ;;  %v516_v14 = vld [vmem:[%s2947_s0 + $0x168] sm:$0xff]  ;;  %v515_v15 = vld [vmem:[%s2947_s0 + $0x160] sm:$0xff] }
  0x5c   : > { %940 = vmatprep.subr.mxu1 %v2099_v0  ;;  %683 = vmatprep.subr.mxu0 %v599_v16  ;;  %v518_v16 = vld [vmem:[%s2947_s0 + $0x178] sm:$0xff] }
  0x5d   : > { %941 = vmatpush2.msra.mxu1 %v600_v17  ;;  %684 = vmatpush2.msra.mxu0 %v598_v18  ;;  %v517_v17 = vld [vmem:[%s2947_s0 + $0x170] sm:$0xff]  ;;  %v520_v18 = vld [vmem:[%s2947_s0 + $0x188] sm:$0xff] }
  0x5e   : > { %942 = vmatprep.subr.mxu1 %v2099_v0  ;;  %685 = vmatprep.subr.mxu0 %v596_v19  ;;  %v519_v19 = vld [vmem:[%s2947_s0 + $0x180] sm:$0xff] }
  0x5f   : > { %943 = vmatpush2.msra.mxu1 %v597_v20  ;;  %686 = vmatpush2.msra.mxu0 %v595_v21  ;;  %v522_v20 = vld [vmem:[%s2947_s0 + $0x198] sm:$0xff]  ;;  %v521_v21 = vld [vmem:[%s2947_s0 + $0x190] sm:$0xff] }
  0x60   : > { %944 = vmatprep.subr.mxu1 %v2099_v0  ;;  %687 = vmatprep.subr.mxu0 %v593_v22  ;;  %v524_v22 = vld [vmem:[%s2947_s0 + $0x1a8] sm:$0xff] }
  0x61   : > { %945 = vmatpush2.msra.mxu1 %v594_v23  ;;  %688 = vmatpush2.msra.mxu0 %v592_v24  ;;  %v523_v23 = vld [vmem:[%s2947_s0 + $0x1a0] sm:$0xff]  ;;  %v526_v24 = vld [vmem:[%s2947_s0 + $0x1b8] sm:$0xff] }
  0x62   : > { %946 = vmatprep.subr.mxu1 %v2099_v0  ;;  %689 = vmatprep.subr.mxu0 %v590_v25  ;;  %v525_v25 = vld [vmem:[%s2947_s0 + $0x1b0] sm:$0xff] }
  0x63   : > { %947 = vmatpush2.msra.mxu1 %v591_v26  ;;  %690 = vmatpush2.msra.mxu0 %v589_v27  ;;  %v528_v26 = vld [vmem:[%s2947_s0 + $0x1c8] sm:$0xff]  ;;  %v527_v27 = vld [vmem:[%s2947_s0 + $0x1c0] sm:$0xff] }
  0x64   : > { %948 = vmatprep.subr.mxu1 %v2099_v0  ;;  %691 = vmatprep.subr.mxu0 %v587_v28  ;;  %v530_v28 = vld [vmem:[%s2947_s0 + $0x1d8] sm:$0xff] }
  0x65   : > { %949 = vmatpush2.msra.mxu1 %v588_v29  ;;  %692 = vmatpush2.msra.mxu0 %v586_v30  ;;  %v529_v29 = vld [vmem:[%s2947_s0 + $0x1d0] sm:$0xff]  ;;  %v532_v30 = vld [vmem:[%s2947_s0 + $0x1e8] sm:$0xff] }
  0x66   : > { %950 = vmatprep.subr.mxu1 %v2099_v0  ;;  %693 = vmatprep.subr.mxu0 %v584_v31  ;;  %v473_v0 = vld [vmem:[%s2947_s0 + $0x10] sm:$0xff]  ;;  %v531_v31 = vld [vmem:[%s2947_s0 + $0x1e0] sm:$0xff] }
  0x67   : > { %695 = vmatprep.mubr.f32.mxu0 %v472_v32  ;;  %694 = vmatpush2.msra.mxu0 %v583_v33  ;;  %v533_v33 = vld [vmem:[%s2947_s0 + $0x1f0] sm:$0xff] }
  0x68   : > { %951 = vmatpush2.msra.mxu1 %v585_v34  ;;  %952 = vmatprep.mubr.f32.mxu1 %v472_v32  ;;  %v534_v32 = vld [vmem:[%s2947_s0 + $0x1f8] sm:$0xff]  ;;  %v1406_v34 = vlaneseq }
  0x69   : > { %696 = vmatmul.mubr.f32.vlgmr.msra.gmra.mxu0 %v471_v35  ;;  %953 = vmatmul.mubr.f32.vlgmr.msra.gmra.mxu1 %v471_v35 }
  0x6a   : > { %701 = vmatprep.mubr.f32.mxu0 %v474_v36  ;;  %957 = vmatprep.mubr.f32.mxu1 %v474_v36  ;;  %v1407_v35 = vshrl.u32 %v1406_v34, 7 }
  0x6c   : > { %v1408_v36 = vsub.s32 0, %v1407_v35 }
  0x6d   : > { %702 = vmatmul.mubr.f32.gmra.mxu0 %v473_v0  ;;  %958 = vmatmul.mubr.f32.gmra.mxu1 %v473_v0  ;;  %v1404_v0 = vld [vmem:[%s271_s6] sm:$0x7] }
  0x6e   : > { %707 = vmatprep.mubr.f32.mxu0 %v476_v37  ;;  %962 = vmatprep.mubr.f32.mxu1 %v476_v37  ;;  %v1416_v37 = vsub.s32 2, %v1407_v35 }
  0x71   : > { %708 = vmatmul.mubr.f32.gmra.mxu0 %v475_v38  ;;  %963 = vmatmul.mubr.f32.gmra.mxu1 %v475_v38  ;;  %v1412_v38 = vsub.s32 1, %v1407_v35 }
  0x72   : > { %713 = vmatprep.mubr.f32.mxu0 %v478_v39  ;;  %967 = vmatprep.mubr.f32.mxu1 %v478_v39  ;;  %v2528_v39 = vrot.slane %v1404_v0, %v1408_v36 }
  0x75   : > { %714 = vmatmul.mubr.f32.gmra.mxu0 %v477_v40  ;;  %968 = vmatmul.mubr.f32.gmra.mxu1 %v477_v40  ;;  %v2530_v40 = vrot.slane %v1404_v0, %v1416_v37 }
  0x76   : > { %719 = vmatprep.mubr.f32.mxu0 %v480_v41  ;;  %972 = vmatprep.mubr.f32.mxu1 %v480_v41  ;;  %v2532_v41 = vrot.slane %v1404_v0, %v1412_v38 }
  0x79   : > { %720 = vmatmul.mubr.f32.gmra.mxu0 %v479_v42  ;;  %973 = vmatmul.mubr.f32.gmra.mxu1 %v479_v42 }
  0x7a   : > { %725 = vmatprep.mubr.f32.mxu0 %v482_v43  ;;  %977 = vmatprep.mubr.f32.mxu1 %v482_v43 }
  0x7d   : > { %726 = vmatmul.mubr.f32.gmra.mxu0 %v481_v44  ;;  %978 = vmatmul.mubr.f32.gmra.mxu1 %v481_v44 }
  0x7e   : > { %731 = vmatprep.mubr.f32.mxu0 %v484_v45  ;;  %982 = vmatprep.mubr.f32.mxu1 %v484_v45 }
  0x81   : > { %732 = vmatmul.mubr.f32.gmra.mxu0 %v483_v46  ;;  %983 = vmatmul.mubr.f32.gmra.mxu1 %v483_v46 }
  0x82   : > { %737 = vmatprep.mubr.f32.mxu0 %v486_v47  ;;  %987 = vmatprep.mubr.f32.mxu1 %v486_v47 }
  0x85   : > { %738 = vmatmul.mubr.f32.gmra.mxu0 %v485_v48  ;;  %988 = vmatmul.mubr.f32.gmra.mxu1 %v485_v48 }
  0x86   : > { %743 = vmatprep.mubr.f32.mxu0 %v488_v49  ;;  %992 = vmatprep.mubr.f32.mxu1 %v488_v49 }
  0x89   : > { %744 = vmatmul.mubr.f32.gmra.mxu0 %v487_v50  ;;  %993 = vmatmul.mubr.f32.gmra.mxu1 %v487_v50 }
  0x8a   : > { %749 = vmatprep.mubr.f32.mxu0 %v490_v51  ;;  %997 = vmatprep.mubr.f32.mxu1 %v490_v51 }
  0x8d   : > { %750 = vmatmul.mubr.f32.gmra.mxu0 %v489_v52  ;;  %998 = vmatmul.mubr.f32.gmra.mxu1 %v489_v52 }
  0x8e   : > { %755 = vmatprep.mubr.f32.mxu0 %v492_v53  ;;  %1002 = vmatprep.mubr.f32.mxu1 %v492_v53 }
  0x91   : > { %756 = vmatmul.mubr.f32.gmra.mxu0 %v491_v54  ;;  %1003 = vmatmul.mubr.f32.gmra.mxu1 %v491_v54 }
  0x92   : > { %761 = vmatprep.mubr.f32.mxu0 %v494_v55  ;;  %1007 = vmatprep.mubr.f32.mxu1 %v494_v55 }
  0x95   : > { %762 = vmatmul.mubr.f32.gmra.mxu0 %v493_v56  ;;  %1008 = vmatmul.mubr.f32.gmra.mxu1 %v493_v56 }
  0x96   : > { %767 = vmatprep.mubr.f32.mxu0 %v496_v57  ;;  %1012 = vmatprep.mubr.f32.mxu1 %v496_v57 }
  0x99   : > { %768 = vmatmul.mubr.f32.gmra.mxu0 %v495_v58  ;;  %1013 = vmatmul.mubr.f32.gmra.mxu1 %v495_v58 }
  0x9a   : > { %773 = vmatprep.mubr.f32.mxu0 %v498_v59  ;;  %1017 = vmatprep.mubr.f32.mxu1 %v498_v59 }
  0x9d   : > { %774 = vmatmul.mubr.f32.gmra.mxu0 %v497_v60  ;;  %1018 = vmatmul.mubr.f32.gmra.mxu1 %v497_v60 }
  0x9e   : > { %779 = vmatprep.mubr.f32.mxu0 %v500_v61  ;;  %1022 = vmatprep.mubr.f32.mxu1 %v500_v61 }
  0xa1   : > { %780 = vmatmul.mubr.f32.gmra.mxu0 %v499_v62  ;;  %1023 = vmatmul.mubr.f32.gmra.mxu1 %v499_v62 }
  0xa2   : > { %785 = vmatprep.mubr.f32.mxu0 %v502_v63  ;;  %1027 = vmatprep.mubr.f32.mxu1 %v502_v63 }
  0xa5   : > { %786 = vmatmul.mubr.f32.gmra.mxu0 %v501_v1  ;;  %1028 = vmatmul.mubr.f32.gmra.mxu1 %v501_v1 }
  0xa6   : > { %791 = vmatprep.mubr.f32.mxu0 %v504_v2  ;;  %1032 = vmatprep.mubr.f32.mxu1 %v504_v2 }
  0xa9   : > { %792 = vmatmul.mubr.f32.gmra.mxu0 %v503_v3  ;;  %1033 = vmatmul.mubr.f32.gmra.mxu1 %v503_v3 }
  0xaa   : > { %797 = vmatprep.mubr.f32.mxu0 %v506_v4  ;;  %1037 = vmatprep.mubr.f32.mxu1 %v506_v4 }
  0xad   : > { %798 = vmatmul.mubr.f32.gmra.mxu0 %v505_v5  ;;  %1038 = vmatmul.mubr.f32.gmra.mxu1 %v505_v5 }
  0xae   : > { %803 = vmatprep.mubr.f32.mxu0 %v508_v6  ;;  %1042 = vmatprep.mubr.f32.mxu1 %v508_v6 }
  0xb1   : > { %804 = vmatmul.mubr.f32.gmra.mxu0 %v507_v7  ;;  %1043 = vmatmul.mubr.f32.gmra.mxu1 %v507_v7 }
  0xb2   : > { %809 = vmatprep.mubr.f32.mxu0 %v510_v8  ;;  %1047 = vmatprep.mubr.f32.mxu1 %v510_v8 }
  0xb5   : > { %810 = vmatmul.mubr.f32.gmra.mxu0 %v509_v9  ;;  %1048 = vmatmul.mubr.f32.gmra.mxu1 %v509_v9 }
  0xb6   : > { %815 = vmatprep.mubr.f32.mxu0 %v512_v10  ;;  %1052 = vmatprep.mubr.f32.mxu1 %v512_v10 }
  0xb9   : > { %816 = vmatmul.mubr.f32.gmra.mxu0 %v511_v11  ;;  %1053 = vmatmul.mubr.f32.gmra.mxu1 %v511_v11 }
  0xba   : > { %821 = vmatprep.mubr.f32.mxu0 %v514_v12  ;;  %1057 = vmatprep.mubr.f32.mxu1 %v514_v12 }
  0xbd   : > { %822 = vmatmul.mubr.f32.gmra.mxu0 %v513_v13  ;;  %1058 = vmatmul.mubr.f32.gmra.mxu1 %v513_v13 }
  0xbe   : > { %827 = vmatprep.mubr.f32.mxu0 %v516_v14  ;;  %1062 = vmatprep.mubr.f32.mxu1 %v516_v14 }
  0xc1   : > { %828 = vmatmul.mubr.f32.gmra.mxu0 %v515_v15  ;;  %1063 = vmatmul.mubr.f32.gmra.mxu1 %v515_v15 }
  0xc2   : > { %833 = vmatprep.mubr.f32.mxu0 %v518_v16  ;;  %1067 = vmatprep.mubr.f32.mxu1 %v518_v16 }
  0xc5   : > { %834 = vmatmul.mubr.f32.gmra.mxu0 %v517_v17  ;;  %1068 = vmatmul.mubr.f32.gmra.mxu1 %v517_v17 }
  0xc6   : > { %839 = vmatprep.mubr.f32.mxu0 %v520_v18  ;;  %1072 = vmatprep.mubr.f32.mxu1 %v520_v18 }
  0xc9   : > { %840 = vmatmul.mubr.f32.gmra.mxu0 %v519_v19  ;;  %1073 = vmatmul.mubr.f32.gmra.mxu1 %v519_v19 }
  0xca   : > { %845 = vmatprep.mubr.f32.mxu0 %v522_v20  ;;  %1077 = vmatprep.mubr.f32.mxu1 %v522_v20 }
  0xcd   : > { %846 = vmatmul.mubr.f32.gmra.mxu0 %v521_v21  ;;  %1078 = vmatmul.mubr.f32.gmra.mxu1 %v521_v21 }
  0xce   : > { %851 = vmatprep.mubr.f32.mxu0 %v524_v22  ;;  %1082 = vmatprep.mubr.f32.mxu1 %v524_v22 }
  0xd1   : > { %852 = vmatmul.mubr.f32.gmra.mxu0 %v523_v23  ;;  %1083 = vmatmul.mubr.f32.gmra.mxu1 %v523_v23 }
  0xd2   : > { %857 = vmatprep.mubr.f32.mxu0 %v526_v24  ;;  %1087 = vmatprep.mubr.f32.mxu1 %v526_v24 }
  0xd5   : > { %858 = vmatmul.mubr.f32.gmra.mxu0 %v525_v25  ;;  %1088 = vmatmul.mubr.f32.gmra.mxu1 %v525_v25 }
  0xd6   : > { %863 = vmatprep.mubr.f32.mxu0 %v528_v26  ;;  %1092 = vmatprep.mubr.f32.mxu1 %v528_v26 }
  0xd9   : > { %864 = vmatmul.mubr.f32.gmra.mxu0 %v527_v27  ;;  %1093 = vmatmul.mubr.f32.gmra.mxu1 %v527_v27 }
  0xda   : > { %869 = vmatprep.mubr.f32.mxu0 %v530_v28  ;;  %1097 = vmatprep.mubr.f32.mxu1 %v530_v28 }
  0xdd   : > { %870 = vmatmul.mubr.f32.gmra.mxu0 %v529_v29  ;;  %1098 = vmatmul.mubr.f32.gmra.mxu1 %v529_v29 }
  0xde   : > { %875 = vmatprep.mubr.f32.mxu0 %v532_v30  ;;  %1102 = vmatprep.mubr.f32.mxu1 %v532_v30 }
  0xe1   : > { %876 = vmatmul.mubr.f32.gmra.mxu0 %v531_v31  ;;  %1103 = vmatmul.mubr.f32.gmra.mxu1 %v531_v31 }
  0xe2   : > { %881 = vmatprep.mubr.f32.mxu0 %v534_v32  ;;  %1107 = vmatprep.mubr.f32.mxu1 %v534_v32 }
  0xe5   : > { %882 = vmatmul.mubr.f32.gmra.mxu0 %v533_v33  ;;  %1108 = vmatmul.mubr.f32.gmra.mxu1 %v533_v33 }
 0x129   : > { %v697_v42 = vpop.f32.mrf.mxu0  ;;  %v954_v44 = vpop.f32.mrf.mxu1 }
 0x12a   : > { %v1421_v43 = vadd.f32 %v2528_v39, %v697_v42  ;;  %v1423_v45 = vadd.f32 %v2530_v40, %v954_v44 }
 0x12b   : > { %v699_v46 = vpop.f32.mrf.mxu0  ;;  %v956_v48 = vpop.f32.mrf.mxu1 }
 0x12c   : > { %1517 = vst [vmem:[%s2537_s7] sm:$0xff] %v1421_v43  ;;  %v1422_v47 = vadd.f32 %v2532_v41, %v699_v46  ;;  %1519 = vst [vmem:[%s2537_s7 + $0x10] sm:$0xff] %v1423_v45 }
 0x12d   : > { %v703_v49 = vpop.f32.mrf.mxu0  ;;  %v959_v51 = vpop.f32.mrf.mxu1 }
 0x12e   : > { %1518 = vst [vmem:[%s2537_s7 + $0x8] sm:$0xff] %v1422_v47  ;;  %v1424_v50 = vadd.f32 %v2528_v39, %v703_v49  ;;  %v1426_v52 = vadd.f32 %v2530_v40, %v959_v51 }
 0x12f   : > { %v705_v53 = vpop.f32.mrf.mxu0  ;;  %v961_v55 = vpop.f32.mrf.mxu1 }
 0x130   : > { %1520 = vst [vmem:[%s2537_s7 + $0x18] sm:$0xff] %v1424_v50  ;;  %v1425_v54 = vadd.f32 %v2532_v41, %v705_v53  ;;  %1522 = vst [vmem:[%s2537_s7 + $0x28] sm:$0xff] %v1426_v52 }
 0x131   : > { %v709_v56 = vpop.f32.mrf.mxu0  ;;  %v964_v58 = vpop.f32.mrf.mxu1 }
 0x132   : > { %1521 = vst [vmem:[%s2537_s7 + $0x20] sm:$0xff] %v1425_v54  ;;  %v1427_v57 = vadd.f32 %v2528_v39, %v709_v56  ;;  %v1429_v59 = vadd.f32 %v2530_v40, %v964_v58 }
 0x133   : > { %v711_v60 = vpop.f32.mrf.mxu0  ;;  %v966_v62 = vpop.f32.mrf.mxu1 }
 0x134   : > { %1523 = vst [vmem:[%s2537_s7 + $0x30] sm:$0xff] %v1427_v57  ;;  %v1428_v61 = vadd.f32 %v2532_v41, %v711_v60  ;;  %1525 = vst [vmem:[%s2537_s7 + $0x40] sm:$0xff] %v1429_v59 }
 0x135   : > { %v715_v63 = vpop.f32.mrf.mxu0  ;;  %v969_v2 = vpop.f32.mrf.mxu1 }
 0x136   : > { %1524 = vst [vmem:[%s2537_s7 + $0x38] sm:$0xff] %v1428_v61  ;;  %v1430_v1 = vadd.f32 %v2528_v39, %v715_v63  ;;  %v1432_v3 = vadd.f32 %v2530_v40, %v969_v2 }
 0x137   : > { %v717_v4 = vpop.f32.mrf.mxu0  ;;  %v971_v6 = vpop.f32.mrf.mxu1 }
 0x138   : > { %1526 = vst [vmem:[%s2537_s7 + $0x48] sm:$0xff] %v1430_v1  ;;  %v1431_v5 = vadd.f32 %v2532_v41, %v717_v4  ;;  %1528 = vst [vmem:[%s2537_s7 + $0x58] sm:$0xff] %v1432_v3 }
 0x139   : > { %v721_v7 = vpop.f32.mrf.mxu0  ;;  %v974_v9 = vpop.f32.mrf.mxu1 }
 0x13a   : > { %1527 = vst [vmem:[%s2537_s7 + $0x50] sm:$0xff] %v1431_v5  ;;  %v1433_v8 = vadd.f32 %v2528_v39, %v721_v7  ;;  %v1435_v10 = vadd.f32 %v2530_v40, %v974_v9 }
 0x13b   : > { %v723_v11 = vpop.f32.mrf.mxu0  ;;  %v976_v13 = vpop.f32.mrf.mxu1 }
 0x13c   : > { %1529 = vst [vmem:[%s2537_s7 + $0x60] sm:$0xff] %v1433_v8  ;;  %v1434_v12 = vadd.f32 %v2532_v41, %v723_v11  ;;  %1531 = vst [vmem:[%s2537_s7 + $0x70] sm:$0xff] %v1435_v10 }
 0x13d   : > { %v727_v14 = vpop.f32.mrf.mxu0  ;;  %v979_v16 = vpop.f32.mrf.mxu1 }
 0x13e   : > { %1530 = vst [vmem:[%s2537_s7 + $0x68] sm:$0xff] %v1434_v12  ;;  %v1436_v15 = vadd.f32 %v2528_v39, %v727_v14  ;;  %v1438_v17 = vadd.f32 %v2530_v40, %v979_v16 }
 0x13f   : > { %v729_v18 = vpop.f32.mrf.mxu0  ;;  %v981_v20 = vpop.f32.mrf.mxu1 }
 0x140   : > { %1532 = vst [vmem:[%s2537_s7 + $0x78] sm:$0xff] %v1436_v15  ;;  %v1437_v19 = vadd.f32 %v2532_v41, %v729_v18  ;;  %1534 = vst [vmem:[%s2537_s7 + $0x88] sm:$0xff] %v1438_v17 }
 0x141   : > { %v733_v21 = vpop.f32.mrf.mxu0  ;;  %v984_v23 = vpop.f32.mrf.mxu1 }
 0x142   : > { %1533 = vst [vmem:[%s2537_s7 + $0x80] sm:$0xff] %v1437_v19  ;;  %v1439_v22 = vadd.f32 %v2528_v39, %v733_v21  ;;  %v1441_v24 = vadd.f32 %v2530_v40, %v984_v23 }
 0x143   : > { %v735_v25 = vpop.f32.mrf.mxu0  ;;  %v986_v27 = vpop.f32.mrf.mxu1 }
 0x144   : > { %1535 = vst [vmem:[%s2537_s7 + $0x90] sm:$0xff] %v1439_v22  ;;  %v1440_v26 = vadd.f32 %v2532_v41, %v735_v25  ;;  %1537 = vst [vmem:[%s2537_s7 + $0xa0] sm:$0xff] %v1441_v24 }
 0x145   : > { %v739_v28 = vpop.f32.mrf.mxu0  ;;  %v989_v30 = vpop.f32.mrf.mxu1 }
 0x146   : > { %1536 = vst [vmem:[%s2537_s7 + $0x98] sm:$0xff] %v1440_v26  ;;  %v1442_v29 = vadd.f32 %v2528_v39, %v739_v28  ;;  %v1444_v31 = vadd.f32 %v2530_v40, %v989_v30 }
 0x147   : > { %v741_v32 = vpop.f32.mrf.mxu0  ;;  %v991_v34 = vpop.f32.mrf.mxu1 }
 0x148   : > { %1538 = vst [vmem:[%s2537_s7 + $0xa8] sm:$0xff] %v1442_v29  ;;  %v1443_v33 = vadd.f32 %v2532_v41, %v741_v32  ;;  %1540 = vst [vmem:[%s2537_s7 + $0xb8] sm:$0xff] %v1444_v31 }
 0x149   : > { %v745_v35 = vpop.f32.mrf.mxu0  ;;  %v994_v0 = vpop.f32.mrf.mxu1 }
 0x14a   : > { %1539 = vst [vmem:[%s2537_s7 + $0xb0] sm:$0xff] %v1443_v33  ;;  %v1445_v36 = vadd.f32 %v2528_v39, %v745_v35  ;;  %v1447_v37 = vadd.f32 %v2530_v40, %v994_v0 }
 0x14b   : > { %v747_v38 = vpop.f32.mrf.mxu0  ;;  %v996_v43 = vpop.f32.mrf.mxu1 }
 0x14c   : > { %1541 = vst [vmem:[%s2537_s7 + $0xc0] sm:$0xff] %v1445_v36  ;;  %v1446_v42 = vadd.f32 %v2532_v41, %v747_v38  ;;  %1543 = vst [vmem:[%s2537_s7 + $0xd0] sm:$0xff] %v1447_v37 }
 0x14d   : > { %v751_v44 = vpop.f32.mrf.mxu0  ;;  %v999_v46 = vpop.f32.mrf.mxu1 }
 0x14e   : > { %1542 = vst [vmem:[%s2537_s7 + $0xc8] sm:$0xff] %v1446_v42  ;;  %v1448_v45 = vadd.f32 %v2528_v39, %v751_v44  ;;  %v1450_v47 = vadd.f32 %v2530_v40, %v999_v46 }
 0x14f   : > { %v753_v48 = vpop.f32.mrf.mxu0  ;;  %v1001_v50 = vpop.f32.mrf.mxu1 }
 0x150   : > { %1544 = vst [vmem:[%s2537_s7 + $0xd8] sm:$0xff] %v1448_v45  ;;  %v1449_v49 = vadd.f32 %v2532_v41, %v753_v48  ;;  %1546 = vst [vmem:[%s2537_s7 + $0xe8] sm:$0xff] %v1450_v47 }
 0x151   : > { %v757_v51 = vpop.f32.mrf.mxu0  ;;  %v1004_v53 = vpop.f32.mrf.mxu1 }
 0x152   : > { %1545 = vst [vmem:[%s2537_s7 + $0xe0] sm:$0xff] %v1449_v49  ;;  %v1451_v52 = vadd.f32 %v2528_v39, %v757_v51  ;;  %v1453_v54 = vadd.f32 %v2530_v40, %v1004_v53 }
 0x153   : > { %v759_v55 = vpop.f32.mrf.mxu0  ;;  %v1006_v57 = vpop.f32.mrf.mxu1 }
 0x154   : > { %1547 = vst [vmem:[%s2537_s7 + $0xf0] sm:$0xff] %v1451_v52  ;;  %v1452_v56 = vadd.f32 %v2532_v41, %v759_v55  ;;  %1549 = vst [vmem:[%s2537_s7 + $0x100] sm:$0xff] %v1453_v54 }
 0x155   : > { %v763_v58 = vpop.f32.mrf.mxu0  ;;  %v1009_v60 = vpop.f32.mrf.mxu1 }
 0x156   : > { %1548 = vst [vmem:[%s2537_s7 + $0xf8] sm:$0xff] %v1452_v56  ;;  %v1454_v59 = vadd.f32 %v2528_v39, %v763_v58  ;;  %v1456_v61 = vadd.f32 %v2530_v40, %v1009_v60 }
 0x157   : > { %v765_v62 = vpop.f32.mrf.mxu0  ;;  %v1011_v1 = vpop.f32.mrf.mxu1 }
 0x158   : > { %1550 = vst [vmem:[%s2537_s7 + $0x108] sm:$0xff] %v1454_v59  ;;  %v1455_v63 = vadd.f32 %v2532_v41, %v765_v62  ;;  %1552 = vst [vmem:[%s2537_s7 + $0x118] sm:$0xff] %v1456_v61 }
 0x159   : > { %v769_v2 = vpop.f32.mrf.mxu0  ;;  %v1014_v4 = vpop.f32.mrf.mxu1 }
 0x15a   : > { %1551 = vst [vmem:[%s2537_s7 + $0x110] sm:$0xff] %v1455_v63  ;;  %v1457_v3 = vadd.f32 %v2528_v39, %v769_v2  ;;  %v1459_v5 = vadd.f32 %v2530_v40, %v1014_v4 }
 0x15b   : > { %v771_v6 = vpop.f32.mrf.mxu0  ;;  %v1016_v8 = vpop.f32.mrf.mxu1 }
 0x15c   : > { %1553 = vst [vmem:[%s2537_s7 + $0x120] sm:$0xff] %v1457_v3  ;;  %v1458_v7 = vadd.f32 %v2532_v41, %v771_v6  ;;  %1555 = vst [vmem:[%s2537_s7 + $0x130] sm:$0xff] %v1459_v5 }
 0x15d   : > { %v775_v9 = vpop.f32.mrf.mxu0  ;;  %v1019_v11 = vpop.f32.mrf.mxu1 }
 0x15e   : > { %1554 = vst [vmem:[%s2537_s7 + $0x128] sm:$0xff] %v1458_v7  ;;  %v1460_v10 = vadd.f32 %v2528_v39, %v775_v9  ;;  %v1462_v12 = vadd.f32 %v2530_v40, %v1019_v11 }
 0x15f   : > { %v777_v13 = vpop.f32.mrf.mxu0  ;;  %v1021_v15 = vpop.f32.mrf.mxu1 }
 0x160   : > { %1556 = vst [vmem:[%s2537_s7 + $0x138] sm:$0xff] %v1460_v10  ;;  %v1461_v14 = vadd.f32 %v2532_v41, %v777_v13  ;;  %1558 = vst [vmem:[%s2537_s7 + $0x148] sm:$0xff] %v1462_v12 }
 0x161   : > { %v781_v16 = vpop.f32.mrf.mxu0  ;;  %v1024_v18 = vpop.f32.mrf.mxu1 }
 0x162   : > { %1557 = vst [vmem:[%s2537_s7 + $0x140] sm:$0xff] %v1461_v14  ;;  %v1463_v17 = vadd.f32 %v2528_v39, %v781_v16  ;;  %v1465_v19 = vadd.f32 %v2530_v40, %v1024_v18 }
 0x163   : > { %v783_v20 = vpop.f32.mrf.mxu0  ;;  %v1026_v22 = vpop.f32.mrf.mxu1 }
 0x164   : > { %1559 = vst [vmem:[%s2537_s7 + $0x150] sm:$0xff] %v1463_v17  ;;  %v1464_v21 = vadd.f32 %v2532_v41, %v783_v20  ;;  %1561 = vst [vmem:[%s2537_s7 + $0x160] sm:$0xff] %v1465_v19 }
 0x165   : > { %v787_v23 = vpop.f32.mrf.mxu0  ;;  %v1029_v25 = vpop.f32.mrf.mxu1 }
 0x166   : > { %1560 = vst [vmem:[%s2537_s7 + $0x158] sm:$0xff] %v1464_v21  ;;  %v1466_v24 = vadd.f32 %v2528_v39, %v787_v23  ;;  %v1468_v26 = vadd.f32 %v2530_v40, %v1029_v25 }
 0x167   : > { %v789_v27 = vpop.f32.mrf.mxu0  ;;  %v1031_v29 = vpop.f32.mrf.mxu1 }
 0x168   : > { %1562 = vst [vmem:[%s2537_s7 + $0x168] sm:$0xff] %v1466_v24  ;;  %v1467_v28 = vadd.f32 %v2532_v41, %v789_v27  ;;  %1564 = vst [vmem:[%s2537_s7 + $0x178] sm:$0xff] %v1468_v26 }
 0x169   : > { %v793_v30 = vpop.f32.mrf.mxu0  ;;  %v1034_v32 = vpop.f32.mrf.mxu1 }
 0x16a   : > { %1563 = vst [vmem:[%s2537_s7 + $0x170] sm:$0xff] %v1467_v28  ;;  %v1469_v31 = vadd.f32 %v2528_v39, %v793_v30  ;;  %v1471_v33 = vadd.f32 %v2530_v40, %v1034_v32 }
 0x16b   : > { %v795_v34 = vpop.f32.mrf.mxu0  ;;  %v1036_v36 = vpop.f32.mrf.mxu1 }
 0x16c   : > { %1565 = vst [vmem:[%s2537_s7 + $0x180] sm:$0xff] %v1469_v31  ;;  %v1470_v35 = vadd.f32 %v2532_v41, %v795_v34  ;;  %1567 = vst [vmem:[%s2537_s7 + $0x190] sm:$0xff] %v1471_v33 }
 0x16d   : > { %v799_v0 = vpop.f32.mrf.mxu0  ;;  %v1039_v38 = vpop.f32.mrf.mxu1 }
 0x16e   : > { %1566 = vst [vmem:[%s2537_s7 + $0x188] sm:$0xff] %v1470_v35  ;;  %v1472_v37 = vadd.f32 %v2528_v39, %v799_v0  ;;  %v1474_v42 = vadd.f32 %v2530_v40, %v1039_v38 }
 0x16f   : > { %v801_v43 = vpop.f32.mrf.mxu0  ;;  %v1041_v45 = vpop.f32.mrf.mxu1 }
 0x170   : > { %1568 = vst [vmem:[%s2537_s7 + $0x198] sm:$0xff] %v1472_v37  ;;  %v1473_v44 = vadd.f32 %v2532_v41, %v801_v43  ;;  %1570 = vst [vmem:[%s2537_s7 + $0x1a8] sm:$0xff] %v1474_v42 }
 0x171   : > { %v805_v46 = vpop.f32.mrf.mxu0  ;;  %v1044_v48 = vpop.f32.mrf.mxu1 }
 0x172   : > { %1569 = vst [vmem:[%s2537_s7 + $0x1a0] sm:$0xff] %v1473_v44  ;;  %v1475_v47 = vadd.f32 %v2528_v39, %v805_v46  ;;  %v1477_v49 = vadd.f32 %v2530_v40, %v1044_v48 }
 0x173   : > { %v807_v50 = vpop.f32.mrf.mxu0  ;;  %v1046_v52 = vpop.f32.mrf.mxu1 }
 0x174   : > { %1571 = vst [vmem:[%s2537_s7 + $0x1b0] sm:$0xff] %v1475_v47  ;;  %v1476_v51 = vadd.f32 %v2532_v41, %v807_v50  ;;  %1573 = vst [vmem:[%s2537_s7 + $0x1c0] sm:$0xff] %v1477_v49 }
 0x175   : > { %v811_v53 = vpop.f32.mrf.mxu0  ;;  %v1049_v55 = vpop.f32.mrf.mxu1 }
 0x176   : > { %1572 = vst [vmem:[%s2537_s7 + $0x1b8] sm:$0xff] %v1476_v51  ;;  %v1478_v54 = vadd.f32 %v2528_v39, %v811_v53  ;;  %v1480_v56 = vadd.f32 %v2530_v40, %v1049_v55 }
 0x177   : > { %v813_v57 = vpop.f32.mrf.mxu0  ;;  %v1051_v59 = vpop.f32.mrf.mxu1 }
 0x178   : > { %1574 = vst [vmem:[%s2537_s7 + $0x1c8] sm:$0xff] %v1478_v54  ;;  %v1479_v58 = vadd.f32 %v2532_v41, %v813_v57  ;;  %1576 = vst [vmem:[%s2537_s7 + $0x1d8] sm:$0xff] %v1480_v56 }
 0x179   : > { %v817_v60 = vpop.f32.mrf.mxu0  ;;  %v1054_v62 = vpop.f32.mrf.mxu1 }
 0x17a   : > { %1575 = vst [vmem:[%s2537_s7 + $0x1d0] sm:$0xff] %v1479_v58  ;;  %v1481_v61 = vadd.f32 %v2528_v39, %v817_v60  ;;  %v1483_v63 = vadd.f32 %v2530_v40, %v1054_v62 }
 0x17b   : > { %v819_v1 = vpop.f32.mrf.mxu0  ;;  %v1056_v3 = vpop.f32.mrf.mxu1 }
 0x17c   : > { %1577 = vst [vmem:[%s2537_s7 + $0x1e0] sm:$0xff] %v1481_v61  ;;  %v1482_v2 = vadd.f32 %v2532_v41, %v819_v1  ;;  %1579 = vst [vmem:[%s2537_s7 + $0x1f0] sm:$0xff] %v1483_v63 }
 0x17d   : > { %v823_v4 = vpop.f32.mrf.mxu0  ;;  %v1059_v6 = vpop.f32.mrf.mxu1 }
 0x17e   : > { %1578 = vst [vmem:[%s2537_s7 + $0x1e8] sm:$0xff] %v1482_v2  ;;  %v1484_v5 = vadd.f32 %v2528_v39, %v823_v4  ;;  %v1486_v7 = vadd.f32 %v2530_v40, %v1059_v6 }
 0x17f   : > { %v825_v8 = vpop.f32.mrf.mxu0  ;;  %v1061_v10 = vpop.f32.mrf.mxu1 }
 0x180   : > { %1580 = vst [vmem:[%s2537_s7 + $0x1f8] sm:$0xff] %v1484_v5  ;;  %v1485_v9 = vadd.f32 %v2532_v41, %v825_v8  ;;  %1582 = vst [vmem:[%s2537_s7 + $0x208] sm:$0xff] %v1486_v7 }
 0x181   : > { %v829_v11 = vpop.f32.mrf.mxu0  ;;  %v1064_v13 = vpop.f32.mrf.mxu1 }
 0x182   : > { %1581 = vst [vmem:[%s2537_s7 + $0x200] sm:$0xff] %v1485_v9  ;;  %v1487_v12 = vadd.f32 %v2528_v39, %v829_v11  ;;  %v1489_v14 = vadd.f32 %v2530_v40, %v1064_v13 }
 0x183   : > { %v831_v15 = vpop.f32.mrf.mxu0  ;;  %v1066_v17 = vpop.f32.mrf.mxu1 }
 0x184   : > { %1583 = vst [vmem:[%s2537_s7 + $0x210] sm:$0xff] %v1487_v12  ;;  %v1488_v16 = vadd.f32 %v2532_v41, %v831_v15  ;;  %1585 = vst [vmem:[%s2537_s7 + $0x220] sm:$0xff] %v1489_v14 }
 0x185   : > { %v835_v18 = vpop.f32.mrf.mxu0  ;;  %v1069_v20 = vpop.f32.mrf.mxu1 }
 0x186   : > { %1584 = vst [vmem:[%s2537_s7 + $0x218] sm:$0xff] %v1488_v16  ;;  %v1490_v19 = vadd.f32 %v2528_v39, %v835_v18  ;;  %v1492_v21 = vadd.f32 %v2530_v40, %v1069_v20  ;;  %v1644_v20 = vld [vmem:[%s2537_s7 + $0x18] sm:$0xff] (%p2170_p9) }
 0x187   : > { %v837_v22 = vpop.f32.mrf.mxu0  ;;  %v1071_v24 = vpop.f32.mrf.mxu1  ;;  %1645 = vst [vmem:[%s2741_s9 + $0x30] sm:$0xff] (%p2170_p9), %v1644_v20 }
 0x188   : > { %1586 = vst [vmem:[%s2537_s7 + $0x228] sm:$0xff] %v1490_v19  ;;  %v1491_v23 = vadd.f32 %v2532_v41, %v837_v22  ;;  %1588 = vst [vmem:[%s2537_s7 + $0x238] sm:$0xff] %v1492_v21  ;;  %v1646_v21 = vld [vmem:[%s2537_s7 + $0x20] sm:$0xff] (%p2170_p9)  ;;  %v1648_v22 = vld [vmem:[%s2537_s7 + $0x28] sm:$0xff] (%p2170_p9) }
 0x189   : > { %v841_v25 = vpop.f32.mrf.mxu0  ;;  %v1074_v27 = vpop.f32.mrf.mxu1  ;;  %v1652_v24 = vld [vmem:[%s2537_s7 + $0x38] sm:$0xff] (%p2170_p9)  ;;  %1647 = vst [vmem:[%s2741_s9 + $0x38] sm:$0xff] (%p2170_p9), %v1646_v21  ;;  %1649 = vst [vmem:[%s2741_s9 + $0x40] sm:$0xff] (%p2170_p9), %v1648_v22 }
 0x18a   : > { %1587 = vst [vmem:[%s2537_s7 + $0x230] sm:$0xff] %v1491_v23  ;;  %v1493_v26 = vadd.f32 %v2528_v39, %v841_v25  ;;  %v1495_v28 = vadd.f32 %v2530_v40, %v1074_v27  ;;  %v1650_v23 = vld [vmem:[%s2537_s7 + $0x30] sm:$0xff] (%p2170_p9)  ;;  %v1654_v25 = vld [vmem:[%s2537_s7 + $0x40] sm:$0xff] (%p2170_p9)  ;;  %1653 = vst [vmem:[%s2741_s9 + $0x68] sm:$0xff] (%p2170_p9), %v1652_v24 }
 0x18b   : > { %v843_v29 = vpop.f32.mrf.mxu0  ;;  %v1076_v31 = vpop.f32.mrf.mxu1  ;;  %1651 = vst [vmem:[%s2741_s9 + $0x60] sm:$0xff] (%p2170_p9), %v1650_v23  ;;  %1655 = vst [vmem:[%s2741_s9 + $0x70] sm:$0xff] (%p2170_p9), %v1654_v25  ;;  %v1658_v27 = vld [vmem:[%s2537_s7 + $0x50] sm:$0xff] (%p2170_p9)  ;;  %v1774_v21 = vld [vmem:[%s2537_s7 + $0x220] sm:$0xff] (%p2170_p9) }
 0x18c   : > { %1589 = vst [vmem:[%s2537_s7 + $0x240] sm:$0xff] %v1493_v26  ;;  %v1494_v30 = vadd.f32 %v2532_v41, %v843_v29  ;;  %1591 = vst [vmem:[%s2537_s7 + $0x250] sm:$0xff] %v1495_v28  ;;  %v1656_v26 = vld [vmem:[%s2537_s7 + $0x48] sm:$0xff] (%p2170_p9)  ;;  %v1660_v28 = vld [vmem:[%s2537_s7 + $0x58] sm:$0xff] (%p2170_p9) }
 0x18d   : > { %v847_v32 = vpop.f32.mrf.mxu0  ;;  %v1079_v34 = vpop.f32.mrf.mxu1  ;;  %1657 = vst [vmem:[%s2741_s9 + $0x90] sm:$0xff] (%p2170_p9), %v1656_v26  ;;  %1659 = vst [vmem:[%s2741_s9 + $0x98] sm:$0xff] (%p2170_p9), %v1658_v27  ;;  %v1662_v29 = vld [vmem:[%s2537_s7 + $0x60] sm:$0xff] (%p2170_p9)  ;;  %v1666_v31 = vld [vmem:[%s2537_s7 + $0x70] sm:$0xff] (%p2170_p9) }
 0x18e   : > { %1590 = vst [vmem:[%s2537_s7 + $0x248] sm:$0xff] %v1494_v30  ;;  %v1496_v33 = vadd.f32 %v2528_v39, %v847_v32  ;;  %v1498_v35 = vadd.f32 %v2530_v40, %v1079_v34  ;;  %1661 = vst [vmem:[%s2741_s9 + $0xa0] sm:$0xff] (%p2170_p9), %v1660_v28  ;;  %v1664_v30 = vld [vmem:[%s2537_s7 + $0x68] sm:$0xff] (%p2170_p9)  ;;  %v1668_v32 = vld [vmem:[%s2537_s7 + $0x78] sm:$0xff] (%p2170_p9) }
 0x18f   : > { %v849_v36 = vpop.f32.mrf.mxu0  ;;  %v1081_v37 = vpop.f32.mrf.mxu1  ;;  %1663 = vst [vmem:[%s2741_s9 + $0xc0] sm:$0xff] (%p2170_p9), %v1662_v29  ;;  %1665 = vst [vmem:[%s2741_s9 + $0xc8] sm:$0xff] (%p2170_p9), %v1664_v30  ;;  %v1672_v34 = vld [vmem:[%s2537_s7 + $0x88] sm:$0xff] (%p2170_p9)  ;;  %v1772_v20 = vld [vmem:[%s2537_s7 + $0x218] sm:$0xff] (%p2170_p9) }
 0x190   : > { %1592 = vst [vmem:[%s2537_s7 + $0x258] sm:$0xff] %v1496_v33  ;;  %v1497_v0 = vadd.f32 %v2532_v41, %v849_v36  ;;  %1594 = vst [vmem:[%s2537_s7 + $0x268] sm:$0xff] %v1498_v35  ;;  %v1670_v33 = vld [vmem:[%s2537_s7 + $0x80] sm:$0xff] (%p2170_p9)  ;;  %v1674_v35 = vld [vmem:[%s2537_s7 + $0x90] sm:$0xff] (%p2170_p9) }
 0x191   : > { %v853_v38 = vpop.f32.mrf.mxu0  ;;  %v1084_v43 = vpop.f32.mrf.mxu1  ;;  %1667 = vst [vmem:[%s2741_s9 + $0xd0] sm:$0xff] (%p2170_p9), %v1666_v31  ;;  %1669 = vst [vmem:[%s2741_s9 + $0xf0] sm:$0xff] (%p2170_p9), %v1668_v32  ;;  %v1676_v36 = vld [vmem:[%s2537_s7 + $0x98] sm:$0xff] (%p2170_p9)  ;;  %v1680_v37 = vld [vmem:[%s2537_s7 + $0xa8] sm:$0xff] (%p2170_p9) }
 0x192   : > { %1593 = vst [vmem:[%s2537_s7 + $0x260] sm:$0xff] %v1497_v0  ;;  %v1499_v42 = vadd.f32 %v2528_v39, %v853_v38  ;;  %v1501_v44 = vadd.f32 %v2530_v40, %v1084_v43  ;;  %1671 = vst [vmem:[%s2741_s9 + $0xf8] sm:$0xff] (%p2170_p9), %v1670_v33  ;;  %v1678_v0 = vld [vmem:[%s2537_s7 + $0xa0] sm:$0xff] (%p2170_p9)  ;;  %v1682_v38 = vld [vmem:[%s2537_s7 + $0xb0] sm:$0xff] (%p2170_p9) }
 0x193   : > { %v855_v45 = vpop.f32.mrf.mxu0  ;;  %v1086_v47 = vpop.f32.mrf.mxu1  ;;  %1673 = vst [vmem:[%s2741_s9 + $0x100] sm:$0xff] (%p2170_p9), %v1672_v34  ;;  %1675 = vst [vmem:[%s2741_s9 + $0x120] sm:$0xff] (%p2170_p9), %v1674_v35  ;;  %v1686_v43 = vld [vmem:[%s2537_s7 + $0xc0] sm:$0xff] (%p2170_p9)  ;;  %v1776_v22 = vld [vmem:[%s2537_s7 + $0x228] sm:$0xff] (%p2170_p9) }
 0x194   : > { %1595 = vst [vmem:[%s2537_s7 + $0x270] sm:$0xff] %v1499_v42  ;;  %v1500_v46 = vadd.f32 %v2532_v41, %v855_v45  ;;  %1597 = vst [vmem:[%s2537_s7 + $0x280] sm:$0xff] %v1501_v44  ;;  %v1684_v42 = vld [vmem:[%s2537_s7 + $0xb8] sm:$0xff] (%p2170_p9)  ;;  %v1688_v44 = vld [vmem:[%s2537_s7 + $0xc8] sm:$0xff] (%p2170_p9) }
 0x195   : > { %v859_v48 = vpop.f32.mrf.mxu0  ;;  %v1089_v50 = vpop.f32.mrf.mxu1  ;;  %1677 = vst [vmem:[%s2741_s9 + $0x128] sm:$0xff] (%p2170_p9), %v1676_v36  ;;  %1679 = vst [vmem:[%s2741_s9 + $0x130] sm:$0xff] (%p2170_p9), %v1678_v0  ;;  %v1690_v45 = vld [vmem:[%s2537_s7 + $0xd0] sm:$0xff] (%p2170_p9)  ;;  %v1694_v47 = vld [vmem:[%s2537_s7 + $0xe0] sm:$0xff] (%p2170_p9) }
 0x196   : > { %1596 = vst [vmem:[%s2537_s7 + $0x278] sm:$0xff] %v1500_v46  ;;  %v1502_v49 = vadd.f32 %v2528_v39, %v859_v48  ;;  %v1504_v51 = vadd.f32 %v2530_v40, %v1089_v50  ;;  %1681 = vst [vmem:[%s2741_s9 + $0x150] sm:$0xff] (%p2170_p9), %v1680_v37  ;;  %v1692_v46 = vld [vmem:[%s2537_s7 + $0xd8] sm:$0xff] (%p2170_p9)  ;;  %v1696_v48 = vld [vmem:[%s2537_s7 + $0xe8] sm:$0xff] (%p2170_p9) }
 0x197   : > { %v861_v52 = vpop.f32.mrf.mxu0  ;;  %v1091_v54 = vpop.f32.mrf.mxu1  ;;  %1683 = vst [vmem:[%s2741_s9 + $0x158] sm:$0xff] (%p2170_p9), %v1682_v38  ;;  %1685 = vst [vmem:[%s2741_s9 + $0x160] sm:$0xff] (%p2170_p9), %v1684_v42  ;;  %v1700_v50 = vld [vmem:[%s2537_s7 + $0xf8] sm:$0xff] (%p2170_p9)  ;;  %v1778_v23 = vld [vmem:[%s2537_s7 + $0x230] sm:$0xff] (%p2170_p9) }
 0x198   : > { %1598 = vst [vmem:[%s2537_s7 + $0x288] sm:$0xff] %v1502_v49  ;;  %v1503_v53 = vadd.f32 %v2532_v41, %v861_v52  ;;  %1600 = vst [vmem:[%s2537_s7 + $0x298] sm:$0xff] %v1504_v51  ;;  %v1698_v49 = vld [vmem:[%s2537_s7 + $0xf0] sm:$0xff] (%p2170_p9)  ;;  %v1702_v51 = vld [vmem:[%s2537_s7 + $0x100] sm:$0xff] (%p2170_p9) }
 0x199   : > { %v865_v55 = vpop.f32.mrf.mxu0  ;;  %v1094_v57 = vpop.f32.mrf.mxu1  ;;  %1687 = vst [vmem:[%s2741_s9 + $0x180] sm:$0xff] (%p2170_p9), %v1686_v43  ;;  %1689 = vst [vmem:[%s2741_s9 + $0x188] sm:$0xff] (%p2170_p9), %v1688_v44  ;;  %v1704_v52 = vld [vmem:[%s2537_s7 + $0x108] sm:$0xff] (%p2170_p9)  ;;  %v1708_v54 = vld [vmem:[%s2537_s7 + $0x118] sm:$0xff] (%p2170_p9) }
 0x19a   : > { %1599 = vst [vmem:[%s2537_s7 + $0x290] sm:$0xff] %v1503_v53  ;;  %v1505_v56 = vadd.f32 %v2528_v39, %v865_v55  ;;  %v1507_v58 = vadd.f32 %v2530_v40, %v1094_v57  ;;  %1691 = vst [vmem:[%s2741_s9 + $0x190] sm:$0xff] (%p2170_p9), %v1690_v45  ;;  %v1706_v53 = vld [vmem:[%s2537_s7 + $0x110] sm:$0xff] (%p2170_p9)  ;;  %v1710_v55 = vld [vmem:[%s2537_s7 + $0x120] sm:$0xff] (%p2170_p9) }
 0x19b   : > { %v867_v59 = vpop.f32.mrf.mxu0  ;;  %v1096_v61 = vpop.f32.mrf.mxu1  ;;  %1693 = vst [vmem:[%s2741_s9 + $0x1b0] sm:$0xff] (%p2170_p9), %v1692_v46  ;;  %1695 = vst [vmem:[%s2741_s9 + $0x1b8] sm:$0xff] (%p2170_p9), %v1694_v47  ;;  %v1714_v57 = vld [vmem:[%s2537_s7 + $0x130] sm:$0xff] (%p2170_p9)  ;;  %v1780_v24 = vld [vmem:[%s2537_s7 + $0x238] sm:$0xff] (%p2170_p9) }
 0x19c   : > { %1601 = vst [vmem:[%s2537_s7 + $0x2a0] sm:$0xff] %v1505_v56  ;;  %v1506_v60 = vadd.f32 %v2532_v41, %v867_v59  ;;  %1603 = vst [vmem:[%s2537_s7 + $0x2b0] sm:$0xff] %v1507_v58  ;;  %v1712_v56 = vld [vmem:[%s2537_s7 + $0x128] sm:$0xff] (%p2170_p9)  ;;  %v1716_v58 = vld [vmem:[%s2537_s7 + $0x138] sm:$0xff] (%p2170_p9) }
 0x19d   : > { %v871_v62 = vpop.f32.mrf.mxu0  ;;  %v1099_v1 = vpop.f32.mrf.mxu1  ;;  %1697 = vst [vmem:[%s2741_s9 + $0x1c0] sm:$0xff] (%p2170_p9), %v1696_v48  ;;  %1699 = vst [vmem:[%s2741_s9 + $0x1e0] sm:$0xff] (%p2170_p9), %v1698_v49  ;;  %v1718_v59 = vld [vmem:[%s2537_s7 + $0x140] sm:$0xff] (%p2170_p9)  ;;  %v1722_v61 = vld [vmem:[%s2537_s7 + $0x150] sm:$0xff] (%p2170_p9) }
 0x19e   : > { %1602 = vst [vmem:[%s2537_s7 + $0x2a8] sm:$0xff] %v1506_v60  ;;  %v1508_v63 = vadd.f32 %v2528_v39, %v871_v62  ;;  %v1510_v2 = vadd.f32 %v2530_v40, %v1099_v1  ;;  %1701 = vst [vmem:[%s2741_s9 + $0x1e8] sm:$0xff] (%p2170_p9), %v1700_v50  ;;  %v1720_v60 = vld [vmem:[%s2537_s7 + $0x148] sm:$0xff] (%p2170_p9)  ;;  %v1724_v62 = vld [vmem:[%s2537_s7 + $0x158] sm:$0xff] (%p2170_p9) }
 0x19f   : > { %v873_v3 = vpop.f32.mrf.mxu0  ;;  %v1101_v5 = vpop.f32.mrf.mxu1  ;;  %1703 = vst [vmem:[%s2741_s9 + $0x1f0] sm:$0xff] (%p2170_p9), %v1702_v51  ;;  %1705 = vst [vmem:[%s2741_s9 + $0x210] sm:$0xff] (%p2170_p9), %v1704_v52  ;;  %v1728_v1 = vld [vmem:[%s2537_s7 + $0x168] sm:$0xff] (%p2170_p9)  ;;  %v1782_v25 = vld [vmem:[%s2537_s7 + $0x240] sm:$0xff] (%p2170_p9) }
 0x1a0   : > { %1604 = vst [vmem:[%s2537_s7 + $0x2b8] sm:$0xff] %v1508_v63  ;;  %v1509_v4 = vadd.f32 %v2532_v41, %v873_v3  ;;  %1606 = vst [vmem:[%s2537_s7 + $0x2c8] sm:$0xff] %v1510_v2  ;;  %v1726_v63 = vld [vmem:[%s2537_s7 + $0x160] sm:$0xff] (%p2170_p9)  ;;  %v1730_v2 = vld [vmem:[%s2537_s7 + $0x170] sm:$0xff] (%p2170_p9) }
 0x1a1   : > { %v877_v6 = vpop.f32.mrf.mxu0  ;;  %v1104_v8 = vpop.f32.mrf.mxu1  ;;  %1707 = vst [vmem:[%s2741_s9 + $0x218] sm:$0xff] (%p2170_p9), %v1706_v53  ;;  %1709 = vst [vmem:[%s2741_s9 + $0x220] sm:$0xff] (%p2170_p9), %v1708_v54  ;;  %v1732_v3 = vld [vmem:[%s2537_s7 + $0x178] sm:$0xff] (%p2170_p9)  ;;  %v1736_v5 = vld [vmem:[%s2537_s7 + $0x188] sm:$0xff] (%p2170_p9) }
 0x1a2   : > { %1605 = vst [vmem:[%s2537_s7 + $0x2c0] sm:$0xff] %v1509_v4  ;;  %v1511_v7 = vadd.f32 %v2528_v39, %v877_v6  ;;  %v1513_v9 = vadd.f32 %v2530_v40, %v1104_v8  ;;  %1711 = vst [vmem:[%s2741_s9 + $0x240] sm:$0xff] (%p2170_p9), %v1710_v55  ;;  %v1734_v4 = vld [vmem:[%s2537_s7 + $0x180] sm:$0xff] (%p2170_p9)  ;;  %v1738_v6 = vld [vmem:[%s2537_s7 + $0x190] sm:$0xff] (%p2170_p9) }
 0x1a3   : > { %v879_v10 = vpop.f32.mrf.mxu0  ;;  %v1106_v12 = vpop.f32.mrf.mxu1  ;;  %1713 = vst [vmem:[%s2741_s9 + $0x248] sm:$0xff] (%p2170_p9), %v1712_v56  ;;  %1715 = vst [vmem:[%s2741_s9 + $0x250] sm:$0xff] (%p2170_p9), %v1714_v57  ;;  %v1742_v8 = vld [vmem:[%s2537_s7 + $0x1a0] sm:$0xff] (%p2170_p9)  ;;  %v1784_v26 = vld [vmem:[%s2537_s7 + $0x248] sm:$0xff] (%p2170_p9) }
 0x1a4   : > { %1607 = vst [vmem:[%s2537_s7 + $0x2d0] sm:$0xff] %v1511_v7  ;;  %v1512_v11 = vadd.f32 %v2532_v41, %v879_v10  ;;  %1609 = vst [vmem:[%s2537_s7 + $0x2e0] sm:$0xff] %v1513_v9  ;;  %v1740_v7 = vld [vmem:[%s2537_s7 + $0x198] sm:$0xff] (%p2170_p9)  ;;  %v1744_v9 = vld [vmem:[%s2537_s7 + $0x1a8] sm:$0xff] (%p2170_p9) }
 0x1a5   : > { %v883_v13 = vpop.f32.mrf.mxu0  ;;  %v1109_v15 = vpop.f32.mrf.mxu1  ;;  %1717 = vst [vmem:[%s2741_s9 + $0x270] sm:$0xff] (%p2170_p9), %v1716_v58  ;;  %1719 = vst [vmem:[%s2741_s9 + $0x278] sm:$0xff] (%p2170_p9), %v1718_v59  ;;  %v1746_v10 = vld [vmem:[%s2537_s7 + $0x1b0] sm:$0xff] (%p2170_p9)  ;;  %v1750_v12 = vld [vmem:[%s2537_s7 + $0x1c0] sm:$0xff] (%p2170_p9) }
 0x1a6   : > { %1608 = vst [vmem:[%s2537_s7 + $0x2d8] sm:$0xff] %v1512_v11  ;;  %v1514_v14 = vadd.f32 %v2528_v39, %v883_v13  ;;  %v1516_v16 = vadd.f32 %v2530_v40, %v1109_v15  ;;  %1619 = sbr.rel (!%p2170_p9) target bundleno = 453 (0x1c5), region = 48  ;;  %v1638_v39 = vld [vmem:[%s2537_s7] sm:$0xff] (%p2170_p9)  ;;  %v1640_v40 = vld [vmem:[%s2537_s7 + $0x8] sm:$0xff] (%p2170_p9)  ;;  %1721 = vst [vmem:[%s2741_s9 + $0x280] sm:$0xff] (%p2170_p9), %v1720_v60 }
 0x1a7   : > { %v885_v17 = vpop.f32.mrf.mxu0  ;;  %v1111_v19 = vpop.f32.mrf.mxu1  ;;  %1639 = vst [vmem:[%s2741_s9] sm:$0xff] (%p2170_p9), %v1638_v39  ;;  %1641 = vst [vmem:[%s2741_s9 + $0x8] sm:$0xff] (%p2170_p9), %v1640_v40  ;;  %v1748_v11 = vld [vmem:[%s2537_s7 + $0x1b8] sm:$0xff] (%p2170_p9)  ;;  %v1752_v13 = vld [vmem:[%s2537_s7 + $0x1c8] sm:$0xff] (%p2170_p9) }
 0x1a8   : > { %1610 = vst [vmem:[%s2537_s7 + $0x2e8] sm:$0xff] %v1514_v14  ;;  %v1515_v18 = vadd.f32 %v2532_v41, %v885_v17  ;;  %1612 = vst [vmem:[%s2537_s7 + $0x2f8] sm:$0xff] %v1516_v16  ;;  %v1642_v41 = vld [vmem:[%s2537_s7 + $0x10] sm:$0xff] (%p2170_p9)  ;;  %v1756_v15 = vld [vmem:[%s2537_s7 + $0x1d8] sm:$0xff] (%p2170_p9) }
 0x1a9   : > { %1643 = vst [vmem:[%s2741_s9 + $0x10] sm:$0xff] (%p2170_p9), %v1642_v41  ;;  %1723 = vst [vmem:[%s2741_s9 + $0x2a0] sm:$0xff] (%p2170_p9), %v1722_v61  ;;  %v1754_v14 = vld [vmem:[%s2537_s7 + $0x1d0] sm:$0xff] (%p2170_p9)  ;;  %v1758_v16 = vld [vmem:[%s2537_s7 + $0x1e0] sm:$0xff] (%p2170_p9) }
 0x1aa   : > { %1611 = vst [vmem:[%s2537_s7 + $0x2f0] sm:$0xff] %v1515_v18  ;;  %1725 = vst [vmem:[%s2741_s9 + $0x2a8] sm:$0xff] (%p2170_p9), %v1724_v62  ;;  %v1760_v17 = vld [vmem:[%s2537_s7 + $0x1e8] sm:$0xff] (%p2170_p9)  ;;  %v1762_v18 = vld [vmem:[%s2537_s7 + $0x1f0] sm:$0xff] (%p2170_p9) }
 0x1ab   : > { %1727 = vst [vmem:[%s2741_s9 + $0x2b0] sm:$0xff] %v1726_v63  ;;  %1729 = vst [vmem:[%s2741_s9 + $0x2d0] sm:$0xff] %v1728_v1  ;;  %v1764_v19 = vld [vmem:[%s2537_s7 + $0x1f8] sm:$0xff]  ;;  %v1766_v39 = vld [vmem:[%s2537_s7 + $0x200] sm:$0xff] }
 0x1ac   : > { %1731 = vst [vmem:[%s2741_s9 + $0x2d8] sm:$0xff] %v1730_v2  ;;  %1733 = vst [vmem:[%s2741_s9 + $0x2e0] sm:$0xff] %v1732_v3  ;;  %v1768_v40 = vld [vmem:[%s2537_s7 + $0x208] sm:$0xff]  ;;  %v1770_v41 = vld [vmem:[%s2537_s7 + $0x210] sm:$0xff] }
 0x1ad   : > { %1735 = vst [vmem:[%s2741_s9 + $0x300] sm:$0xff] %v1734_v4  ;;  %1737 = vst [vmem:[%s2741_s9 + $0x308] sm:$0xff] %v1736_v5  ;;  %v1786_v27 = vld [vmem:[%s2537_s7 + $0x250] sm:$0xff]  ;;  %v1788_v28 = vld [vmem:[%s2537_s7 + $0x258] sm:$0xff] }
 0x1ae   : > { %1739 = vst [vmem:[%s2741_s9 + $0x310] sm:$0xff] %v1738_v6  ;;  %1741 = vst [vmem:[%s2741_s9 + $0x330] sm:$0xff] %v1740_v7  ;;  %v1790_v29 = vld [vmem:[%s2537_s7 + $0x260] sm:$0xff]  ;;  %v1792_v30 = vld [vmem:[%s2537_s7 + $0x268] sm:$0xff] }
 0x1af   : > { %1743 = vst [vmem:[%s2741_s9 + $0x338] sm:$0xff] %v1742_v8  ;;  %1745 = vst [vmem:[%s2741_s9 + $0x340] sm:$0xff] %v1744_v9  ;;  %v1794_v31 = vld [vmem:[%s2537_s7 + $0x270] sm:$0xff]  ;;  %v1796_v32 = vld [vmem:[%s2537_s7 + $0x278] sm:$0xff] }
 0x1b0   : > { %1747 = vst [vmem:[%s2741_s9 + $0x360] sm:$0xff] %v1746_v10  ;;  %1749 = vst [vmem:[%s2741_s9 + $0x368] sm:$0xff] %v1748_v11  ;;  %v1798_v33 = vld [vmem:[%s2537_s7 + $0x280] sm:$0xff]  ;;  %v1800_v34 = vld [vmem:[%s2537_s7 + $0x288] sm:$0xff] }
 0x1b1   : > { %1751 = vst [vmem:[%s2741_s9 + $0x370] sm:$0xff] %v1750_v12  ;;  %1753 = vst [vmem:[%s2741_s9 + $0x390] sm:$0xff] %v1752_v13  ;;  %v1802_v35 = vld [vmem:[%s2537_s7 + $0x290] sm:$0xff]  ;;  %v1804_v36 = vld [vmem:[%s2537_s7 + $0x298] sm:$0xff] }
 0x1b2   : > { %1755 = vst [vmem:[%s2741_s9 + $0x398] sm:$0xff] %v1754_v14  ;;  %1757 = vst [vmem:[%s2741_s9 + $0x3a0] sm:$0xff] %v1756_v15  ;;  %v1806_v0 = vld [vmem:[%s2537_s7 + $0x2a0] sm:$0xff]  ;;  %v1808_v37 = vld [vmem:[%s2537_s7 + $0x2a8] sm:$0xff] }
 0x1b3   : > { %1759 = vst [vmem:[%s2741_s9 + $0x3c0] sm:$0xff] %v1758_v16  ;;  %1761 = vst [vmem:[%s2741_s9 + $0x3c8] sm:$0xff] %v1760_v17  ;;  %v1810_v38 = vld [vmem:[%s2537_s7 + $0x2b0] sm:$0xff]  ;;  %v1812_v42 = vld [vmem:[%s2537_s7 + $0x2b8] sm:$0xff] }
 0x1b4   : > { %1763 = vst [vmem:[%s2741_s9 + $0x3d0] sm:$0xff] %v1762_v18  ;;  %1765 = vst [vmem:[%s2741_s9 + $0x3f0] sm:$0xff] %v1764_v19  ;;  %v1814_v43 = vld [vmem:[%s2537_s7 + $0x2c0] sm:$0xff]  ;;  %v1816_v44 = vld [vmem:[%s2537_s7 + $0x2c8] sm:$0xff] }
 0x1b5   : > { %1767 = vst [vmem:[%s2741_s9 + $0x3f8] sm:$0xff] %v1766_v39  ;;  %1769 = vst [vmem:[%s2741_s9 + $0x400] sm:$0xff] %v1768_v40  ;;  %v1818_v45 = vld [vmem:[%s2537_s7 + $0x2d0] sm:$0xff]  ;;  %v1820_v46 = vld [vmem:[%s2537_s7 + $0x2d8] sm:$0xff] }
 0x1b6   : > { %1771 = vst [vmem:[%s2741_s9 + $0x420] sm:$0xff] %v1770_v41  ;;  %1773 = vst [vmem:[%s2741_s9 + $0x428] sm:$0xff] %v1772_v20  ;;  %v1822_v47 = vld [vmem:[%s2537_s7 + $0x2e0] sm:$0xff]  ;;  %v1824_v48 = vld [vmem:[%s2537_s7 + $0x2e8] sm:$0xff] }
 0x1b7   : > { %1775 = vst [vmem:[%s2741_s9 + $0x430] sm:$0xff] %v1774_v21  ;;  %1777 = vst [vmem:[%s2741_s9 + $0x450] sm:$0xff] %v1776_v22  ;;  %v1826_v49 = vld [vmem:[%s2537_s7 + $0x2f0] sm:$0xff]  ;;  %v1828_v50 = vld [vmem:[%s2537_s7 + $0x2f8] sm:$0xff] }
 0x1b8   : > { %1779 = vst [vmem:[%s2741_s9 + $0x458] sm:$0xff] %v1778_v23  ;;  %1781 = vst [vmem:[%s2741_s9 + $0x460] sm:$0xff] %v1780_v24 }
 0x1b9   : > { %1783 = vst [vmem:[%s2741_s9 + $0x480] sm:$0xff] %v1782_v25  ;;  %1785 = vst [vmem:[%s2741_s9 + $0x488] sm:$0xff] %v1784_v26 }
 0x1ba   : > { %1787 = vst [vmem:[%s2741_s9 + $0x490] sm:$0xff] %v1786_v27  ;;  %1789 = vst [vmem:[%s2741_s9 + $0x4b0] sm:$0xff] %v1788_v28 }
 0x1bb   : > { %1791 = vst [vmem:[%s2741_s9 + $0x4b8] sm:$0xff] %v1790_v29  ;;  %1793 = vst [vmem:[%s2741_s9 + $0x4c0] sm:$0xff] %v1792_v30 }
 0x1bc   : > { %1795 = vst [vmem:[%s2741_s9 + $0x4e0] sm:$0xff] %v1794_v31  ;;  %1797 = vst [vmem:[%s2741_s9 + $0x4e8] sm:$0xff] %v1796_v32 }
 0x1bd   : > { %1799 = vst [vmem:[%s2741_s9 + $0x4f0] sm:$0xff] %v1798_v33  ;;  %1801 = vst [vmem:[%s2741_s9 + $0x510] sm:$0xff] %v1800_v34 }
 0x1be   : > { %1803 = vst [vmem:[%s2741_s9 + $0x518] sm:$0xff] %v1802_v35  ;;  %1805 = vst [vmem:[%s2741_s9 + $0x520] sm:$0xff] %v1804_v36 }
 0x1bf   : > { %1807 = vst [vmem:[%s2741_s9 + $0x540] sm:$0xff] %v1806_v0  ;;  %1809 = vst [vmem:[%s2741_s9 + $0x548] sm:$0xff] %v1808_v37 }
 0x1c0   : > { %1811 = vst [vmem:[%s2741_s9 + $0x550] sm:$0xff] %v1810_v38  ;;  %1813 = vst [vmem:[%s2741_s9 + $0x570] sm:$0xff] %v1812_v42 }
 0x1c1   : > { %1815 = vst [vmem:[%s2741_s9 + $0x578] sm:$0xff] %v1814_v43  ;;  %1817 = vst [vmem:[%s2741_s9 + $0x580] sm:$0xff] %v1816_v44 }
 0x1c2   : > { %1819 = vst [vmem:[%s2741_s9 + $0x5a0] sm:$0xff] %v1818_v45  ;;  %1821 = vst [vmem:[%s2741_s9 + $0x5a8] sm:$0xff] %v1820_v46 }
 0x1c3   : > { %1823 = vst [vmem:[%s2741_s9 + $0x5b0] sm:$0xff] %v1822_v47  ;;  %1825 = vst [vmem:[%s2741_s9 + $0x5d0] sm:$0xff] %v1824_v48 }
 0x1c4   : > { %1827 = vst [vmem:[%s2741_s9 + $0x5d8] sm:$0xff] %v1826_v49  ;;  %1829 = vst [vmem:[%s2741_s9 + $0x5e0] sm:$0xff] %v1828_v50 }
 0x1c5 PF: > { %s16_s17 = sadd.s32 1, %s2093_s17   ;;  %s2955_s12 = smov %s2077_s13 }
 0x1c6   : > { %p13_p9 = scmp.ge.s32.totalorder %s16_s17, 4   ;;  %s2956_s13 = smov %s2081_s14 }
 0x1c7   : > { %s2957_s14 = smov %s2168_s24  ;;  %s2958_s15 = smov %s2089_s16 }
 0x1c8   : > { %s2959_s16 = smov %s2961_s19  ;;  %15 = sbr.rel (!%p13_p9) target bundleno = 4 (0x4), region = 109 }
 0x1cd   :  { %1845 = vsyncpa [#allocation4], 1 }
 0x1ce   :  { %1847 = vsyncpa [#allocation4 + $0x1], 1 }

// kernel: attention_forward.5
= control target key start
LH: loop header
LB: loop body
LE: loop exit
PB: predicated region body
PF: predicated region fallthrough
CT: control target
= control target key end

     0   :  { %s1601_s1 = inlined_call_operand.vmem [shape: f32[256,256], index: 1, kind: input, shape index: {}]   ;;  %s1602_s0 = inlined_call_operand.vmem [shape: f32[256,256], index: 0, kind: input, shape index: {}]   ;;  %s1603_s2 = inlined_call_operand.vmem [shape: f32[1,256], index: 2, kind: input, shape index: {}]   ;;  %s1604_s3 = inlined_call_operand.vmem [shape: f32[256,256], index: 3, kind: output, shape index: {}]  }
   0x1   :  { %v241_v0 = vld [vmem:[%s1601_s1 + $0xf8] sm:$0xff]  ;;  %v240_v1 = vld [vmem:[%s1601_s1 + $0xf0] sm:$0xff]  ;;  %v239_v2 = vld [vmem:[%s1601_s1 + $0xe8] sm:$0xff] }
   0x2   :  { %274 = vmatprep.subr.mxu0 %v241_v0  ;;  %870 = vmatprep.subr.mxu1 %v241_v0  ;;  %v238_v3 = vld [vmem:[%s1601_s1 + $0xe0] sm:$0xff]  ;;  %v237_v4 = vld [vmem:[%s1601_s1 + $0xd8] sm:$0xff]  ;;  %v236_v5 = vld [vmem:[%s1601_s1 + $0xd0] sm:$0xff] }
   0x3   :  { %275 = vmatpush1.msra.mxu0 %v240_v1  ;;  %902 = vmatpush1.msra.mxu1 %v240_v1  ;;  %v235_v6 = vld [vmem:[%s1601_s1 + $0xc8] sm:$0xff]  ;;  %v234_v7 = vld [vmem:[%s1601_s1 + $0xc0] sm:$0xff]  ;;  %v233_v8 = vld [vmem:[%s1601_s1 + $0xb8] sm:$0xff] }
   0x4   :  { %276 = vmatprep.subr.mxu0 %v239_v2  ;;  %871 = vmatprep.subr.mxu1 %v239_v2  ;;  %v232_v9 = vld [vmem:[%s1601_s1 + $0xb0] sm:$0xff]  ;;  %v231_v10 = vld [vmem:[%s1601_s1 + $0xa8] sm:$0xff]  ;;  %v230_v11 = vld [vmem:[%s1601_s1 + $0xa0] sm:$0xff] }
   0x5   :  { %277 = vmatpush1.msra.mxu0 %v238_v3  ;;  %903 = vmatpush1.msra.mxu1 %v238_v3  ;;  %v229_v12 = vld [vmem:[%s1601_s1 + $0x98] sm:$0xff]  ;;  %v228_v13 = vld [vmem:[%s1601_s1 + $0x90] sm:$0xff]  ;;  %v227_v14 = vld [vmem:[%s1601_s1 + $0x88] sm:$0xff] }
   0x6   :  { %278 = vmatprep.subr.mxu0 %v237_v4  ;;  %872 = vmatprep.subr.mxu1 %v237_v4  ;;  %v226_v15 = vld [vmem:[%s1601_s1 + $0x80] sm:$0xff]  ;;  %v225_v16 = vld [vmem:[%s1601_s1 + $0x78] sm:$0xff]  ;;  %v224_v17 = vld [vmem:[%s1601_s1 + $0x70] sm:$0xff] }
   0x7   :  { %279 = vmatpush1.msra.mxu0 %v236_v5  ;;  %904 = vmatpush1.msra.mxu1 %v236_v5  ;;  %v223_v18 = vld [vmem:[%s1601_s1 + $0x68] sm:$0xff]  ;;  %v222_v19 = vld [vmem:[%s1601_s1 + $0x60] sm:$0xff]  ;;  %v221_v20 = vld [vmem:[%s1601_s1 + $0x58] sm:$0xff] }
   0x8   :  { %280 = vmatprep.subr.mxu0 %v235_v6  ;;  %873 = vmatprep.subr.mxu1 %v235_v6  ;;  %v220_v21 = vld [vmem:[%s1601_s1 + $0x50] sm:$0xff]  ;;  %v219_v22 = vld [vmem:[%s1601_s1 + $0x48] sm:$0xff]  ;;  %v218_v23 = vld [vmem:[%s1601_s1 + $0x40] sm:$0xff] }
   0x9   :  { %281 = vmatpush1.msra.mxu0 %v234_v7  ;;  %905 = vmatpush1.msra.mxu1 %v234_v7  ;;  %v217_v24 = vld [vmem:[%s1601_s1 + $0x38] sm:$0xff]  ;;  %v216_v25 = vld [vmem:[%s1601_s1 + $0x30] sm:$0xff]  ;;  %v215_v26 = vld [vmem:[%s1601_s1 + $0x28] sm:$0xff] }
   0xa   :  { %282 = vmatprep.subr.mxu0 %v233_v8  ;;  %874 = vmatprep.subr.mxu1 %v233_v8  ;;  %v214_v27 = vld [vmem:[%s1601_s1 + $0x20] sm:$0xff]  ;;  %v213_v28 = vld [vmem:[%s1601_s1 + $0x18] sm:$0xff]  ;;  %v212_v29 = vld [vmem:[%s1601_s1 + $0x10] sm:$0xff] }
   0xb   :  { %283 = vmatpush1.msra.mxu0 %v232_v9  ;;  %906 = vmatpush1.msra.mxu1 %v232_v9  ;;  %v211_v30 = vld [vmem:[%s1601_s1 + $0x8] sm:$0xff]  ;;  %v210_v31 = vld [vmem:[%s1601_s1] sm:$0xff]  ;;  %v273_v32 = vld [vmem:[%s1601_s1 + $0x1f8] sm:$0xff] }
   0xc   :  { %284 = vmatprep.subr.mxu0 %v231_v10  ;;  %875 = vmatprep.subr.mxu1 %v231_v10  ;;  %v272_v33 = vld [vmem:[%s1601_s1 + $0x1f0] sm:$0xff]  ;;  %v271_v34 = vld [vmem:[%s1601_s1 + $0x1e8] sm:$0xff]  ;;  %v270_v35 = vld [vmem:[%s1601_s1 + $0x1e0] sm:$0xff] }
   0xd   :  { %285 = vmatpush1.msra.mxu0 %v230_v11  ;;  %907 = vmatpush1.msra.mxu1 %v230_v11  ;;  %v269_v36 = vld [vmem:[%s1601_s1 + $0x1d8] sm:$0xff]  ;;  %v268_v37 = vld [vmem:[%s1601_s1 + $0x1d0] sm:$0xff]  ;;  %v267_v38 = vld [vmem:[%s1601_s1 + $0x1c8] sm:$0xff] }
   0xe   :  { %286 = vmatprep.subr.mxu0 %v229_v12  ;;  %876 = vmatprep.subr.mxu1 %v229_v12  ;;  %v266_v39 = vld [vmem:[%s1601_s1 + $0x1c0] sm:$0xff]  ;;  %v265_v40 = vld [vmem:[%s1601_s1 + $0x1b8] sm:$0xff]  ;;  %v264_v41 = vld [vmem:[%s1601_s1 + $0x1b0] sm:$0xff] }
   0xf   :  { %287 = vmatpush1.msra.mxu0 %v228_v13  ;;  %908 = vmatpush1.msra.mxu1 %v228_v13  ;;  %v263_v42 = vld [vmem:[%s1601_s1 + $0x1a8] sm:$0xff]  ;;  %v262_v43 = vld [vmem:[%s1601_s1 + $0x1a0] sm:$0xff]  ;;  %v261_v44 = vld [vmem:[%s1601_s1 + $0x198] sm:$0xff] }
  0x10   :  { %288 = vmatprep.subr.mxu0 %v227_v14  ;;  %877 = vmatprep.subr.mxu1 %v227_v14  ;;  %v260_v45 = vld [vmem:[%s1601_s1 + $0x190] sm:$0xff]  ;;  %v259_v46 = vld [vmem:[%s1601_s1 + $0x188] sm:$0xff]  ;;  %v258_v47 = vld [vmem:[%s1601_s1 + $0x180] sm:$0xff] }
  0x11   :  { %289 = vmatpush1.msra.mxu0 %v226_v15  ;;  %909 = vmatpush1.msra.mxu1 %v226_v15  ;;  %v257_v48 = vld [vmem:[%s1601_s1 + $0x178] sm:$0xff]  ;;  %v256_v49 = vld [vmem:[%s1601_s1 + $0x170] sm:$0xff]  ;;  %v255_v50 = vld [vmem:[%s1601_s1 + $0x168] sm:$0xff] }
  0x12   :  { %290 = vmatprep.subr.mxu0 %v225_v16  ;;  %878 = vmatprep.subr.mxu1 %v225_v16  ;;  %v254_v51 = vld [vmem:[%s1601_s1 + $0x160] sm:$0xff]  ;;  %v253_v52 = vld [vmem:[%s1601_s1 + $0x158] sm:$0xff]  ;;  %v252_v53 = vld [vmem:[%s1601_s1 + $0x150] sm:$0xff] }
  0x13   :  { %291 = vmatpush1.msra.mxu0 %v224_v17  ;;  %910 = vmatpush1.msra.mxu1 %v224_v17  ;;  %v251_v54 = vld [vmem:[%s1601_s1 + $0x148] sm:$0xff]  ;;  %v250_v55 = vld [vmem:[%s1601_s1 + $0x140] sm:$0xff]  ;;  %v249_v56 = vld [vmem:[%s1601_s1 + $0x138] sm:$0xff] }
  0x14   :  { %292 = vmatprep.subr.mxu0 %v223_v18  ;;  %879 = vmatprep.subr.mxu1 %v223_v18  ;;  %v248_v57 = vld [vmem:[%s1601_s1 + $0x130] sm:$0xff]  ;;  %v247_v58 = vld [vmem:[%s1601_s1 + $0x128] sm:$0xff]  ;;  %v246_v59 = vld [vmem:[%s1601_s1 + $0x120] sm:$0xff] }
  0x15   :  { %293 = vmatpush1.msra.mxu0 %v222_v19  ;;  %911 = vmatpush1.msra.mxu1 %v222_v19  ;;  %v245_v60 = vld [vmem:[%s1601_s1 + $0x118] sm:$0xff]  ;;  %v244_v61 = vld [vmem:[%s1601_s1 + $0x110] sm:$0xff]  ;;  %v243_v62 = vld [vmem:[%s1601_s1 + $0x108] sm:$0xff] }
  0x16   :  { %294 = vmatprep.subr.mxu0 %v221_v20  ;;  %880 = vmatprep.subr.mxu1 %v221_v20  ;;  %v242_v63 = vld [vmem:[%s1601_s1 + $0x100] sm:$0xff]  ;;  %v147_v0 = vld [vmem:[%s1602_s0 + $0x8] sm:$0xff]  ;;  %v149_v4 = vld [vmem:[%s1602_s0 + $0x18] sm:$0xff] }
  0x17   :  { %295 = vmatpush1.msra.mxu0 %v220_v21  ;;  %912 = vmatpush1.msra.mxu1 %v220_v21  ;;  %v179_v1 = vld [vmem:[%s1602_s0 + $0x108] sm:$0xff]  ;;  %v146_v2 = vld [vmem:[%s1602_s0] sm:$0xff]  ;;  %v181_v5 = vld [vmem:[%s1602_s0 + $0x118] sm:$0xff] }
  0x18   :  { %296 = vmatprep.subr.mxu0 %v219_v22  ;;  %881 = vmatprep.subr.mxu1 %v219_v22  ;;  %v178_v3 = vld [vmem:[%s1602_s0 + $0x100] sm:$0xff]  ;;  %v148_v6 = vld [vmem:[%s1602_s0 + $0x10] sm:$0xff]  ;;  %v151_v8 = vld [vmem:[%s1602_s0 + $0x28] sm:$0xff] }
  0x19   :  { %297 = vmatpush1.msra.mxu0 %v218_v23  ;;  %913 = vmatpush1.msra.mxu1 %v218_v23  ;;  %v180_v7 = vld [vmem:[%s1602_s0 + $0x110] sm:$0xff]  ;;  %v183_v9 = vld [vmem:[%s1602_s0 + $0x128] sm:$0xff]  ;;  %v150_v10 = vld [vmem:[%s1602_s0 + $0x20] sm:$0xff] }
  0x1a   :  { %298 = vmatprep.subr.mxu0 %v217_v24  ;;  %882 = vmatprep.subr.mxu1 %v217_v24  ;;  %v182_v11 = vld [vmem:[%s1602_s0 + $0x120] sm:$0xff]  ;;  %v153_v12 = vld [vmem:[%s1602_s0 + $0x38] sm:$0xff]  ;;  %v152_v14 = vld [vmem:[%s1602_s0 + $0x30] sm:$0xff] }
  0x1b   :  { %299 = vmatpush1.msra.mxu0 %v216_v25  ;;  %914 = vmatpush1.msra.mxu1 %v216_v25  ;;  %v185_v13 = vld [vmem:[%s1602_s0 + $0x138] sm:$0xff]  ;;  %v184_v15 = vld [vmem:[%s1602_s0 + $0x130] sm:$0xff]  ;;  %v155_v16 = vld [vmem:[%s1602_s0 + $0x48] sm:$0xff] }
  0x1c   :  { %300 = vmatprep.subr.mxu0 %v215_v26  ;;  %883 = vmatprep.subr.mxu1 %v215_v26  ;;  %v187_v17 = vld [vmem:[%s1602_s0 + $0x148] sm:$0xff]  ;;  %v154_v18 = vld [vmem:[%s1602_s0 + $0x40] sm:$0xff]  ;;  %v157_v20 = vld [vmem:[%s1602_s0 + $0x58] sm:$0xff] }
  0x1d   :  { %301 = vmatpush1.msra.mxu0 %v214_v27  ;;  %915 = vmatpush1.msra.mxu1 %v214_v27  ;;  %v186_v19 = vld [vmem:[%s1602_s0 + $0x140] sm:$0xff]  ;;  %v189_v21 = vld [vmem:[%s1602_s0 + $0x158] sm:$0xff]  ;;  %v156_v22 = vld [vmem:[%s1602_s0 + $0x50] sm:$0xff] }
  0x1e   :  { %302 = vmatprep.subr.mxu0 %v213_v28  ;;  %884 = vmatprep.subr.mxu1 %v213_v28  ;;  %v188_v23 = vld [vmem:[%s1602_s0 + $0x150] sm:$0xff]  ;;  %v159_v24 = vld [vmem:[%s1602_s0 + $0x68] sm:$0xff]  ;;  %v158_v26 = vld [vmem:[%s1602_s0 + $0x60] sm:$0xff] }
  0x1f   :  { %303 = vmatpush1.msra.mxu0 %v212_v29  ;;  %916 = vmatpush1.msra.mxu1 %v212_v29  ;;  %v191_v25 = vld [vmem:[%s1602_s0 + $0x168] sm:$0xff]  ;;  %v190_v27 = vld [vmem:[%s1602_s0 + $0x160] sm:$0xff]  ;;  %v161_v28 = vld [vmem:[%s1602_s0 + $0x78] sm:$0xff] }
  0x20   :  { %304 = vmatprep.subr.mxu0 %v211_v30  ;;  %885 = vmatprep.subr.mxu1 %v211_v30  ;;  %v193_v29 = vld [vmem:[%s1602_s0 + $0x178] sm:$0xff]  ;;  %v160_v30 = vld [vmem:[%s1602_s0 + $0x70] sm:$0xff] }
  0x21   :  { %305 = vmatpush1.msra.mxu0 %v210_v31  ;;  %917 = vmatpush1.msra.mxu1 %v210_v31  ;;  %v192_v31 = vld [vmem:[%s1602_s0 + $0x170] sm:$0xff] }
  0x22   :  { %306 = vmatprep.subr.mxu0 %v273_v32  ;;  %886 = vmatprep.subr.mxu1 %v273_v32  ;;  %v163_v32 = vld [vmem:[%s1602_s0 + $0x88] sm:$0xff] }
  0x23   :  { %307 = vmatpush2.msra.mxu0 %v272_v33  ;;  %918 = vmatpush2.msra.mxu1 %v272_v33  ;;  %v195_v33 = vld [vmem:[%s1602_s0 + $0x188] sm:$0xff] }
  0x24   :  { %308 = vmatprep.subr.mxu0 %v271_v34  ;;  %887 = vmatprep.subr.mxu1 %v271_v34  ;;  %v162_v34 = vld [vmem:[%s1602_s0 + $0x80] sm:$0xff] }
  0x25   :  { %309 = vmatpush2.msra.mxu0 %v270_v35  ;;  %919 = vmatpush2.msra.mxu1 %v270_v35  ;;  %v194_v35 = vld [vmem:[%s1602_s0 + $0x180] sm:$0xff] }
  0x26   :  { %310 = vmatprep.subr.mxu0 %v269_v36  ;;  %888 = vmatprep.subr.mxu1 %v269_v36  ;;  %v165_v36 = vld [vmem:[%s1602_s0 + $0x98] sm:$0xff] }
  0x27   :  { %311 = vmatpush2.msra.mxu0 %v268_v37  ;;  %920 = vmatpush2.msra.mxu1 %v268_v37  ;;  %v197_v37 = vld [vmem:[%s1602_s0 + $0x198] sm:$0xff] }
  0x28   :  { %312 = vmatprep.subr.mxu0 %v267_v38  ;;  %889 = vmatprep.subr.mxu1 %v267_v38  ;;  %v164_v38 = vld [vmem:[%s1602_s0 + $0x90] sm:$0xff] }
  0x29   :  { %313 = vmatpush2.msra.mxu0 %v266_v39  ;;  %921 = vmatpush2.msra.mxu1 %v266_v39  ;;  %v196_v39 = vld [vmem:[%s1602_s0 + $0x190] sm:$0xff] }
  0x2a   :  { %314 = vmatprep.subr.mxu0 %v265_v40  ;;  %890 = vmatprep.subr.mxu1 %v265_v40  ;;  %v167_v40 = vld [vmem:[%s1602_s0 + $0xa8] sm:$0xff] }
  0x2b   :  { %315 = vmatpush2.msra.mxu0 %v264_v41  ;;  %922 = vmatpush2.msra.mxu1 %v264_v41  ;;  %v199_v41 = vld [vmem:[%s1602_s0 + $0x1a8] sm:$0xff] }
  0x2c   :  { %316 = vmatprep.subr.mxu0 %v263_v42  ;;  %891 = vmatprep.subr.mxu1 %v263_v42  ;;  %v166_v42 = vld [vmem:[%s1602_s0 + $0xa0] sm:$0xff] }
  0x2d   :  { %317 = vmatpush2.msra.mxu0 %v262_v43  ;;  %923 = vmatpush2.msra.mxu1 %v262_v43  ;;  %v198_v43 = vld [vmem:[%s1602_s0 + $0x1a0] sm:$0xff] }
  0x2e   :  { %318 = vmatprep.subr.mxu0 %v261_v44  ;;  %892 = vmatprep.subr.mxu1 %v261_v44  ;;  %v169_v44 = vld [vmem:[%s1602_s0 + $0xb8] sm:$0xff] }
  0x2f   :  { %319 = vmatpush2.msra.mxu0 %v260_v45  ;;  %924 = vmatpush2.msra.mxu1 %v260_v45  ;;  %v201_v45 = vld [vmem:[%s1602_s0 + $0x1b8] sm:$0xff] }
  0x30   :  { %320 = vmatprep.subr.mxu0 %v259_v46  ;;  %893 = vmatprep.subr.mxu1 %v259_v46  ;;  %v168_v46 = vld [vmem:[%s1602_s0 + $0xb0] sm:$0xff] }
  0x31   :  { %321 = vmatpush2.msra.mxu0 %v258_v47  ;;  %925 = vmatpush2.msra.mxu1 %v258_v47  ;;  %v200_v47 = vld [vmem:[%s1602_s0 + $0x1b0] sm:$0xff] }
  0x32   :  { %322 = vmatprep.subr.mxu0 %v257_v48  ;;  %894 = vmatprep.subr.mxu1 %v257_v48  ;;  %v171_v48 = vld [vmem:[%s1602_s0 + $0xc8] sm:$0xff] }
  0x33   :  { %323 = vmatpush2.msra.mxu0 %v256_v49  ;;  %926 = vmatpush2.msra.mxu1 %v256_v49  ;;  %v203_v49 = vld [vmem:[%s1602_s0 + $0x1c8] sm:$0xff] }
  0x34   :  { %324 = vmatprep.subr.mxu0 %v255_v50  ;;  %895 = vmatprep.subr.mxu1 %v255_v50  ;;  %v170_v50 = vld [vmem:[%s1602_s0 + $0xc0] sm:$0xff] }
  0x35   :  { %325 = vmatpush2.msra.mxu0 %v254_v51  ;;  %927 = vmatpush2.msra.mxu1 %v254_v51  ;;  %v202_v51 = vld [vmem:[%s1602_s0 + $0x1c0] sm:$0xff] }
  0x36   :  { %326 = vmatprep.subr.mxu0 %v253_v52  ;;  %896 = vmatprep.subr.mxu1 %v253_v52  ;;  %v173_v52 = vld [vmem:[%s1602_s0 + $0xd8] sm:$0xff] }
  0x37   :  { %327 = vmatpush2.msra.mxu0 %v252_v53  ;;  %928 = vmatpush2.msra.mxu1 %v252_v53  ;;  %v205_v53 = vld [vmem:[%s1602_s0 + $0x1d8] sm:$0xff] }
  0x38   :  { %328 = vmatprep.subr.mxu0 %v251_v54  ;;  %897 = vmatprep.subr.mxu1 %v251_v54  ;;  %v172_v54 = vld [vmem:[%s1602_s0 + $0xd0] sm:$0xff] }
  0x39   :  { %329 = vmatpush2.msra.mxu0 %v250_v55  ;;  %929 = vmatpush2.msra.mxu1 %v250_v55  ;;  %v204_v55 = vld [vmem:[%s1602_s0 + $0x1d0] sm:$0xff] }
  0x3a   :  { %330 = vmatprep.subr.mxu0 %v249_v56  ;;  %898 = vmatprep.subr.mxu1 %v249_v56  ;;  %v175_v56 = vld [vmem:[%s1602_s0 + $0xe8] sm:$0xff] }
  0x3b   :  { %331 = vmatpush2.msra.mxu0 %v248_v57  ;;  %930 = vmatpush2.msra.mxu1 %v248_v57  ;;  %v207_v57 = vld [vmem:[%s1602_s0 + $0x1e8] sm:$0xff] }
  0x3c   :  { %332 = vmatprep.subr.mxu0 %v247_v58  ;;  %899 = vmatprep.subr.mxu1 %v247_v58  ;;  %v174_v58 = vld [vmem:[%s1602_s0 + $0xe0] sm:$0xff] }
  0x3d   :  { %333 = vmatpush2.msra.mxu0 %v246_v59  ;;  %931 = vmatpush2.msra.mxu1 %v246_v59  ;;  %v206_v59 = vld [vmem:[%s1602_s0 + $0x1e0] sm:$0xff] }
  0x3e   :  { %334 = vmatprep.subr.mxu0 %v245_v60  ;;  %900 = vmatprep.subr.mxu1 %v245_v60  ;;  %v177_v60 = vld [vmem:[%s1602_s0 + $0xf8] sm:$0xff] }
  0x3f   :  { %335 = vmatpush2.msra.mxu0 %v244_v61  ;;  %932 = vmatpush2.msra.mxu1 %v244_v61  ;;  %v209_v61 = vld [vmem:[%s1602_s0 + $0x1f8] sm:$0xff] }
  0x40   :  { %336 = vmatprep.subr.mxu0 %v243_v62  ;;  %901 = vmatprep.subr.mxu1 %v243_v62  ;;  %v176_v62 = vld [vmem:[%s1602_s0 + $0xf0] sm:$0xff] }
  0x41   :  { %337 = vmatpush2.msra.mxu0 %v242_v63  ;;  %933 = vmatpush2.msra.mxu1 %v242_v63  ;;  %v208_v63 = vld [vmem:[%s1602_s0 + $0x1f0] sm:$0xff] }
  0x42   :  { %338 = vmatprep.mubr.f32.mxu0 %v147_v0  ;;  %434 = vmatprep.mubr.f32.mxu1 %v179_v1  ;;  %v728_v0 = vlaneseq }
  0x43   :  { %339 = vmatmul.mubr.f32.vlgmr.msra.gmra.mxu0 %v146_v2  ;;  %435 = vmatmul.mubr.f32.vlgmr.msra.gmra.mxu1 %v178_v3  ;;  %v726_v3 = vld [vmem:[%s1603_s2] sm:$0x3] }
  0x44   :  { %344 = vmatprep.mubr.f32.mxu0 %v149_v4  ;;  %440 = vmatprep.mubr.f32.mxu1 %v181_v5  ;;  %v729_v1 = vshrl.u32 %v728_v0, 7 }
  0x46   :  { %v730_v2 = vsub.s32 0, %v729_v1  ;;  %v734_v4 = vsub.s32 1, %v729_v1 }
  0x47   :  { %345 = vmatmul.mubr.f32.gmra.mxu0 %v148_v6  ;;  %441 = vmatmul.mubr.f32.gmra.mxu1 %v180_v7 }
  0x48   :  { %350 = vmatprep.mubr.f32.mxu0 %v151_v8  ;;  %446 = vmatprep.mubr.f32.mxu1 %v183_v9  ;;  %v1341_v5 = vrot.slane %v726_v3, %v730_v2  ;;  %v1343_v6 = vrot.slane %v726_v3, %v734_v4 }
  0x4b   :  { %351 = vmatmul.mubr.f32.gmra.mxu0 %v150_v10  ;;  %447 = vmatmul.mubr.f32.gmra.mxu1 %v182_v11 }
  0x4c   :  { %356 = vmatprep.mubr.f32.mxu0 %v153_v12  ;;  %452 = vmatprep.mubr.f32.mxu1 %v185_v13 }
  0x4f   :  { %357 = vmatmul.mubr.f32.gmra.mxu0 %v152_v14  ;;  %453 = vmatmul.mubr.f32.gmra.mxu1 %v184_v15 }
  0x50   :  { %362 = vmatprep.mubr.f32.mxu0 %v155_v16  ;;  %458 = vmatprep.mubr.f32.mxu1 %v187_v17 }
  0x53   :  { %363 = vmatmul.mubr.f32.gmra.mxu0 %v154_v18  ;;  %459 = vmatmul.mubr.f32.gmra.mxu1 %v186_v19 }
  0x54   :  { %368 = vmatprep.mubr.f32.mxu0 %v157_v20  ;;  %464 = vmatprep.mubr.f32.mxu1 %v189_v21 }
  0x57   :  { %369 = vmatmul.mubr.f32.gmra.mxu0 %v156_v22  ;;  %465 = vmatmul.mubr.f32.gmra.mxu1 %v188_v23 }
  0x58   :  { %374 = vmatprep.mubr.f32.mxu0 %v159_v24  ;;  %470 = vmatprep.mubr.f32.mxu1 %v191_v25 }
  0x5b   :  { %375 = vmatmul.mubr.f32.gmra.mxu0 %v158_v26  ;;  %471 = vmatmul.mubr.f32.gmra.mxu1 %v190_v27 }
  0x5c   :  { %380 = vmatprep.mubr.f32.mxu0 %v161_v28  ;;  %476 = vmatprep.mubr.f32.mxu1 %v193_v29 }
  0x5f   :  { %381 = vmatmul.mubr.f32.gmra.mxu0 %v160_v30  ;;  %477 = vmatmul.mubr.f32.gmra.mxu1 %v192_v31 }
  0x60   :  { %386 = vmatprep.mubr.f32.mxu0 %v163_v32  ;;  %482 = vmatprep.mubr.f32.mxu1 %v195_v33 }
  0x63   :  { %387 = vmatmul.mubr.f32.gmra.mxu0 %v162_v34  ;;  %483 = vmatmul.mubr.f32.gmra.mxu1 %v194_v35 }
  0x64   :  { %392 = vmatprep.mubr.f32.mxu0 %v165_v36  ;;  %488 = vmatprep.mubr.f32.mxu1 %v197_v37 }
  0x67   :  { %393 = vmatmul.mubr.f32.gmra.mxu0 %v164_v38  ;;  %489 = vmatmul.mubr.f32.gmra.mxu1 %v196_v39 }
  0x68   :  { %398 = vmatprep.mubr.f32.mxu0 %v167_v40  ;;  %494 = vmatprep.mubr.f32.mxu1 %v199_v41 }
  0x6b   :  { %399 = vmatmul.mubr.f32.gmra.mxu0 %v166_v42  ;;  %495 = vmatmul.mubr.f32.gmra.mxu1 %v198_v43 }
  0x6c   :  { %404 = vmatprep.mubr.f32.mxu0 %v169_v44  ;;  %500 = vmatprep.mubr.f32.mxu1 %v201_v45 }
  0x6f   :  { %405 = vmatmul.mubr.f32.gmra.mxu0 %v168_v46  ;;  %501 = vmatmul.mubr.f32.gmra.mxu1 %v200_v47 }
  0x70   :  { %410 = vmatprep.mubr.f32.mxu0 %v171_v48  ;;  %506 = vmatprep.mubr.f32.mxu1 %v203_v49 }
  0x73   :  { %411 = vmatmul.mubr.f32.gmra.mxu0 %v170_v50  ;;  %507 = vmatmul.mubr.f32.gmra.mxu1 %v202_v51 }
  0x74   :  { %416 = vmatprep.mubr.f32.mxu0 %v173_v52  ;;  %512 = vmatprep.mubr.f32.mxu1 %v205_v53 }
  0x77   :  { %417 = vmatmul.mubr.f32.gmra.mxu0 %v172_v54  ;;  %513 = vmatmul.mubr.f32.gmra.mxu1 %v204_v55 }
  0x78   :  { %422 = vmatprep.mubr.f32.mxu0 %v175_v56  ;;  %518 = vmatprep.mubr.f32.mxu1 %v207_v57 }
  0x7b   :  { %423 = vmatmul.mubr.f32.gmra.mxu0 %v174_v58  ;;  %519 = vmatmul.mubr.f32.gmra.mxu1 %v206_v59 }
  0x7c   :  { %428 = vmatprep.mubr.f32.mxu0 %v177_v60  ;;  %524 = vmatprep.mubr.f32.mxu1 %v209_v61 }
  0x7f   :  { %429 = vmatmul.mubr.f32.gmra.mxu0 %v176_v62  ;;  %525 = vmatmul.mubr.f32.gmra.mxu1 %v208_v63 }
 0x103   :  { %v340_v7 = vpop.f32.mrf.mxu0  ;;  %v436_v8 = vpop.f32.mrf.mxu1 }
 0x104   :  { %v738_v9 = vadd.f32 %v1341_v5, %v340_v7  ;;  %v770_v10 = vadd.f32 %v1341_v5, %v436_v8 }
 0x105   :  { %v342_v11 = vpop.f32.mrf.mxu0  ;;  %v438_v12 = vpop.f32.mrf.mxu1 }
 0x106   :  { %802 = vst [vmem:[%s1604_s3] sm:$0xff] %v738_v9  ;;  %834 = vst [vmem:[%s1604_s3 + $0x100] sm:$0xff] %v770_v10  ;;  %v739_v13 = vadd.f32 %v1343_v6, %v342_v11  ;;  %v771_v14 = vadd.f32 %v1343_v6, %v438_v12 }
 0x107   :  { %v346_v15 = vpop.f32.mrf.mxu0  ;;  %v442_v16 = vpop.f32.mrf.mxu1 }
 0x108   :  { %803 = vst [vmem:[%s1604_s3 + $0x8] sm:$0xff] %v739_v13  ;;  %835 = vst [vmem:[%s1604_s3 + $0x108] sm:$0xff] %v771_v14  ;;  %v740_v17 = vadd.f32 %v1341_v5, %v346_v15  ;;  %v772_v18 = vadd.f32 %v1341_v5, %v442_v16 }
 0x109   :  { %v348_v19 = vpop.f32.mrf.mxu0  ;;  %v444_v20 = vpop.f32.mrf.mxu1 }
 0x10a   :  { %804 = vst [vmem:[%s1604_s3 + $0x10] sm:$0xff] %v740_v17  ;;  %836 = vst [vmem:[%s1604_s3 + $0x110] sm:$0xff] %v772_v18  ;;  %v741_v21 = vadd.f32 %v1343_v6, %v348_v19  ;;  %v773_v22 = vadd.f32 %v1343_v6, %v444_v20 }
 0x10b   :  { %v352_v23 = vpop.f32.mrf.mxu0  ;;  %v448_v24 = vpop.f32.mrf.mxu1 }
 0x10c   :  { %805 = vst [vmem:[%s1604_s3 + $0x18] sm:$0xff] %v741_v21  ;;  %837 = vst [vmem:[%s1604_s3 + $0x118] sm:$0xff] %v773_v22  ;;  %v742_v25 = vadd.f32 %v1341_v5, %v352_v23  ;;  %v774_v26 = vadd.f32 %v1341_v5, %v448_v24 }
 0x10d   :  { %v354_v27 = vpop.f32.mrf.mxu0  ;;  %v450_v28 = vpop.f32.mrf.mxu1 }
 0x10e   :  { %806 = vst [vmem:[%s1604_s3 + $0x20] sm:$0xff] %v742_v25  ;;  %838 = vst [vmem:[%s1604_s3 + $0x120] sm:$0xff] %v774_v26  ;;  %v743_v29 = vadd.f32 %v1343_v6, %v354_v27  ;;  %v775_v30 = vadd.f32 %v1343_v6, %v450_v28 }
 0x10f   :  { %v358_v31 = vpop.f32.mrf.mxu0  ;;  %v454_v32 = vpop.f32.mrf.mxu1 }
 0x110   :  { %807 = vst [vmem:[%s1604_s3 + $0x28] sm:$0xff] %v743_v29  ;;  %839 = vst [vmem:[%s1604_s3 + $0x128] sm:$0xff] %v775_v30  ;;  %v744_v33 = vadd.f32 %v1341_v5, %v358_v31  ;;  %v776_v34 = vadd.f32 %v1341_v5, %v454_v32 }
 0x111   :  { %v360_v35 = vpop.f32.mrf.mxu0  ;;  %v456_v36 = vpop.f32.mrf.mxu1 }
 0x112   :  { %808 = vst [vmem:[%s1604_s3 + $0x30] sm:$0xff] %v744_v33  ;;  %840 = vst [vmem:[%s1604_s3 + $0x130] sm:$0xff] %v776_v34  ;;  %v745_v37 = vadd.f32 %v1343_v6, %v360_v35  ;;  %v777_v38 = vadd.f32 %v1343_v6, %v456_v36 }
 0x113   :  { %v364_v39 = vpop.f32.mrf.mxu0  ;;  %v460_v40 = vpop.f32.mrf.mxu1 }
 0x114   :  { %809 = vst [vmem:[%s1604_s3 + $0x38] sm:$0xff] %v745_v37  ;;  %841 = vst [vmem:[%s1604_s3 + $0x138] sm:$0xff] %v777_v38  ;;  %v746_v41 = vadd.f32 %v1341_v5, %v364_v39  ;;  %v778_v42 = vadd.f32 %v1341_v5, %v460_v40 }
 0x115   :  { %v366_v43 = vpop.f32.mrf.mxu0  ;;  %v462_v44 = vpop.f32.mrf.mxu1 }
 0x116   :  { %810 = vst [vmem:[%s1604_s3 + $0x40] sm:$0xff] %v746_v41  ;;  %842 = vst [vmem:[%s1604_s3 + $0x140] sm:$0xff] %v778_v42  ;;  %v747_v45 = vadd.f32 %v1343_v6, %v366_v43  ;;  %v779_v46 = vadd.f32 %v1343_v6, %v462_v44 }
 0x117   :  { %v370_v47 = vpop.f32.mrf.mxu0  ;;  %v466_v48 = vpop.f32.mrf.mxu1 }
 0x118   :  { %811 = vst [vmem:[%s1604_s3 + $0x48] sm:$0xff] %v747_v45  ;;  %843 = vst [vmem:[%s1604_s3 + $0x148] sm:$0xff] %v779_v46  ;;  %v748_v49 = vadd.f32 %v1341_v5, %v370_v47  ;;  %v780_v50 = vadd.f32 %v1341_v5, %v466_v48 }
 0x119   :  { %v372_v51 = vpop.f32.mrf.mxu0  ;;  %v468_v52 = vpop.f32.mrf.mxu1 }
 0x11a   :  { %812 = vst [vmem:[%s1604_s3 + $0x50] sm:$0xff] %v748_v49  ;;  %844 = vst [vmem:[%s1604_s3 + $0x150] sm:$0xff] %v780_v50  ;;  %v749_v53 = vadd.f32 %v1343_v6, %v372_v51  ;;  %v781_v54 = vadd.f32 %v1343_v6, %v468_v52 }
 0x11b   :  { %v376_v55 = vpop.f32.mrf.mxu0  ;;  %v472_v56 = vpop.f32.mrf.mxu1 }
 0x11c   :  { %813 = vst [vmem:[%s1604_s3 + $0x58] sm:$0xff] %v749_v53  ;;  %845 = vst [vmem:[%s1604_s3 + $0x158] sm:$0xff] %v781_v54  ;;  %v750_v57 = vadd.f32 %v1341_v5, %v376_v55  ;;  %v782_v58 = vadd.f32 %v1341_v5, %v472_v56 }
 0x11d   :  { %v378_v59 = vpop.f32.mrf.mxu0  ;;  %v474_v60 = vpop.f32.mrf.mxu1 }
 0x11e   :  { %814 = vst [vmem:[%s1604_s3 + $0x60] sm:$0xff] %v750_v57  ;;  %846 = vst [vmem:[%s1604_s3 + $0x160] sm:$0xff] %v782_v58  ;;  %v751_v61 = vadd.f32 %v1343_v6, %v378_v59  ;;  %v783_v62 = vadd.f32 %v1343_v6, %v474_v60 }
 0x11f   :  { %v382_v63 = vpop.f32.mrf.mxu0  ;;  %v478_v0 = vpop.f32.mrf.mxu1 }
 0x120   :  { %815 = vst [vmem:[%s1604_s3 + $0x68] sm:$0xff] %v751_v61  ;;  %847 = vst [vmem:[%s1604_s3 + $0x168] sm:$0xff] %v783_v62  ;;  %v752_v1 = vadd.f32 %v1341_v5, %v382_v63  ;;  %v784_v2 = vadd.f32 %v1341_v5, %v478_v0 }
 0x121   :  { %v384_v3 = vpop.f32.mrf.mxu0  ;;  %v480_v4 = vpop.f32.mrf.mxu1 }
 0x122   :  { %816 = vst [vmem:[%s1604_s3 + $0x70] sm:$0xff] %v752_v1  ;;  %848 = vst [vmem:[%s1604_s3 + $0x170] sm:$0xff] %v784_v2  ;;  %v753_v7 = vadd.f32 %v1343_v6, %v384_v3  ;;  %v785_v8 = vadd.f32 %v1343_v6, %v480_v4 }
 0x123   :  { %v388_v9 = vpop.f32.mrf.mxu0  ;;  %v484_v10 = vpop.f32.mrf.mxu1 }
 0x124   :  { %817 = vst [vmem:[%s1604_s3 + $0x78] sm:$0xff] %v753_v7  ;;  %849 = vst [vmem:[%s1604_s3 + $0x178] sm:$0xff] %v785_v8  ;;  %v754_v11 = vadd.f32 %v1341_v5, %v388_v9  ;;  %v786_v12 = vadd.f32 %v1341_v5, %v484_v10 }
 0x125   :  { %v390_v13 = vpop.f32.mrf.mxu0  ;;  %v486_v14 = vpop.f32.mrf.mxu1 }
 0x126   :  { %818 = vst [vmem:[%s1604_s3 + $0x80] sm:$0xff] %v754_v11  ;;  %850 = vst [vmem:[%s1604_s3 + $0x180] sm:$0xff] %v786_v12  ;;  %v755_v15 = vadd.f32 %v1343_v6, %v390_v13  ;;  %v787_v16 = vadd.f32 %v1343_v6, %v486_v14 }
 0x127   :  { %v394_v17 = vpop.f32.mrf.mxu0  ;;  %v490_v18 = vpop.f32.mrf.mxu1 }
 0x128   :  { %819 = vst [vmem:[%s1604_s3 + $0x88] sm:$0xff] %v755_v15  ;;  %851 = vst [vmem:[%s1604_s3 + $0x188] sm:$0xff] %v787_v16  ;;  %v756_v19 = vadd.f32 %v1341_v5, %v394_v17  ;;  %v788_v20 = vadd.f32 %v1341_v5, %v490_v18 }
 0x129   :  { %v396_v21 = vpop.f32.mrf.mxu0  ;;  %v492_v22 = vpop.f32.mrf.mxu1 }
 0x12a   :  { %820 = vst [vmem:[%s1604_s3 + $0x90] sm:$0xff] %v756_v19  ;;  %852 = vst [vmem:[%s1604_s3 + $0x190] sm:$0xff] %v788_v20  ;;  %v757_v23 = vadd.f32 %v1343_v6, %v396_v21  ;;  %v789_v24 = vadd.f32 %v1343_v6, %v492_v22 }
 0x12b   :  { %v400_v25 = vpop.f32.mrf.mxu0  ;;  %v496_v26 = vpop.f32.mrf.mxu1 }
 0x12c   :  { %821 = vst [vmem:[%s1604_s3 + $0x98] sm:$0xff] %v757_v23  ;;  %853 = vst [vmem:[%s1604_s3 + $0x198] sm:$0xff] %v789_v24  ;;  %v758_v27 = vadd.f32 %v1341_v5, %v400_v25  ;;  %v790_v28 = vadd.f32 %v1341_v5, %v496_v26 }
 0x12d   :  { %v402_v29 = vpop.f32.mrf.mxu0  ;;  %v498_v30 = vpop.f32.mrf.mxu1 }
 0x12e   :  { %822 = vst [vmem:[%s1604_s3 + $0xa0] sm:$0xff] %v758_v27  ;;  %854 = vst [vmem:[%s1604_s3 + $0x1a0] sm:$0xff] %v790_v28  ;;  %v759_v31 = vadd.f32 %v1343_v6, %v402_v29  ;;  %v791_v32 = vadd.f32 %v1343_v6, %v498_v30 }
 0x12f   :  { %v406_v33 = vpop.f32.mrf.mxu0  ;;  %v502_v34 = vpop.f32.mrf.mxu1 }
 0x130   :  { %823 = vst [vmem:[%s1604_s3 + $0xa8] sm:$0xff] %v759_v31  ;;  %855 = vst [vmem:[%s1604_s3 + $0x1a8] sm:$0xff] %v791_v32  ;;  %v760_v35 = vadd.f32 %v1341_v5, %v406_v33  ;;  %v792_v36 = vadd.f32 %v1341_v5, %v502_v34 }
 0x131   :  { %v408_v37 = vpop.f32.mrf.mxu0  ;;  %v504_v38 = vpop.f32.mrf.mxu1 }
 0x132   :  { %824 = vst [vmem:[%s1604_s3 + $0xb0] sm:$0xff] %v760_v35  ;;  %856 = vst [vmem:[%s1604_s3 + $0x1b0] sm:$0xff] %v792_v36  ;;  %v761_v39 = vadd.f32 %v1343_v6, %v408_v37  ;;  %v793_v40 = vadd.f32 %v1343_v6, %v504_v38 }
 0x133   :  { %v412_v41 = vpop.f32.mrf.mxu0  ;;  %v508_v42 = vpop.f32.mrf.mxu1 }
 0x134   :  { %825 = vst [vmem:[%s1604_s3 + $0xb8] sm:$0xff] %v761_v39  ;;  %857 = vst [vmem:[%s1604_s3 + $0x1b8] sm:$0xff] %v793_v40  ;;  %v762_v43 = vadd.f32 %v1341_v5, %v412_v41  ;;  %v794_v44 = vadd.f32 %v1341_v5, %v508_v42 }
 0x135   :  { %v414_v45 = vpop.f32.mrf.mxu0  ;;  %v510_v46 = vpop.f32.mrf.mxu1 }
 0x136   :  { %826 = vst [vmem:[%s1604_s3 + $0xc0] sm:$0xff] %v762_v43  ;;  %858 = vst [vmem:[%s1604_s3 + $0x1c0] sm:$0xff] %v794_v44  ;;  %v763_v47 = vadd.f32 %v1343_v6, %v414_v45  ;;  %v795_v48 = vadd.f32 %v1343_v6, %v510_v46 }
 0x137   :  { %v418_v49 = vpop.f32.mrf.mxu0  ;;  %v514_v50 = vpop.f32.mrf.mxu1 }
 0x138   :  { %827 = vst [vmem:[%s1604_s3 + $0xc8] sm:$0xff] %v763_v47  ;;  %859 = vst [vmem:[%s1604_s3 + $0x1c8] sm:$0xff] %v795_v48  ;;  %v764_v51 = vadd.f32 %v1341_v5, %v418_v49  ;;  %v796_v52 = vadd.f32 %v1341_v5, %v514_v50 }
 0x139   :  { %v420_v53 = vpop.f32.mrf.mxu0  ;;  %v516_v54 = vpop.f32.mrf.mxu1 }
 0x13a   :  { %828 = vst [vmem:[%s1604_s3 + $0xd0] sm:$0xff] %v764_v51  ;;  %860 = vst [vmem:[%s1604_s3 + $0x1d0] sm:$0xff] %v796_v52  ;;  %v765_v55 = vadd.f32 %v1343_v6, %v420_v53  ;;  %v797_v56 = vadd.f32 %v1343_v6, %v516_v54 }
 0x13b   :  { %v424_v57 = vpop.f32.mrf.mxu0  ;;  %v520_v58 = vpop.f32.mrf.mxu1 }
 0x13c   :  { %829 = vst [vmem:[%s1604_s3 + $0xd8] sm:$0xff] %v765_v55  ;;  %861 = vst [vmem:[%s1604_s3 + $0x1d8] sm:$0xff] %v797_v56  ;;  %v766_v59 = vadd.f32 %v1341_v5, %v424_v57  ;;  %v798_v60 = vadd.f32 %v1341_v5, %v520_v58 }
 0x13d   :  { %v426_v61 = vpop.f32.mrf.mxu0  ;;  %v522_v62 = vpop.f32.mrf.mxu1 }
 0x13e   :  { %830 = vst [vmem:[%s1604_s3 + $0xe0] sm:$0xff] %v766_v59  ;;  %862 = vst [vmem:[%s1604_s3 + $0x1e0] sm:$0xff] %v798_v60  ;;  %v767_v63 = vadd.f32 %v1343_v6, %v426_v61  ;;  %v799_v0 = vadd.f32 %v1343_v6, %v522_v62 }
 0x13f   :  { %v430_v1 = vpop.f32.mrf.mxu0  ;;  %v526_v2 = vpop.f32.mrf.mxu1 }
 0x140   :  { %831 = vst [vmem:[%s1604_s3 + $0xe8] sm:$0xff] %v767_v63  ;;  %863 = vst [vmem:[%s1604_s3 + $0x1e8] sm:$0xff] %v799_v0  ;;  %v768_v3 = vadd.f32 %v1341_v5, %v430_v1  ;;  %v800_v4 = vadd.f32 %v1341_v5, %v526_v2 }
 0x141   :  { %v432_v7 = vpop.f32.mrf.mxu0  ;;  %v528_v8 = vpop.f32.mrf.mxu1 }
 0x142   :  { %832 = vst [vmem:[%s1604_s3 + $0xf0] sm:$0xff] %v768_v3  ;;  %864 = vst [vmem:[%s1604_s3 + $0x1f0] sm:$0xff] %v800_v4  ;;  %v769_v9 = vadd.f32 %v1343_v6, %v432_v7  ;;  %v801_v10 = vadd.f32 %v1343_v6, %v528_v8 }
 0x144   :  { %833 = vst [vmem:[%s1604_s3 + $0xf8] sm:$0xff] %v769_v9  ;;  %865 = vst [vmem:[%s1604_s3 + $0x1f8] sm:$0xff] %v801_v10 }

</bundles_post_ra>
